<compile_context>
chip_gen: v7x
topology: tpu7x:2x2x1
jax: 0.10.0
libtpu: 0.0.40
codegen_flags: <defaults>
</compile_context>

<pallas_src>
import jax
import jax.numpy as jnp
from jax.experimental import pallas as pl
from jax.experimental.pallas import tpu as pltpu


# ----------------------------------------------------------------------------
# Batch-block picker: fold batch into the matmul M dimension (review item 1)
# ----------------------------------------------------------------------------
def _pick_batch_block(B, T):
    """Rows fed to every matmul = b_blk * T.

    Prefer enough rows to fill the MXU (~256) but keep >= 2 grid steps so
    v7x's second TensorCore gets work.  Fall back to 1 when T is not a
    multiple of the (bf16) sublane tile, so the in-kernel
    (b_blk, T, C) <-> (b_blk*T, C) reshapes stay layout no-ops.
    """
    if T % 16 != 0:
        return 1
    divs = [d for d in range(1, B + 1) if B % d == 0]
    cands = [d for d in divs if B // d >= 2] or divs
    for d in cands:
        if d * T >= 256:
            return d
    return cands[-1]


# ----------------------------------------------------------------------------
# Fused kernel: whole TCN + both (fused) VAE heads, b_blk batch elems per step
# ----------------------------------------------------------------------------
def _make_motion_enc_kernel(block_meta, T, b_blk, pad_max, cmax, n_weights,
                            c_last, use_share_vae, use_spec_vae, compute_dtype):
    """block_meta: tuple of (dilation, cin, cout, has_downsample) per block."""
    M = b_blk * T

    def kernel(*refs):
        x_ref, eps_ref = refs[0], refs[1]
        w = refs[2:2 + n_weights]
        z_ref = refs[2 + n_weights]
        buf_a = refs[3 + n_weights]     # block input / block output (bf16)
        buf_b = refs[4 + n_weights]     # intra-block hidden h       (bf16)

        # Zero ONLY the causal-pad prefix rows.  No block ever writes rows
        # [0, pad_max), and every dilated conv reads them as its left padding.
        # Re-zeroed each grid step (idempotent, tiny) so correctness holds if
        # the "parallel" batch axis is sharded across TensorCores on v7x.
        buf_a[:, :pad_max, :] = jnp.zeros((b_blk, pad_max, cmax), compute_dtype)
        buf_b[:, :pad_max, :] = jnp.zeros((b_blk, pad_max, cmax), compute_dtype)

        cin0 = x_ref.shape[-1]
        buf_a[:, pad_max:pad_max + T, :cin0] = x_ref[...].astype(compute_dtype)

        def conv(src_buf, cin, w_ref, b_ref, dilation):
            """Dilated causal conv: (b_blk*T, cin) -> (b_blk*T, cout), f32.

            Operands come straight out of the bf16 scratch (no per-tap cast);
            accumulation + bias stay f32.
            """
            k_taps = w_ref.shape[0]
            pad = (k_taps - 1) * dilation
            acc = None
            for k in range(k_taps):                    # static unroll over taps
                start = pad_max - pad + k * dilation   # >= 0 by construction
                lhs = src_buf[:, start:start + T, :cin].reshape(M, cin)
                d = jnp.dot(lhs, w_ref[k], preferred_element_type=jnp.float32)
                acc = d if acc is None else acc + d
            return acc + b_ref[...]

        # ------------------- TCN, entirely in VMEM -------------------
        wi = 0
        for (dilation, cin, cout, has_down) in block_meta:
            w1, b1, w2, b2 = w[wi], w[wi + 1], w[wi + 2], w[wi + 3]
            wi += 4
            h = jnp.maximum(conv(buf_a, cin, w1, b1, dilation), 0.0)
            buf_b[:, pad_max:pad_max + T, :cout] = (
                h.reshape(b_blk, T, cout).astype(compute_dtype))
            out = jnp.maximum(conv(buf_b, cout, w2, b2, dilation), 0.0)
            if has_down:                               # 1x1 downsample path,
                wd, bd = w[wi], w[wi + 1]              # reuses x already in VMEM
                wi += 2
                res = conv(buf_a, cin, wd, bd, 1)
            else:
                res = buf_a[:, pad_max:pad_max + T, :cout].reshape(M, cout)
                res = res.astype(jnp.float32)
            out = jnp.maximum(out + res, 0.0)
            buf_a[:, pad_max:pad_max + T, :cout] = (
                out.reshape(b_blk, T, cout).astype(compute_dtype))

        # ---------- both VAE heads fused into 3 lane-dense matmuls ----------
        #  WL  = [wl_share | wl_spec]                                  (64, 64)
        #  W1  = block-diag over the 4 hidden branches                 (64, 128)
        #  W2  = block-diag -> [mu_share | mu_spec | lv_share | lv_spec] (128, 4H)
        wl, bl, w1h, b1h, w2h, b2h = w[wi:wi + 6]
        wi += 6
        xf = buf_a[:, pad_max:pad_max + T, :c_last].reshape(M, c_last)
        hl = jnp.dot(xf, wl[...], preferred_element_type=jnp.float32) + bl[...]
        h1 = jnp.maximum(
            jnp.dot(hl.astype(compute_dtype), w1h[...],
                    preferred_element_type=jnp.float32) + b1h[...], 0.0)
        out4 = jnp.dot(h1.astype(compute_dtype), w2h[...],
                       preferred_element_type=jnp.float32) + b2h[...]

        H2 = out4.shape[-1] // 2                      # = 2 * pose_hidden_size
        mu = out4[:, :H2]                             # [mu_share | mu_spec]
        noise = eps_ref[...].reshape(M, H2) * jnp.exp(0.5 * out4[:, H2:])
        if not (use_share_vae and use_spec_vae):
            # Non-VAE head returns the mean only (reference semantics).
            Hh = H2 // 2
            gate = jnp.concatenate(
                [jnp.full((1, Hh), float(use_share_vae), jnp.float32),
                 jnp.full((1, Hh), float(use_spec_vae), jnp.float32)], axis=-1)
            noise = noise * gate
        z_ref[...] = (mu + noise).reshape(b_blk, T, H2).astype(z_ref.dtype)

        assert wi == n_weights   # trace-time sanity check on weight packing

    return kernel


# ----------------------------------------------------------------------------
# Head-weight packing: share/spec x mean/var -> 3 block-diagonal matmuls
# ----------------------------------------------------------------------------
def _pack_heads(share, spec, H, compute_dtype):
    d_h = share["wl"].shape[1]                     # 32
    WL = jnp.concatenate([share["wl"], spec["wl"]], axis=1)          # (64, 2*d_h)
    BL = jnp.concatenate([share["bl"], spec["bl"]], axis=1)

    W1 = jnp.zeros((2 * d_h, 4 * d_h), jnp.float32)                  # (64, 128)
    W1 = W1.at[:d_h, 0 * d_h:1 * d_h].set(share["w1m"])   # share_out -> share_mean hid
    W1 = W1.at[:d_h, 1 * d_h:2 * d_h].set(share["w1v"])   # share_out -> share_var  hid
    W1 = W1.at[d_h:, 2 * d_h:3 * d_h].set(spec["w1m"])    # spec_out  -> spec_mean  hid
    W1 = W1.at[d_h:, 3 * d_h:4 * d_h].set(spec["w1v"])    # spec_out  -> spec_var   hid
    B1 = jnp.concatenate([share["b1m"], share["b1v"],
                          spec["b1m"], spec["b1v"]], axis=1)

    W2 = jnp.zeros((4 * d_h, 4 * H), jnp.float32)                    # (128, 4H)
    W2 = W2.at[0 * d_h:1 * d_h, 0 * H:1 * H].set(share["w2m"])   # -> mu_share
    W2 = W2.at[2 * d_h:3 * d_h, 1 * H:2 * H].set(spec["w2m"])    # -> mu_spec
    W2 = W2.at[1 * d_h:2 * d_h, 2 * H:3 * H].set(share["w2v"])   # -> logvar_share
    W2 = W2.at[3 * d_h:4 * d_h, 3 * H:4 * H].set(spec["w2v"])    # -> logvar_spec
    B2 = jnp.concatenate([share["b2m"], spec["b2m"],
                          share["b2v"], spec["b2v"]], axis=1)

    return [WL.astype(compute_dtype), BL, W1.astype(compute_dtype), B1,
            W2.astype(compute_dtype), B2]


# ----------------------------------------------------------------------------
# Motion_Enc.forward wrapper: one pallas_call for the whole module
# ----------------------------------------------------------------------------
def motion_enc_forward(params, inputs, eps_share, eps_spec, *,
                       with_motion_share_vae=True, with_motion_spec_vae=True,
                       compute_dtype=jnp.bfloat16, batch_block=None):
    """inputs: (B, T, C_in)  ->  (z_share, z_specific), each (B, T, H) f32."""
    B, T, Cin = inputs.shape
    H = params["share"]["w2m"].shape[1]

    # Causal-pad prefix length (max over blocks), rounded to sublane multiple.
    pad_max = max((blk["w1"].shape[0] - 1) * (2 ** i)
                  for i, blk in enumerate(params["tcn"]))
    pad_max = ((pad_max + 7) // 8) * 8

    # Widest channel count anywhere in the TCN -> lane width of the scratch.
    cmax = Cin
    for blk in params["tcn"]:
        cmax = max(cmax, blk["w1"].shape[1], blk["w1"].shape[2])
    cmax = ((cmax + 127) // 128) * 128

    b_blk = _pick_batch_block(B, T) if batch_block is None else batch_block
    assert B % b_blk == 0, "batch_block must divide the batch size"
    assert b_blk == 1 or T % 8 == 0

    # Flatten TCN weights in exactly the order the kernel consumes them.
    block_meta = []
    flat_w = []
    for i, blk in enumerate(params["tcn"]):
        cin_b, cout_b = blk["w1"].shape[1], blk["w1"].shape[2]
        has_down = "wd" in blk
        block_meta.append((2 ** i, cin_b, cout_b, has_down))
        flat_w += [blk["w1"].astype(compute_dtype), blk["b1"],
                   blk["w2"].astype(compute_dtype), blk["b2"]]
        if has_down:
            flat_w += [blk["wd"].astype(compute_dtype), blk["bd"]]
    c_last = block_meta[-1][2]                       # 64
    flat_w += _pack_heads(params["share"], params["spec"], H, compute_dtype)

    x = inputs.astype(jnp.float32)
    eps_packed = jnp.concatenate([eps_share, eps_spec],
                                 axis=-1).astype(jnp.float32)     # (B, T, 2H)

    def _const_spec(a):
        # Constant block index -> weight stays VMEM-resident, no re-DMA.
        nd = a.ndim
        return pl.BlockSpec(a.shape, lambda i, _nd=nd: (0,) * _nd)

    in_specs = [pl.BlockSpec((b_blk, T, Cin), lambda i: (i, 0, 0)),
                pl.BlockSpec((b_blk, T, 2 * H), lambda i: (i, 0, 0))]
    in_specs += [_const_spec(a) for a in flat_w]

    kernel = _make_motion_enc_kernel(
        tuple(block_meta), T, b_blk, pad_max, cmax, len(flat_w), c_last,
        with_motion_share_vae, with_motion_spec_vae, compute_dtype)

    # Whole-sequence residency: ~2 MB weights (x2 buffering) + a few tens of
    # KB of bf16 activation scratch -- far below every generation's VMEM, so
    # no time tiling is needed; the lever is MXU M-dim occupancy (b_blk*T).
    z_packed = pl.pallas_call(
        kernel,
        out_shape=jax.ShapeDtypeStruct((B, T, 2 * H), jnp.float32),
        grid=(B // b_blk,),
        in_specs=in_specs,
        out_specs=pl.BlockSpec((b_blk, T, 2 * H), lambda i: (i, 0, 0)),
        scratch_shapes=[pltpu.VMEM((b_blk, pad_max + T, cmax), compute_dtype),
                        pltpu.VMEM((b_blk, pad_max + T, cmax), compute_dtype)],
        compiler_params=pltpu.CompilerParams(
            dimension_semantics=("parallel",)),   # >=2 steps -> v7x's 2 TCs
    )(x, eps_packed, *flat_w)

    return z_packed[..., :H], z_packed[..., H:]


# ----------------------------------------------------------------------------
# Deterministic parameter construction (synthetic weights, no checkpoint)
# ----------------------------------------------------------------------------
def _init(key, shape, fan_in):
    return jax.random.normal(key, shape, jnp.float32) / jnp.sqrt(jnp.float32(fan_in))


def init_motion_enc_params(key, joint_num, pose_hidden_size):
    joint_repr_dim = 2
    input_channel = joint_num * joint_repr_dim
    channels = [256, 256, 128, 128, 64]
    K = 3
    params = {"tcn": []}
    for i, cout in enumerate(channels):
        cin = input_channel if i == 0 else channels[i - 1]
        key, k1, k2, k3, k4, k5, k6 = jax.random.split(key, 7)
        blk = {
            "w1": _init(k1, (K, cin, cout), K * cin),
            "b1": _init(k2, (1, cout), cout),
            "w2": _init(k3, (K, cout, cout), K * cout),
            "b2": _init(k4, (1, cout), cout),
        }
        if cin != cout:   # 1x1 downsample conv in the residual path
            blk["wd"] = _init(k5, (1, cin, cout), cin)
            blk["bd"] = _init(k6, (1, cout), cout)
        params["tcn"].append(blk)

    def head(hkey):
        ks = jax.random.split(hkey, 10)
        H = pose_hidden_size
        return {
            "wl": _init(ks[0], (64, 32), 64), "bl": _init(ks[1], (1, 32), 32),
            "w1m": _init(ks[2], (32, 32), 32), "b1m": _init(ks[3], (1, 32), 32),
            "w2m": _init(ks[4], (32, H), 32), "b2m": _init(ks[5], (1, H), 32),
            "w1v": _init(ks[6], (32, 32), 32), "b1v": _init(ks[7], (1, 32), 32),
            "w2v": _init(ks[8], (32, H), 32), "b2v": _init(ks[9], (1, H), 32),
        }

    key, ks1, ks2 = jax.random.split(key, 3)
    params["share"] = head(ks1)
    params["spec"] = head(ks2)
    return params


if __name__ == "__main__":
    key = jax.random.PRNGKey(0)
    joint_num = 8            # -> input_channel = joint_num * 2 = 16
    pose_hidden_size = 16
    B, T = 4, 16             # small; picker folds 2 batch elems per grid step
    C_in = joint_num * 2

    kp, kx, ke1, ke2 = jax.random.split(key, 4)
    params = init_motion_enc_params(kp, joint_num, pose_hidden_size)
    inputs = jax.random.normal(kx, (B, T, C_in), jnp.float32)
    # torch.randn_like noise for reparameterize, supplied explicitly:
    eps_share = jax.random.normal(ke1, (B, T, pose_hidden_size), jnp.float32)
    eps_spec = jax.random.normal(ke2, (B, T, pose_hidden_size), jnp.float32)

    fwd = jax.jit(lambda p, x, e1, e2: motion_enc_forward(
        p, x, e1, e2, with_motion_share_vae=True, with_motion_spec_vae=True))
    z_share, z_spec = fwd(params, inputs, eps_share, eps_spec)
    jax.block_until_ready((z_share, z_spec))

    assert z_share.shape == (B, T, pose_hidden_size)
    assert z_spec.shape == (B, T, pose_hidden_size)
    assert bool(jnp.all(jnp.isfinite(z_share))) and bool(jnp.all(jnp.isfinite(z_spec)))
    print("KERNEL_OK")
</pallas_src>

<mosaic_0001>
module attributes {stable_mosaic.version = 11 : i64} {
  func.func @kernel(%arg0: i32, %arg1: memref<2x16x16xf32, #tpu.memory_space<vmem>>, %arg2: memref<2x16x32xf32, #tpu.memory_space<vmem>>, %arg3: memref<3x16x256xbf16, #tpu.memory_space<vmem>>, %arg4: memref<1x256xf32, #tpu.memory_space<vmem>>, %arg5: memref<3x256x256xbf16, #tpu.memory_space<vmem>>, %arg6: memref<1x256xf32, #tpu.memory_space<vmem>>, %arg7: memref<1x16x256xbf16, #tpu.memory_space<vmem>>, %arg8: memref<1x256xf32, #tpu.memory_space<vmem>>, %arg9: memref<3x256x256xbf16, #tpu.memory_space<vmem>>, %arg10: memref<1x256xf32, #tpu.memory_space<vmem>>, %arg11: memref<3x256x256xbf16, #tpu.memory_space<vmem>>, %arg12: memref<1x256xf32, #tpu.memory_space<vmem>>, %arg13: memref<3x256x128xbf16, #tpu.memory_space<vmem>>, %arg14: memref<1x128xf32, #tpu.memory_space<vmem>>, %arg15: memref<3x128x128xbf16, #tpu.memory_space<vmem>>, %arg16: memref<1x128xf32, #tpu.memory_space<vmem>>, %arg17: memref<1x256x128xbf16, #tpu.memory_space<vmem>>, %arg18: memref<1x128xf32, #tpu.memory_space<vmem>>, %arg19: memref<3x128x128xbf16, #tpu.memory_space<vmem>>, %arg20: memref<1x128xf32, #tpu.memory_space<vmem>>, %arg21: memref<3x128x128xbf16, #tpu.memory_space<vmem>>, %arg22: memref<1x128xf32, #tpu.memory_space<vmem>>, %arg23: memref<3x128x64xbf16, #tpu.memory_space<vmem>>, %arg24: memref<1x64xf32, #tpu.memory_space<vmem>>, %arg25: memref<3x64x64xbf16, #tpu.memory_space<vmem>>, %arg26: memref<1x64xf32, #tpu.memory_space<vmem>>, %arg27: memref<1x128x64xbf16, #tpu.memory_space<vmem>>, %arg28: memref<1x64xf32, #tpu.memory_space<vmem>>, %arg29: memref<64x64xbf16, #tpu.memory_space<vmem>>, %arg30: memref<1x64xf32, #tpu.memory_space<vmem>>, %arg31: memref<64x128xbf16, #tpu.memory_space<vmem>>, %arg32: memref<1x128xf32, #tpu.memory_space<vmem>>, %arg33: memref<128x64xbf16, #tpu.memory_space<vmem>>, %arg34: memref<1x64xf32, #tpu.memory_space<vmem>>, %arg35: memref<2x16x32xf32, #tpu.memory_space<vmem>>, %arg36: memref<2x48x256xbf16, #tpu.memory_space<vmem>>, %arg37: memref<2x48x256xbf16, #tpu.memory_space<vmem>>) attributes {dimension_semantics = [#tpu.dimension_semantics<parallel>], iteration_bounds = array<i64: 2>, scalar_prefetch = 0 : i64, scratch_operands = 2 : i64, tpu.core_type = #tpu.core_type<tc>, window_params = [{transform_indices = @transform_0, window_bounds = array<i64: 2, 16, 16>}, {transform_indices = @transform_1, window_bounds = array<i64: 2, 16, 32>}, {pipeline_mode = #tpu.pipeline_mode<synchronous>, transform_indices = @transform_2, window_bounds = array<i64: 3, 16, 256>}, {pipeline_mode = #tpu.pipeline_mode<synchronous>, transform_indices = @transform_3, window_bounds = array<i64: 1, 256>}, {pipeline_mode = #tpu.pipeline_mode<synchronous>, transform_indices = @transform_4, window_bounds = array<i64: 3, 256, 256>}, {pipeline_mode = #tpu.pipeline_mode<synchronous>, transform_indices = @transform_5, window_bounds = array<i64: 1, 256>}, {pipeline_mode = #tpu.pipeline_mode<synchronous>, transform_indices = @transform_6, window_bounds = array<i64: 1, 16, 256>}, {pipeline_mode = #tpu.pipeline_mode<synchronous>, transform_indices = @transform_7, window_bounds = array<i64: 1, 256>}, {pipeline_mode = #tpu.pipeline_mode<synchronous>, transform_indices = @transform_8, window_bounds = array<i64: 3, 256, 256>}, {pipeline_mode = #tpu.pipeline_mode<synchronous>, transform_indices = @transform_9, window_bounds = array<i64: 1, 256>}, {pipeline_mode = #tpu.pipeline_mode<synchronous>, transform_indices = @transform_10, window_bounds = array<i64: 3, 256, 256>}, {pipeline_mode = #tpu.pipeline_mode<synchronous>, transform_indices = @transform_11, window_bounds = array<i64: 1, 256>}, {pipeline_mode = #tpu.pipeline_mode<synchronous>, transform_indices = @transform_12, window_bounds = array<i64: 3, 256, 128>}, {pipeline_mode = #tpu.pipeline_mode<synchronous>, transform_indices = @transform_13, window_bounds = array<i64: 1, 128>}, {pipeline_mode = #tpu.pipeline_mode<synchronous>, transform_indices = @transform_14, window_bounds = array<i64: 3, 128, 128>}, {pipeline_mode = #tpu.pipeline_mode<synchronous>, transform_indices = @transform_15, window_bounds = array<i64: 1, 128>}, {pipeline_mode = #tpu.pipeline_mode<synchronous>, transform_indices = @transform_16, window_bounds = array<i64: 1, 256, 128>}, {pipeline_mode = #tpu.pipeline_mode<synchronous>, transform_indices = @transform_17, window_bounds = array<i64: 1, 128>}, {pipeline_mode = #tpu.pipeline_mode<synchronous>, transform_indices = @transform_18, window_bounds = array<i64: 3, 128, 128>}, {pipeline_mode = #tpu.pipeline_mode<synchronous>, transform_indices = @transform_19, window_bounds = array<i64: 1, 128>}, {pipeline_mode = #tpu.pipeline_mode<synchronous>, transform_indices = @transform_20, window_bounds = array<i64: 3, 128, 128>}, {pipeline_mode = #tpu.pipeline_mode<synchronous>, transform_indices = @transform_21, window_bounds = array<i64: 1, 128>}, {pipeline_mode = #tpu.pipeline_mode<synchronous>, transform_indices = @transform_22, window_bounds = array<i64: 3, 128, 64>}, {pipeline_mode = #tpu.pipeline_mode<synchronous>, transform_indices = @transform_23, window_bounds = array<i64: 1, 64>}, {pipeline_mode = #tpu.pipeline_mode<synchronous>, transform_indices = @transform_24, window_bounds = array<i64: 3, 64, 64>}, {pipeline_mode = #tpu.pipeline_mode<synchronous>, transform_indices = @transform_25, window_bounds = array<i64: 1, 64>}, {pipeline_mode = #tpu.pipeline_mode<synchronous>, transform_indices = @transform_26, window_bounds = array<i64: 1, 128, 64>}, {pipeline_mode = #tpu.pipeline_mode<synchronous>, transform_indices = @transform_27, window_bounds = array<i64: 1, 64>}, {pipeline_mode = #tpu.pipeline_mode<synchronous>, transform_indices = @transform_28, window_bounds = array<i64: 64, 64>}, {pipeline_mode = #tpu.pipeline_mode<synchronous>, transform_indices = @transform_29, window_bounds = array<i64: 1, 64>}, {pipeline_mode = #tpu.pipeline_mode<synchronous>, transform_indices = @transform_30, window_bounds = array<i64: 64, 128>}, {pipeline_mode = #tpu.pipeline_mode<synchronous>, transform_indices = @transform_31, window_bounds = array<i64: 1, 128>}, {pipeline_mode = #tpu.pipeline_mode<synchronous>, transform_indices = @transform_32, window_bounds = array<i64: 128, 64>}, {pipeline_mode = #tpu.pipeline_mode<synchronous>, transform_indices = @transform_33, window_bounds = array<i64: 1, 64>}, {transform_indices = @transform_34, window_bounds = array<i64: 2, 16, 32>}]} {
    %cst = arith.constant 0.000000e+00 : bf16
    %0 = vector.broadcast %cst : bf16 to vector<2x32x256xbf16>
    %c0 = arith.constant 0 : index
    %c0_0 = arith.constant 0 : index
    %c0_1 = arith.constant 0 : index
    %1 = vector.load %arg36[%c0, %c0_0, %c0_1] : memref<2x48x256xbf16, #tpu.memory_space<vmem>>, vector<2x32x256xbf16>
    tpu.vector_store %arg36[%c0, %c0_0, %c0_1], %0 {strides = array<i32>} : memref<2x48x256xbf16, #tpu.memory_space<vmem>>, vector<2x32x256xbf16>,
    %cst_2 = arith.constant 0.000000e+00 : bf16
    %2 = vector.broadcast %cst_2 : bf16 to vector<2x32x256xbf16>
    %c0_3 = arith.constant 0 : index
    %c0_4 = arith.constant 0 : index
    %c0_5 = arith.constant 0 : index
    %3 = vector.load %arg37[%c0_3, %c0_4, %c0_5] : memref<2x48x256xbf16, #tpu.memory_space<vmem>>, vector<2x32x256xbf16>
    tpu.vector_store %arg37[%c0_3, %c0_4, %c0_5], %2 {strides = array<i32>} : memref<2x48x256xbf16, #tpu.memory_space<vmem>>, vector<2x32x256xbf16>,
    %c0_6 = arith.constant 0 : index
    %c0_7 = arith.constant 0 : index
    %c0_8 = arith.constant 0 : index
    %4 = vector.load %arg1[%c0_6, %c0_7, %c0_8] : memref<2x16x16xf32, #tpu.memory_space<vmem>>, vector<2x16x16xf32>
    %5 = arith.truncf %4 : vector<2x16x16xf32> to vector<2x16x16xbf16>
    %c0_9 = arith.constant 0 : index
    %c32 = arith.constant 32 : index
    %c0_10 = arith.constant 0 : index
    %6 = vector.load %arg36[%c0_9, %c32, %c0_10] : memref<2x48x256xbf16, #tpu.memory_space<vmem>>, vector<2x16x16xbf16>
    tpu.vector_store %arg36[%c0_9, %c32, %c0_10], %5 {strides = array<i32>} : memref<2x48x256xbf16, #tpu.memory_space<vmem>>, vector<2x16x16xbf16>,
    %c0_11 = arith.constant 0 : index
    %c30 = arith.constant 30 : index
    %c0_12 = arith.constant 0 : index
    %7 = vector.load %arg36[%c0_11, %c30, %c0_12] : memref<2x48x256xbf16, #tpu.memory_space<vmem>>, vector<2x16x16xbf16>
    %8 = vector.shape_cast %7 : vector<2x16x16xbf16> to vector<32x16xbf16>
    %c0_13 = arith.constant 0 : index
    %c0_14 = arith.constant 0 : index
    %c0_15 = arith.constant 0 : index
    %9 = vector.load %arg3[%c0_13, %c0_14, %c0_15] : memref<3x16x256xbf16, #tpu.memory_space<vmem>>, vector<1x16x256xbf16>
    %10 = vector.shape_cast %9 : vector<1x16x256xbf16> to vector<16x256xbf16>
    %cst_16 = arith.constant dense<0.000000e+00> : vector<32x256xf32>
    %11 = tpu.matmul %8, %10, %cst_16 {dimension_numbers = #tpu.dot_dimension_numbers<[1], [0], [0], [1], [0, 0, 1, 1], [], []>} : vector<32x16xbf16>, vector<16x256xbf16>, vector<32x256xf32> -> vector<32x256xf32>
    %c0_17 = arith.constant 0 : index
    %c31 = arith.constant 31 : index
    %c0_18 = arith.constant 0 : index
    %12 = vector.load %arg36[%c0_17, %c31, %c0_18] : memref<2x48x256xbf16, #tpu.memory_space<vmem>>, vector<2x16x16xbf16>
    %13 = vector.shape_cast %12 : vector<2x16x16xbf16> to vector<32x16xbf16>
    %c1 = arith.constant 1 : index
    %c0_19 = arith.constant 0 : index
    %c0_20 = arith.constant 0 : index
    %14 = vector.load %arg3[%c1, %c0_19, %c0_20] : memref<3x16x256xbf16, #tpu.memory_space<vmem>>, vector<1x16x256xbf16>
    %15 = vector.shape_cast %14 : vector<1x16x256xbf16> to vector<16x256xbf16>
    %cst_21 = arith.constant dense<0.000000e+00> : vector<32x256xf32>
    %16 = tpu.matmul %13, %15, %cst_21 {dimension_numbers = #tpu.dot_dimension_numbers<[1], [0], [0], [1], [0, 0, 1, 1], [], []>} : vector<32x16xbf16>, vector<16x256xbf16>, vector<32x256xf32> -> vector<32x256xf32>
    %17 = arith.addf %11, %16 : vector<32x256xf32>
    %c0_22 = arith.constant 0 : index
    %c32_23 = arith.constant 32 : index
    %c0_24 = arith.constant 0 : index
    %18 = vector.load %arg36[%c0_22, %c32_23, %c0_24] : memref<2x48x256xbf16, #tpu.memory_space<vmem>>, vector<2x16x16xbf16>
    %19 = vector.shape_cast %18 : vector<2x16x16xbf16> to vector<32x16xbf16>
    %c2 = arith.constant 2 : index
    %c0_25 = arith.constant 0 : index
    %c0_26 = arith.constant 0 : index
    %20 = vector.load %arg3[%c2, %c0_25, %c0_26] : memref<3x16x256xbf16, #tpu.memory_space<vmem>>, vector<1x16x256xbf16>
    %21 = vector.shape_cast %20 : vector<1x16x256xbf16> to vector<16x256xbf16>
    %cst_27 = arith.constant dense<0.000000e+00> : vector<32x256xf32>
    %22 = tpu.matmul %19, %21, %cst_27 {dimension_numbers = #tpu.dot_dimension_numbers<[1], [0], [0], [1], [0, 0, 1, 1], [], []>} : vector<32x16xbf16>, vector<16x256xbf16>, vector<32x256xf32> -> vector<32x256xf32>
    %23 = arith.addf %17, %22 : vector<32x256xf32>
    %c0_28 = arith.constant 0 : index
    %c0_29 = arith.constant 0 : index
    %24 = vector.load %arg4[%c0_28, %c0_29] : memref<1x256xf32, #tpu.memory_space<vmem>>, vector<1x256xf32>
    %25 = vector.broadcast %24 : vector<1x256xf32> to vector<32x256xf32>
    %26 = arith.addf %23, %25 : vector<32x256xf32>
    %cst_30 = arith.constant 0.000000e+00 : f32
    %27 = vector.broadcast %cst_30 : f32 to vector<32x256xf32>
    %28 = arith.maximumf %26, %27 : vector<32x256xf32>
    %29 = vector.shape_cast %28 : vector<32x256xf32> to vector<2x16x256xf32>
    %30 = arith.truncf %29 : vector<2x16x256xf32> to vector<2x16x256xbf16>
    %c0_31 = arith.constant 0 : index
    %c32_32 = arith.constant 32 : index
    %c0_33 = arith.constant 0 : index
    %31 = vector.load %arg37[%c0_31, %c32_32, %c0_33] : memref<2x48x256xbf16, #tpu.memory_space<vmem>>, vector<2x16x256xbf16>
    tpu.vector_store %arg37[%c0_31, %c32_32, %c0_33], %30 {strides = array<i32>} : memref<2x48x256xbf16, #tpu.memory_space<vmem>>, vector<2x16x256xbf16>,
    %c0_34 = arith.constant 0 : index
    %c30_35 = arith.constant 30 : index
    %c0_36 = arith.constant 0 : index
    %32 = vector.load %arg37[%c0_34, %c30_35, %c0_36] : memref<2x48x256xbf16, #tpu.memory_space<vmem>>, vector<2x16x256xbf16>
    %33 = vector.shape_cast %32 : vector<2x16x256xbf16> to vector<32x256xbf16>
    %c0_37 = arith.constant 0 : index
    %c0_38 = arith.constant 0 : index
    %c0_39 = arith.constant 0 : index
    %34 = vector.load %arg5[%c0_37, %c0_38, %c0_39] : memref<3x256x256xbf16, #tpu.memory_space<vmem>>, vector<1x256x256xbf16>
    %35 = vector.shape_cast %34 : vector<1x256x256xbf16> to vector<256x256xbf16>
    %cst_40 = arith.constant dense<0.000000e+00> : vector<32x256xf32>
    %36 = tpu.matmul %33, %35, %cst_40 {dimension_numbers = #tpu.dot_dimension_numbers<[1], [0], [0], [1], [0, 0, 1, 1], [], []>} : vector<32x256xbf16>, vector<256x256xbf16>, vector<32x256xf32> -> vector<32x256xf32>
    %c0_41 = arith.constant 0 : index
    %c31_42 = arith.constant 31 : index
    %c0_43 = arith.constant 0 : index
    %37 = vector.load %arg37[%c0_41, %c31_42, %c0_43] : memref<2x48x256xbf16, #tpu.memory_space<vmem>>, vector<2x16x256xbf16>
    %38 = vector.shape_cast %37 : vector<2x16x256xbf16> to vector<32x256xbf16>
    %c1_44 = arith.constant 1 : index
    %c0_45 = arith.constant 0 : index
    %c0_46 = arith.constant 0 : index
    %39 = vector.load %arg5[%c1_44, %c0_45, %c0_46] : memref<3x256x256xbf16, #tpu.memory_space<vmem>>, vector<1x256x256xbf16>
    %40 = vector.shape_cast %39 : vector<1x256x256xbf16> to vector<256x256xbf16>
    %cst_47 = arith.constant dense<0.000000e+00> : vector<32x256xf32>
    %41 = tpu.matmul %38, %40, %cst_47 {dimension_numbers = #tpu.dot_dimension_numbers<[1], [0], [0], [1], [0, 0, 1, 1], [], []>} : vector<32x256xbf16>, vector<256x256xbf16>, vector<32x256xf32> -> vector<32x256xf32>
    %42 = arith.addf %36, %41 : vector<32x256xf32>
    %c0_48 = arith.constant 0 : index
    %c32_49 = arith.constant 32 : index
    %c0_50 = arith.constant 0 : index
    %43 = vector.load %arg37[%c0_48, %c32_49, %c0_50] : memref<2x48x256xbf16, #tpu.memory_space<vmem>>, vector<2x16x256xbf16>
    %44 = vector.shape_cast %43 : vector<2x16x256xbf16> to vector<32x256xbf16>
    %c2_51 = arith.constant 2 : index
    %c0_52 = arith.constant 0 : index
    %c0_53 = arith.constant 0 : index
    %45 = vector.load %arg5[%c2_51, %c0_52, %c0_53] : memref<3x256x256xbf16, #tpu.memory_space<vmem>>, vector<1x256x256xbf16>
    %46 = vector.shape_cast %45 : vector<1x256x256xbf16> to vector<256x256xbf16>
    %cst_54 = arith.constant dense<0.000000e+00> : vector<32x256xf32>
    %47 = tpu.matmul %44, %46, %cst_54 {dimension_numbers = #tpu.dot_dimension_numbers<[1], [0], [0], [1], [0, 0, 1, 1], [], []>} : vector<32x256xbf16>, vector<256x256xbf16>, vector<32x256xf32> -> vector<32x256xf32>
    %48 = arith.addf %42, %47 : vector<32x256xf32>
    %c0_55 = arith.constant 0 : index
    %c0_56 = arith.constant 0 : index
    %49 = vector.load %arg6[%c0_55, %c0_56] : memref<1x256xf32, #tpu.memory_space<vmem>>, vector<1x256xf32>
    %50 = vector.broadcast %49 : vector<1x256xf32> to vector<32x256xf32>
    %51 = arith.addf %48, %50 : vector<32x256xf32>
    %cst_57 = arith.constant 0.000000e+00 : f32
    %52 = vector.broadcast %cst_57 : f32 to vector<32x256xf32>
    %53 = arith.maximumf %51, %52 : vector<32x256xf32>
    %c0_58 = arith.constant 0 : index
    %c32_59 = arith.constant 32 : index
    %c0_60 = arith.constant 0 : index
    %54 = vector.load %arg36[%c0_58, %c32_59, %c0_60] : memref<2x48x256xbf16, #tpu.memory_space<vmem>>, vector<2x16x16xbf16>
    %55 = vector.shape_cast %54 : vector<2x16x16xbf16> to vector<32x16xbf16>
    %c0_61 = arith.constant 0 : index
    %c0_62 = arith.constant 0 : index
    %c0_63 = arith.constant 0 : index
    %56 = vector.load %arg7[%c0_61, %c0_62, %c0_63] : memref<1x16x256xbf16, #tpu.memory_space<vmem>>, vector<1x16x256xbf16>
    %57 = vector.shape_cast %56 : vector<1x16x256xbf16> to vector<16x256xbf16>
    %cst_64 = arith.constant dense<0.000000e+00> : vector<32x256xf32>
    %58 = tpu.matmul %55, %57, %cst_64 {dimension_numbers = #tpu.dot_dimension_numbers<[1], [0], [0], [1], [0, 0, 1, 1], [], []>} : vector<32x16xbf16>, vector<16x256xbf16>, vector<32x256xf32> -> vector<32x256xf32>
    %c0_65 = arith.constant 0 : index
    %c0_66 = arith.constant 0 : index
    %59 = vector.load %arg8[%c0_65, %c0_66] : memref<1x256xf32, #tpu.memory_space<vmem>>, vector<1x256xf32>
    %60 = vector.broadcast %59 : vector<1x256xf32> to vector<32x256xf32>
    %61 = arith.addf %58, %60 : vector<32x256xf32>
    %62 = arith.addf %53, %61 : vector<32x256xf32>
    %cst_67 = arith.constant 0.000000e+00 : f32
    %63 = vector.broadcast %cst_67 : f32 to vector<32x256xf32>
    %64 = arith.maximumf %62, %63 : vector<32x256xf32>
    %65 = vector.shape_cast %64 : vector<32x256xf32> to vector<2x16x256xf32>
    %66 = arith.truncf %65 : vector<2x16x256xf32> to vector<2x16x256xbf16>
    %c0_68 = arith.constant 0 : index
    %c32_69 = arith.constant 32 : index
    %c0_70 = arith.constant 0 : index
    %67 = vector.load %arg36[%c0_68, %c32_69, %c0_70] : memref<2x48x256xbf16, #tpu.memory_space<vmem>>, vector<2x16x256xbf16>
    tpu.vector_store %arg36[%c0_68, %c32_69, %c0_70], %66 {strides = array<i32>} : memref<2x48x256xbf16, #tpu.memory_space<vmem>>, vector<2x16x256xbf16>,
    %c0_71 = arith.constant 0 : index
    %c28 = arith.constant 28 : index
    %c0_72 = arith.constant 0 : index
    %68 = vector.load %arg36[%c0_71, %c28, %c0_72] : memref<2x48x256xbf16, #tpu.memory_space<vmem>>, vector<2x16x256xbf16>
    %69 = vector.shape_cast %68 : vector<2x16x256xbf16> to vector<32x256xbf16>
    %c0_73 = arith.constant 0 : index
    %c0_74 = arith.constant 0 : index
    %c0_75 = arith.constant 0 : index
    %70 = vector.load %arg9[%c0_73, %c0_74, %c0_75] : memref<3x256x256xbf16, #tpu.memory_space<vmem>>, vector<1x256x256xbf16>
    %71 = vector.shape_cast %70 : vector<1x256x256xbf16> to vector<256x256xbf16>
    %cst_76 = arith.constant dense<0.000000e+00> : vector<32x256xf32>
    %72 = tpu.matmul %69, %71, %cst_76 {dimension_numbers = #tpu.dot_dimension_numbers<[1], [0], [0], [1], [0, 0, 1, 1], [], []>} : vector<32x256xbf16>, vector<256x256xbf16>, vector<32x256xf32> -> vector<32x256xf32>
    %c0_77 = arith.constant 0 : index
    %c30_78 = arith.constant 30 : index
    %c0_79 = arith.constant 0 : index
    %73 = vector.load %arg36[%c0_77, %c30_78, %c0_79] : memref<2x48x256xbf16, #tpu.memory_space<vmem>>, vector<2x16x256xbf16>
    %74 = vector.shape_cast %73 : vector<2x16x256xbf16> to vector<32x256xbf16>
    %c1_80 = arith.constant 1 : index
    %c0_81 = arith.constant 0 : index
    %c0_82 = arith.constant 0 : index
    %75 = vector.load %arg9[%c1_80, %c0_81, %c0_82] : memref<3x256x256xbf16, #tpu.memory_space<vmem>>, vector<1x256x256xbf16>
    %76 = vector.shape_cast %75 : vector<1x256x256xbf16> to vector<256x256xbf16>
    %cst_83 = arith.constant dense<0.000000e+00> : vector<32x256xf32>
    %77 = tpu.matmul %74, %76, %cst_83 {dimension_numbers = #tpu.dot_dimension_numbers<[1], [0], [0], [1], [0, 0, 1, 1], [], []>} : vector<32x256xbf16>, vector<256x256xbf16>, vector<32x256xf32> -> vector<32x256xf32>
    %78 = arith.addf %72, %77 : vector<32x256xf32>
    %c0_84 = arith.constant 0 : index
    %c32_85 = arith.constant 32 : index
    %c0_86 = arith.constant 0 : index
    %79 = vector.load %arg36[%c0_84, %c32_85, %c0_86] : memref<2x48x256xbf16, #tpu.memory_space<vmem>>, vector<2x16x256xbf16>
    %80 = vector.shape_cast %79 : vector<2x16x256xbf16> to vector<32x256xbf16>
    %c2_87 = arith.constant 2 : index
    %c0_88 = arith.constant 0 : index
    %c0_89 = arith.constant 0 : index
    %81 = vector.load %arg9[%c2_87, %c0_88, %c0_89] : memref<3x256x256xbf16, #tpu.memory_space<vmem>>, vector<1x256x256xbf16>
    %82 = vector.shape_cast %81 : vector<1x256x256xbf16> to vector<256x256xbf16>
    %cst_90 = arith.constant dense<0.000000e+00> : vector<32x256xf32>
    %83 = tpu.matmul %80, %82, %cst_90 {dimension_numbers = #tpu.dot_dimension_numbers<[1], [0], [0], [1], [0, 0, 1, 1], [], []>} : vector<32x256xbf16>, vector<256x256xbf16>, vector<32x256xf32> -> vector<32x256xf32>
    %84 = arith.addf %78, %83 : vector<32x256xf32>
    %c0_91 = arith.constant 0 : index
    %c0_92 = arith.constant 0 : index
    %85 = vector.load %arg10[%c0_91, %c0_92] : memref<1x256xf32, #tpu.memory_space<vmem>>, vector<1x256xf32>
    %86 = vector.broadcast %85 : vector<1x256xf32> to vector<32x256xf32>
    %87 = arith.addf %84, %86 : vector<32x256xf32>
    %cst_93 = arith.constant 0.000000e+00 : f32
    %88 = vector.broadcast %cst_93 : f32 to vector<32x256xf32>
    %89 = arith.maximumf %87, %88 : vector<32x256xf32>
    %90 = vector.shape_cast %89 : vector<32x256xf32> to vector<2x16x256xf32>
    %91 = arith.truncf %90 : vector<2x16x256xf32> to vector<2x16x256xbf16>
    %c0_94 = arith.constant 0 : index
    %c32_95 = arith.constant 32 : index
    %c0_96 = arith.constant 0 : index
    %92 = vector.load %arg37[%c0_94, %c32_95, %c0_96] : memref<2x48x256xbf16, #tpu.memory_space<vmem>>, vector<2x16x256xbf16>
    tpu.vector_store %arg37[%c0_94, %c32_95, %c0_96], %91 {strides = array<i32>} : memref<2x48x256xbf16, #tpu.memory_space<vmem>>, vector<2x16x256xbf16>,
    %c0_97 = arith.constant 0 : index
    %c28_98 = arith.constant 28 : index
    %c0_99 = arith.constant 0 : index
    %93 = vector.load %arg37[%c0_97, %c28_98, %c0_99] : memref<2x48x256xbf16, #tpu.memory_space<vmem>>, vector<2x16x256xbf16>
    %94 = vector.shape_cast %93 : vector<2x16x256xbf16> to vector<32x256xbf16>
    %c0_100 = arith.constant 0 : index
    %c0_101 = arith.constant 0 : index
    %c0_102 = arith.constant 0 : index
    %95 = vector.load %arg11[%c0_100, %c0_101, %c0_102] : memref<3x256x256xbf16, #tpu.memory_space<vmem>>, vector<1x256x256xbf16>
    %96 = vector.shape_cast %95 : vector<1x256x256xbf16> to vector<256x256xbf16>
    %cst_103 = arith.constant dense<0.000000e+00> : vector<32x256xf32>
    %97 = tpu.matmul %94, %96, %cst_103 {dimension_numbers = #tpu.dot_dimension_numbers<[1], [0], [0], [1], [0, 0, 1, 1], [], []>} : vector<32x256xbf16>, vector<256x256xbf16>, vector<32x256xf32> -> vector<32x256xf32>
    %c0_104 = arith.constant 0 : index
    %c30_105 = arith.constant 30 : index
    %c0_106 = arith.constant 0 : index
    %98 = vector.load %arg37[%c0_104, %c30_105, %c0_106] : memref<2x48x256xbf16, #tpu.memory_space<vmem>>, vector<2x16x256xbf16>
    %99 = vector.shape_cast %98 : vector<2x16x256xbf16> to vector<32x256xbf16>
    %c1_107 = arith.constant 1 : index
    %c0_108 = arith.constant 0 : index
    %c0_109 = arith.constant 0 : index
    %100 = vector.load %arg11[%c1_107, %c0_108, %c0_109] : memref<3x256x256xbf16, #tpu.memory_space<vmem>>, vector<1x256x256xbf16>
    %101 = vector.shape_cast %100 : vector<1x256x256xbf16> to vector<256x256xbf16>
    %cst_110 = arith.constant dense<0.000000e+00> : vector<32x256xf32>
    %102 = tpu.matmul %99, %101, %cst_110 {dimension_numbers = #tpu.dot_dimension_numbers<[1], [0], [0], [1], [0, 0, 1, 1], [], []>} : vector<32x256xbf16>, vector<256x256xbf16>, vector<32x256xf32> -> vector<32x256xf32>
    %103 = arith.addf %97, %102 : vector<32x256xf32>
    %c0_111 = arith.constant 0 : index
    %c32_112 = arith.constant 32 : index
    %c0_113 = arith.constant 0 : index
    %104 = vector.load %arg37[%c0_111, %c32_112, %c0_113] : memref<2x48x256xbf16, #tpu.memory_space<vmem>>, vector<2x16x256xbf16>
    %105 = vector.shape_cast %104 : vector<2x16x256xbf16> to vector<32x256xbf16>
    %c2_114 = arith.constant 2 : index
    %c0_115 = arith.constant 0 : index
    %c0_116 = arith.constant 0 : index
    %106 = vector.load %arg11[%c2_114, %c0_115, %c0_116] : memref<3x256x256xbf16, #tpu.memory_space<vmem>>, vector<1x256x256xbf16>
    %107 = vector.shape_cast %106 : vector<1x256x256xbf16> to vector<256x256xbf16>
    %cst_117 = arith.constant dense<0.000000e+00> : vector<32x256xf32>
    %108 = tpu.matmul %105, %107, %cst_117 {dimension_numbers = #tpu.dot_dimension_numbers<[1], [0], [0], [1], [0, 0, 1, 1], [], []>} : vector<32x256xbf16>, vector<256x256xbf16>, vector<32x256xf32> -> vector<32x256xf32>
    %109 = arith.addf %103, %108 : vector<32x256xf32>
    %c0_118 = arith.constant 0 : index
    %c0_119 = arith.constant 0 : index
    %110 = vector.load %arg12[%c0_118, %c0_119] : memref<1x256xf32, #tpu.memory_space<vmem>>, vector<1x256xf32>
    %111 = vector.broadcast %110 : vector<1x256xf32> to vector<32x256xf32>
    %112 = arith.addf %109, %111 : vector<32x256xf32>
    %cst_120 = arith.constant 0.000000e+00 : f32
    %113 = vector.broadcast %cst_120 : f32 to vector<32x256xf32>
    %114 = arith.maximumf %112, %113 : vector<32x256xf32>
    %c0_121 = arith.constant 0 : index
    %c32_122 = arith.constant 32 : index
    %c0_123 = arith.constant 0 : index
    %115 = vector.load %arg36[%c0_121, %c32_122, %c0_123] : memref<2x48x256xbf16, #tpu.memory_space<vmem>>, vector<2x16x256xbf16>
    %116 = vector.shape_cast %115 : vector<2x16x256xbf16> to vector<32x256xbf16>
    %117 = arith.extf %116 : vector<32x256xbf16> to vector<32x256xf32>
    %118 = arith.addf %114, %117 : vector<32x256xf32>
    %cst_124 = arith.constant 0.000000e+00 : f32
    %119 = vector.broadcast %cst_124 : f32 to vector<32x256xf32>
    %120 = arith.maximumf %118, %119 : vector<32x256xf32>
    %121 = vector.shape_cast %120 : vector<32x256xf32> to vector<2x16x256xf32>
    %122 = arith.truncf %121 : vector<2x16x256xf32> to vector<2x16x256xbf16>
    %c0_125 = arith.constant 0 : index
    %c32_126 = arith.constant 32 : index
    %c0_127 = arith.constant 0 : index
    %123 = vector.load %arg36[%c0_125, %c32_126, %c0_127] : memref<2x48x256xbf16, #tpu.memory_space<vmem>>, vector<2x16x256xbf16>
    tpu.vector_store %arg36[%c0_125, %c32_126, %c0_127], %122 {strides = array<i32>} : memref<2x48x256xbf16, #tpu.memory_space<vmem>>, vector<2x16x256xbf16>,
    %c0_128 = arith.constant 0 : index
    %c24 = arith.constant 24 : index
    %c0_129 = arith.constant 0 : index
    %124 = vector.load %arg36[%c0_128, %c24, %c0_129] : memref<2x48x256xbf16, #tpu.memory_space<vmem>>, vector<2x16x256xbf16>
    %125 = vector.shape_cast %124 : vector<2x16x256xbf16> to vector<32x256xbf16>
    %c0_130 = arith.constant 0 : index
    %c0_131 = arith.constant 0 : index
    %c0_132 = arith.constant 0 : index
    %126 = vector.load %arg13[%c0_130, %c0_131, %c0_132] : memref<3x256x128xbf16, #tpu.memory_space<vmem>>, vector<1x256x128xbf16>
    %127 = vector.shape_cast %126 : vector<1x256x128xbf16> to vector<256x128xbf16>
    %cst_133 = arith.constant dense<0.000000e+00> : vector<32x128xf32>
    %128 = tpu.matmul %125, %127, %cst_133 {dimension_numbers = #tpu.dot_dimension_numbers<[1], [0], [0], [1], [0, 0, 1, 1], [], []>} : vector<32x256xbf16>, vector<256x128xbf16>, vector<32x128xf32> -> vector<32x128xf32>
    %c0_134 = arith.constant 0 : index
    %c28_135 = arith.constant 28 : index
    %c0_136 = arith.constant 0 : index
    %129 = vector.load %arg36[%c0_134, %c28_135, %c0_136] : memref<2x48x256xbf16, #tpu.memory_space<vmem>>, vector<2x16x256xbf16>
    %130 = vector.shape_cast %129 : vector<2x16x256xbf16> to vector<32x256xbf16>
    %c1_137 = arith.constant 1 : index
    %c0_138 = arith.constant 0 : index
    %c0_139 = arith.constant 0 : index
    %131 = vector.load %arg13[%c1_137, %c0_138, %c0_139] : memref<3x256x128xbf16, #tpu.memory_space<vmem>>, vector<1x256x128xbf16>
    %132 = vector.shape_cast %131 : vector<1x256x128xbf16> to vector<256x128xbf16>
    %cst_140 = arith.constant dense<0.000000e+00> : vector<32x128xf32>
    %133 = tpu.matmul %130, %132, %cst_140 {dimension_numbers = #tpu.dot_dimension_numbers<[1], [0], [0], [1], [0, 0, 1, 1], [], []>} : vector<32x256xbf16>, vector<256x128xbf16>, vector<32x128xf32> -> vector<32x128xf32>
    %134 = arith.addf %128, %133 : vector<32x128xf32>
    %c0_141 = arith.constant 0 : index
    %c32_142 = arith.constant 32 : index
    %c0_143 = arith.constant 0 : index
    %135 = vector.load %arg36[%c0_141, %c32_142, %c0_143] : memref<2x48x256xbf16, #tpu.memory_space<vmem>>, vector<2x16x256xbf16>
    %136 = vector.shape_cast %135 : vector<2x16x256xbf16> to vector<32x256xbf16>
    %c2_144 = arith.constant 2 : index
    %c0_145 = arith.constant 0 : index
    %c0_146 = arith.constant 0 : index
    %137 = vector.load %arg13[%c2_144, %c0_145, %c0_146] : memref<3x256x128xbf16, #tpu.memory_space<vmem>>, vector<1x256x128xbf16>
    %138 = vector.shape_cast %137 : vector<1x256x128xbf16> to vector<256x128xbf16>
    %cst_147 = arith.constant dense<0.000000e+00> : vector<32x128xf32>
    %139 = tpu.matmul %136, %138, %cst_147 {dimension_numbers = #tpu.dot_dimension_numbers<[1], [0], [0], [1], [0, 0, 1, 1], [], []>} : vector<32x256xbf16>, vector<256x128xbf16>, vector<32x128xf32> -> vector<32x128xf32>
    %140 = arith.addf %134, %139 : vector<32x128xf32>
    %c0_148 = arith.constant 0 : index
    %c0_149 = arith.constant 0 : index
    %141 = vector.load %arg14[%c0_148, %c0_149] : memref<1x128xf32, #tpu.memory_space<vmem>>, vector<1x128xf32>
    %142 = vector.broadcast %141 : vector<1x128xf32> to vector<32x128xf32>
    %143 = arith.addf %140, %142 : vector<32x128xf32>
    %cst_150 = arith.constant 0.000000e+00 : f32
    %144 = vector.broadcast %cst_150 : f32 to vector<32x128xf32>
    %145 = arith.maximumf %143, %144 : vector<32x128xf32>
    %146 = vector.shape_cast %145 : vector<32x128xf32> to vector<2x16x128xf32>
    %147 = arith.truncf %146 : vector<2x16x128xf32> to vector<2x16x128xbf16>
    %c0_151 = arith.constant 0 : index
    %c32_152 = arith.constant 32 : index
    %c0_153 = arith.constant 0 : index
    %148 = vector.load %arg37[%c0_151, %c32_152, %c0_153] : memref<2x48x256xbf16, #tpu.memory_space<vmem>>, vector<2x16x128xbf16>
    tpu.vector_store %arg37[%c0_151, %c32_152, %c0_153], %147 {strides = array<i32>} : memref<2x48x256xbf16, #tpu.memory_space<vmem>>, vector<2x16x128xbf16>,
    %c0_154 = arith.constant 0 : index
    %c24_155 = arith.constant 24 : index
    %c0_156 = arith.constant 0 : index
    %149 = vector.load %arg37[%c0_154, %c24_155, %c0_156] : memref<2x48x256xbf16, #tpu.memory_space<vmem>>, vector<2x16x128xbf16>
    %150 = vector.shape_cast %149 : vector<2x16x128xbf16> to vector<32x128xbf16>
    %c0_157 = arith.constant 0 : index
    %c0_158 = arith.constant 0 : index
    %c0_159 = arith.constant 0 : index
    %151 = vector.load %arg15[%c0_157, %c0_158, %c0_159] : memref<3x128x128xbf16, #tpu.memory_space<vmem>>, vector<1x128x128xbf16>
    %152 = vector.shape_cast %151 : vector<1x128x128xbf16> to vector<128x128xbf16>
    %cst_160 = arith.constant dense<0.000000e+00> : vector<32x128xf32>
    %153 = tpu.matmul %150, %152, %cst_160 {dimension_numbers = #tpu.dot_dimension_numbers<[1], [0], [0], [1], [0, 0, 1, 1], [], []>} : vector<32x128xbf16>, vector<128x128xbf16>, vector<32x128xf32> -> vector<32x128xf32>
    %c0_161 = arith.constant 0 : index
    %c28_162 = arith.constant 28 : index
    %c0_163 = arith.constant 0 : index
    %154 = vector.load %arg37[%c0_161, %c28_162, %c0_163] : memref<2x48x256xbf16, #tpu.memory_space<vmem>>, vector<2x16x128xbf16>
    %155 = vector.shape_cast %154 : vector<2x16x128xbf16> to vector<32x128xbf16>
    %c1_164 = arith.constant 1 : index
    %c0_165 = arith.constant 0 : index
    %c0_166 = arith.constant 0 : index
    %156 = vector.load %arg15[%c1_164, %c0_165, %c0_166] : memref<3x128x128xbf16, #tpu.memory_space<vmem>>, vector<1x128x128xbf16>
    %157 = vector.shape_cast %156 : vector<1x128x128xbf16> to vector<128x128xbf16>
    %cst_167 = arith.constant dense<0.000000e+00> : vector<32x128xf32>
    %158 = tpu.matmul %155, %157, %cst_167 {dimension_numbers = #tpu.dot_dimension_numbers<[1], [0], [0], [1], [0, 0, 1, 1], [], []>} : vector<32x128xbf16>, vector<128x128xbf16>, vector<32x128xf32> -> vector<32x128xf32>
    %159 = arith.addf %153, %158 : vector<32x128xf32>
    %c0_168 = arith.constant 0 : index
    %c32_169 = arith.constant 32 : index
    %c0_170 = arith.constant 0 : index
    %160 = vector.load %arg37[%c0_168, %c32_169, %c0_170] : memref<2x48x256xbf16, #tpu.memory_space<vmem>>, vector<2x16x128xbf16>
    %161 = vector.shape_cast %160 : vector<2x16x128xbf16> to vector<32x128xbf16>
    %c2_171 = arith.constant 2 : index
    %c0_172 = arith.constant 0 : index
    %c0_173 = arith.constant 0 : index
    %162 = vector.load %arg15[%c2_171, %c0_172, %c0_173] : memref<3x128x128xbf16, #tpu.memory_space<vmem>>, vector<1x128x128xbf16>
    %163 = vector.shape_cast %162 : vector<1x128x128xbf16> to vector<128x128xbf16>
    %cst_174 = arith.constant dense<0.000000e+00> : vector<32x128xf32>
    %164 = tpu.matmul %161, %163, %cst_174 {dimension_numbers = #tpu.dot_dimension_numbers<[1], [0], [0], [1], [0, 0, 1, 1], [], []>} : vector<32x128xbf16>, vector<128x128xbf16>, vector<32x128xf32> -> vector<32x128xf32>
    %165 = arith.addf %159, %164 : vector<32x128xf32>
    %c0_175 = arith.constant 0 : index
    %c0_176 = arith.constant 0 : index
    %166 = vector.load %arg16[%c0_175, %c0_176] : memref<1x128xf32, #tpu.memory_space<vmem>>, vector<1x128xf32>
    %167 = vector.broadcast %166 : vector<1x128xf32> to vector<32x128xf32>
    %168 = arith.addf %165, %167 : vector<32x128xf32>
    %cst_177 = arith.constant 0.000000e+00 : f32
    %169 = vector.broadcast %cst_177 : f32 to vector<32x128xf32>
    %170 = arith.maximumf %168, %169 : vector<32x128xf32>
    %c0_178 = arith.constant 0 : index
    %c32_179 = arith.constant 32 : index
    %c0_180 = arith.constant 0 : index
    %171 = vector.load %arg36[%c0_178, %c32_179, %c0_180] : memref<2x48x256xbf16, #tpu.memory_space<vmem>>, vector<2x16x256xbf16>
    %172 = vector.shape_cast %171 : vector<2x16x256xbf16> to vector<32x256xbf16>
    %c0_181 = arith.constant 0 : index
    %c0_182 = arith.constant 0 : index
    %c0_183 = arith.constant 0 : index
    %173 = vector.load %arg17[%c0_181, %c0_182, %c0_183] : memref<1x256x128xbf16, #tpu.memory_space<vmem>>, vector<1x256x128xbf16>
    %174 = vector.shape_cast %173 : vector<1x256x128xbf16> to vector<256x128xbf16>
    %cst_184 = arith.constant dense<0.000000e+00> : vector<32x128xf32>
    %175 = tpu.matmul %172, %174, %cst_184 {dimension_numbers = #tpu.dot_dimension_numbers<[1], [0], [0], [1], [0, 0, 1, 1], [], []>} : vector<32x256xbf16>, vector<256x128xbf16>, vector<32x128xf32> -> vector<32x128xf32>
    %c0_185 = arith.constant 0 : index
    %c0_186 = arith.constant 0 : index
    %176 = vector.load %arg18[%c0_185, %c0_186] : memref<1x128xf32, #tpu.memory_space<vmem>>, vector<1x128xf32>
    %177 = vector.broadcast %176 : vector<1x128xf32> to vector<32x128xf32>
    %178 = arith.addf %175, %177 : vector<32x128xf32>
    %179 = arith.addf %170, %178 : vector<32x128xf32>
    %cst_187 = arith.constant 0.000000e+00 : f32
    %180 = vector.broadcast %cst_187 : f32 to vector<32x128xf32>
    %181 = arith.maximumf %179, %180 : vector<32x128xf32>
    %182 = vector.shape_cast %181 : vector<32x128xf32> to vector<2x16x128xf32>
    %183 = arith.truncf %182 : vector<2x16x128xf32> to vector<2x16x128xbf16>
    %c0_188 = arith.constant 0 : index
    %c32_189 = arith.constant 32 : index
    %c0_190 = arith.constant 0 : index
    %184 = vector.load %arg36[%c0_188, %c32_189, %c0_190] : memref<2x48x256xbf16, #tpu.memory_space<vmem>>, vector<2x16x128xbf16>
    tpu.vector_store %arg36[%c0_188, %c32_189, %c0_190], %183 {strides = array<i32>} : memref<2x48x256xbf16, #tpu.memory_space<vmem>>, vector<2x16x128xbf16>,
    %c0_191 = arith.constant 0 : index
    %c16 = arith.constant 16 : index
    %c0_192 = arith.constant 0 : index
    %185 = vector.load %arg36[%c0_191, %c16, %c0_192] : memref<2x48x256xbf16, #tpu.memory_space<vmem>>, vector<2x16x128xbf16>
    %186 = vector.shape_cast %185 : vector<2x16x128xbf16> to vector<32x128xbf16>
    %c0_193 = arith.constant 0 : index
    %c0_194 = arith.constant 0 : index
    %c0_195 = arith.constant 0 : index
    %187 = vector.load %arg19[%c0_193, %c0_194, %c0_195] : memref<3x128x128xbf16, #tpu.memory_space<vmem>>, vector<1x128x128xbf16>
    %188 = vector.shape_cast %187 : vector<1x128x128xbf16> to vector<128x128xbf16>
    %cst_196 = arith.constant dense<0.000000e+00> : vector<32x128xf32>
    %189 = tpu.matmul %186, %188, %cst_196 {dimension_numbers = #tpu.dot_dimension_numbers<[1], [0], [0], [1], [0, 0, 1, 1], [], []>} : vector<32x128xbf16>, vector<128x128xbf16>, vector<32x128xf32> -> vector<32x128xf32>
    %c0_197 = arith.constant 0 : index
    %c24_198 = arith.constant 24 : index
    %c0_199 = arith.constant 0 : index
    %190 = vector.load %arg36[%c0_197, %c24_198, %c0_199] : memref<2x48x256xbf16, #tpu.memory_space<vmem>>, vector<2x16x128xbf16>
    %191 = vector.shape_cast %190 : vector<2x16x128xbf16> to vector<32x128xbf16>
    %c1_200 = arith.constant 1 : index
    %c0_201 = arith.constant 0 : index
    %c0_202 = arith.constant 0 : index
    %192 = vector.load %arg19[%c1_200, %c0_201, %c0_202] : memref<3x128x128xbf16, #tpu.memory_space<vmem>>, vector<1x128x128xbf16>
    %193 = vector.shape_cast %192 : vector<1x128x128xbf16> to vector<128x128xbf16>
    %cst_203 = arith.constant dense<0.000000e+00> : vector<32x128xf32>
    %194 = tpu.matmul %191, %193, %cst_203 {dimension_numbers = #tpu.dot_dimension_numbers<[1], [0], [0], [1], [0, 0, 1, 1], [], []>} : vector<32x128xbf16>, vector<128x128xbf16>, vector<32x128xf32> -> vector<32x128xf32>
    %195 = arith.addf %189, %194 : vector<32x128xf32>
    %c0_204 = arith.constant 0 : index
    %c32_205 = arith.constant 32 : index
    %c0_206 = arith.constant 0 : index
    %196 = vector.load %arg36[%c0_204, %c32_205, %c0_206] : memref<2x48x256xbf16, #tpu.memory_space<vmem>>, vector<2x16x128xbf16>
    %197 = vector.shape_cast %196 : vector<2x16x128xbf16> to vector<32x128xbf16>
    %c2_207 = arith.constant 2 : index
    %c0_208 = arith.constant 0 : index
    %c0_209 = arith.constant 0 : index
    %198 = vector.load %arg19[%c2_207, %c0_208, %c0_209] : memref<3x128x128xbf16, #tpu.memory_space<vmem>>, vector<1x128x128xbf16>
    %199 = vector.shape_cast %198 : vector<1x128x128xbf16> to vector<128x128xbf16>
    %cst_210 = arith.constant dense<0.000000e+00> : vector<32x128xf32>
    %200 = tpu.matmul %197, %199, %cst_210 {dimension_numbers = #tpu.dot_dimension_numbers<[1], [0], [0], [1], [0, 0, 1, 1], [], []>} : vector<32x128xbf16>, vector<128x128xbf16>, vector<32x128xf32> -> vector<32x128xf32>
    %201 = arith.addf %195, %200 : vector<32x128xf32>
    %c0_211 = arith.constant 0 : index
    %c0_212 = arith.constant 0 : index
    %202 = vector.load %arg20[%c0_211, %c0_212] : memref<1x128xf32, #tpu.memory_space<vmem>>, vector<1x128xf32>
    %203 = vector.broadcast %202 : vector<1x128xf32> to vector<32x128xf32>
    %204 = arith.addf %201, %203 : vector<32x128xf32>
    %cst_213 = arith.constant 0.000000e+00 : f32
    %205 = vector.broadcast %cst_213 : f32 to vector<32x128xf32>
    %206 = arith.maximumf %204, %205 : vector<32x128xf32>
    %207 = vector.shape_cast %206 : vector<32x128xf32> to vector<2x16x128xf32>
    %208 = arith.truncf %207 : vector<2x16x128xf32> to vector<2x16x128xbf16>
    %c0_214 = arith.constant 0 : index
    %c32_215 = arith.constant 32 : index
    %c0_216 = arith.constant 0 : index
    %209 = vector.load %arg37[%c0_214, %c32_215, %c0_216] : memref<2x48x256xbf16, #tpu.memory_space<vmem>>, vector<2x16x128xbf16>
    tpu.vector_store %arg37[%c0_214, %c32_215, %c0_216], %208 {strides = array<i32>} : memref<2x48x256xbf16, #tpu.memory_space<vmem>>, vector<2x16x128xbf16>,
    %c0_217 = arith.constant 0 : index
    %c16_218 = arith.constant 16 : index
    %c0_219 = arith.constant 0 : index
    %210 = vector.load %arg37[%c0_217, %c16_218, %c0_219] : memref<2x48x256xbf16, #tpu.memory_space<vmem>>, vector<2x16x128xbf16>
    %211 = vector.shape_cast %210 : vector<2x16x128xbf16> to vector<32x128xbf16>
    %c0_220 = arith.constant 0 : index
    %c0_221 = arith.constant 0 : index
    %c0_222 = arith.constant 0 : index
    %212 = vector.load %arg21[%c0_220, %c0_221, %c0_222] : memref<3x128x128xbf16, #tpu.memory_space<vmem>>, vector<1x128x128xbf16>
    %213 = vector.shape_cast %212 : vector<1x128x128xbf16> to vector<128x128xbf16>
    %cst_223 = arith.constant dense<0.000000e+00> : vector<32x128xf32>
    %214 = tpu.matmul %211, %213, %cst_223 {dimension_numbers = #tpu.dot_dimension_numbers<[1], [0], [0], [1], [0, 0, 1, 1], [], []>} : vector<32x128xbf16>, vector<128x128xbf16>, vector<32x128xf32> -> vector<32x128xf32>
    %c0_224 = arith.constant 0 : index
    %c24_225 = arith.constant 24 : index
    %c0_226 = arith.constant 0 : index
    %215 = vector.load %arg37[%c0_224, %c24_225, %c0_226] : memref<2x48x256xbf16, #tpu.memory_space<vmem>>, vector<2x16x128xbf16>
    %216 = vector.shape_cast %215 : vector<2x16x128xbf16> to vector<32x128xbf16>
    %c1_227 = arith.constant 1 : index
    %c0_228 = arith.constant 0 : index
    %c0_229 = arith.constant 0 : index
    %217 = vector.load %arg21[%c1_227, %c0_228, %c0_229] : memref<3x128x128xbf16, #tpu.memory_space<vmem>>, vector<1x128x128xbf16>
    %218 = vector.shape_cast %217 : vector<1x128x128xbf16> to vector<128x128xbf16>
    %cst_230 = arith.constant dense<0.000000e+00> : vector<32x128xf32>
    %219 = tpu.matmul %216, %218, %cst_230 {dimension_numbers = #tpu.dot_dimension_numbers<[1], [0], [0], [1], [0, 0, 1, 1], [], []>} : vector<32x128xbf16>, vector<128x128xbf16>, vector<32x128xf32> -> vector<32x128xf32>
    %220 = arith.addf %214, %219 : vector<32x128xf32>
    %c0_231 = arith.constant 0 : index
    %c32_232 = arith.constant 32 : index
    %c0_233 = arith.constant 0 : index
    %221 = vector.load %arg37[%c0_231, %c32_232, %c0_233] : memref<2x48x256xbf16, #tpu.memory_space<vmem>>, vector<2x16x128xbf16>
    %222 = vector.shape_cast %221 : vector<2x16x128xbf16> to vector<32x128xbf16>
    %c2_234 = arith.constant 2 : index
    %c0_235 = arith.constant 0 : index
    %c0_236 = arith.constant 0 : index
    %223 = vector.load %arg21[%c2_234, %c0_235, %c0_236] : memref<3x128x128xbf16, #tpu.memory_space<vmem>>, vector<1x128x128xbf16>
    %224 = vector.shape_cast %223 : vector<1x128x128xbf16> to vector<128x128xbf16>
    %cst_237 = arith.constant dense<0.000000e+00> : vector<32x128xf32>
    %225 = tpu.matmul %222, %224, %cst_237 {dimension_numbers = #tpu.dot_dimension_numbers<[1], [0], [0], [1], [0, 0, 1, 1], [], []>} : vector<32x128xbf16>, vector<128x128xbf16>, vector<32x128xf32> -> vector<32x128xf32>
    %226 = arith.addf %220, %225 : vector<32x128xf32>
    %c0_238 = arith.constant 0 : index
    %c0_239 = arith.constant 0 : index
    %227 = vector.load %arg22[%c0_238, %c0_239] : memref<1x128xf32, #tpu.memory_space<vmem>>, vector<1x128xf32>
    %228 = vector.broadcast %227 : vector<1x128xf32> to vector<32x128xf32>
    %229 = arith.addf %226, %228 : vector<32x128xf32>
    %cst_240 = arith.constant 0.000000e+00 : f32
    %230 = vector.broadcast %cst_240 : f32 to vector<32x128xf32>
    %231 = arith.maximumf %229, %230 : vector<32x128xf32>
    %c0_241 = arith.constant 0 : index
    %c32_242 = arith.constant 32 : index
    %c0_243 = arith.constant 0 : index
    %232 = vector.load %arg36[%c0_241, %c32_242, %c0_243] : memref<2x48x256xbf16, #tpu.memory_space<vmem>>, vector<2x16x128xbf16>
    %233 = vector.shape_cast %232 : vector<2x16x128xbf16> to vector<32x128xbf16>
    %234 = arith.extf %233 : vector<32x128xbf16> to vector<32x128xf32>
    %235 = arith.addf %231, %234 : vector<32x128xf32>
    %cst_244 = arith.constant 0.000000e+00 : f32
    %236 = vector.broadcast %cst_244 : f32 to vector<32x128xf32>
    %237 = arith.maximumf %235, %236 : vector<32x128xf32>
    %238 = vector.shape_cast %237 : vector<32x128xf32> to vector<2x16x128xf32>
    %239 = arith.truncf %238 : vector<2x16x128xf32> to vector<2x16x128xbf16>
    %c0_245 = arith.constant 0 : index
    %c32_246 = arith.constant 32 : index
    %c0_247 = arith.constant 0 : index
    %240 = vector.load %arg36[%c0_245, %c32_246, %c0_247] : memref<2x48x256xbf16, #tpu.memory_space<vmem>>, vector<2x16x128xbf16>
    tpu.vector_store %arg36[%c0_245, %c32_246, %c0_247], %239 {strides = array<i32>} : memref<2x48x256xbf16, #tpu.memory_space<vmem>>, vector<2x16x128xbf16>,
    %c0_248 = arith.constant 0 : index
    %c0_249 = arith.constant 0 : index
    %c0_250 = arith.constant 0 : index
    %241 = vector.load %arg36[%c0_248, %c0_249, %c0_250] : memref<2x48x256xbf16, #tpu.memory_space<vmem>>, vector<2x16x128xbf16>
    %242 = vector.shape_cast %241 : vector<2x16x128xbf16> to vector<32x128xbf16>
    %c0_251 = arith.constant 0 : index
    %c0_252 = arith.constant 0 : index
    %c0_253 = arith.constant 0 : index
    %243 = vector.load %arg23[%c0_251, %c0_252, %c0_253] : memref<3x128x64xbf16, #tpu.memory_space<vmem>>, vector<1x128x64xbf16>
    %244 = vector.shape_cast %243 : vector<1x128x64xbf16> to vector<128x64xbf16>
    %cst_254 = arith.constant dense<0.000000e+00> : vector<32x64xf32>
    %245 = tpu.matmul %242, %244, %cst_254 {dimension_numbers = #tpu.dot_dimension_numbers<[1], [0], [0], [1], [0, 0, 1, 1], [], []>} : vector<32x128xbf16>, vector<128x64xbf16>, vector<32x64xf32> -> vector<32x64xf32>
    %c0_255 = arith.constant 0 : index
    %c16_256 = arith.constant 16 : index
    %c0_257 = arith.constant 0 : index
    %246 = vector.load %arg36[%c0_255, %c16_256, %c0_257] : memref<2x48x256xbf16, #tpu.memory_space<vmem>>, vector<2x16x128xbf16>
    %247 = vector.shape_cast %246 : vector<2x16x128xbf16> to vector<32x128xbf16>
    %c1_258 = arith.constant 1 : index
    %c0_259 = arith.constant 0 : index
    %c0_260 = arith.constant 0 : index
    %248 = vector.load %arg23[%c1_258, %c0_259, %c0_260] : memref<3x128x64xbf16, #tpu.memory_space<vmem>>, vector<1x128x64xbf16>
    %249 = vector.shape_cast %248 : vector<1x128x64xbf16> to vector<128x64xbf16>
    %cst_261 = arith.constant dense<0.000000e+00> : vector<32x64xf32>
    %250 = tpu.matmul %247, %249, %cst_261 {dimension_numbers = #tpu.dot_dimension_numbers<[1], [0], [0], [1], [0, 0, 1, 1], [], []>} : vector<32x128xbf16>, vector<128x64xbf16>, vector<32x64xf32> -> vector<32x64xf32>
    %251 = arith.addf %245, %250 : vector<32x64xf32>
    %c0_262 = arith.constant 0 : index
    %c32_263 = arith.constant 32 : index
    %c0_264 = arith.constant 0 : index
    %252 = vector.load %arg36[%c0_262, %c32_263, %c0_264] : memref<2x48x256xbf16, #tpu.memory_space<vmem>>, vector<2x16x128xbf16>
    %253 = vector.shape_cast %252 : vector<2x16x128xbf16> to vector<32x128xbf16>
    %c2_265 = arith.constant 2 : index
    %c0_266 = arith.constant 0 : index
    %c0_267 = arith.constant 0 : index
    %254 = vector.load %arg23[%c2_265, %c0_266, %c0_267] : memref<3x128x64xbf16, #tpu.memory_space<vmem>>, vector<1x128x64xbf16>
    %255 = vector.shape_cast %254 : vector<1x128x64xbf16> to vector<128x64xbf16>
    %cst_268 = arith.constant dense<0.000000e+00> : vector<32x64xf32>
    %256 = tpu.matmul %253, %255, %cst_268 {dimension_numbers = #tpu.dot_dimension_numbers<[1], [0], [0], [1], [0, 0, 1, 1], [], []>} : vector<32x128xbf16>, vector<128x64xbf16>, vector<32x64xf32> -> vector<32x64xf32>
    %257 = arith.addf %251, %256 : vector<32x64xf32>
    %c0_269 = arith.constant 0 : index
    %c0_270 = arith.constant 0 : index
    %258 = vector.load %arg24[%c0_269, %c0_270] : memref<1x64xf32, #tpu.memory_space<vmem>>, vector<1x64xf32>
    %259 = vector.broadcast %258 : vector<1x64xf32> to vector<32x64xf32>
    %260 = arith.addf %257, %259 : vector<32x64xf32>
    %cst_271 = arith.constant 0.000000e+00 : f32
    %261 = vector.broadcast %cst_271 : f32 to vector<32x64xf32>
    %262 = arith.maximumf %260, %261 : vector<32x64xf32>
    %263 = vector.shape_cast %262 : vector<32x64xf32> to vector<2x16x64xf32>
    %264 = arith.truncf %263 : vector<2x16x64xf32> to vector<2x16x64xbf16>
    %c0_272 = arith.constant 0 : index
    %c32_273 = arith.constant 32 : index
    %c0_274 = arith.constant 0 : index
    %265 = vector.load %arg37[%c0_272, %c32_273, %c0_274] : memref<2x48x256xbf16, #tpu.memory_space<vmem>>, vector<2x16x64xbf16>
    tpu.vector_store %arg37[%c0_272, %c32_273, %c0_274], %264 {strides = array<i32>} : memref<2x48x256xbf16, #tpu.memory_space<vmem>>, vector<2x16x64xbf16>,
    %c0_275 = arith.constant 0 : index
    %c0_276 = arith.constant 0 : index
    %c0_277 = arith.constant 0 : index
    %266 = vector.load %arg37[%c0_275, %c0_276, %c0_277] : memref<2x48x256xbf16, #tpu.memory_space<vmem>>, vector<2x16x64xbf16>
    %267 = vector.shape_cast %266 : vector<2x16x64xbf16> to vector<32x64xbf16>
    %c0_278 = arith.constant 0 : index
    %c0_279 = arith.constant 0 : index
    %c0_280 = arith.constant 0 : index
    %268 = vector.load %arg25[%c0_278, %c0_279, %c0_280] : memref<3x64x64xbf16, #tpu.memory_space<vmem>>, vector<1x64x64xbf16>
    %269 = vector.shape_cast %268 : vector<1x64x64xbf16> to vector<64x64xbf16>
    %cst_281 = arith.constant dense<0.000000e+00> : vector<32x64xf32>
    %270 = tpu.matmul %267, %269, %cst_281 {dimension_numbers = #tpu.dot_dimension_numbers<[1], [0], [0], [1], [0, 0, 1, 1], [], []>} : vector<32x64xbf16>, vector<64x64xbf16>, vector<32x64xf32> -> vector<32x64xf32>
    %c0_282 = arith.constant 0 : index
    %c16_283 = arith.constant 16 : index
    %c0_284 = arith.constant 0 : index
    %271 = vector.load %arg37[%c0_282, %c16_283, %c0_284] : memref<2x48x256xbf16, #tpu.memory_space<vmem>>, vector<2x16x64xbf16>
    %272 = vector.shape_cast %271 : vector<2x16x64xbf16> to vector<32x64xbf16>
    %c1_285 = arith.constant 1 : index
    %c0_286 = arith.constant 0 : index
    %c0_287 = arith.constant 0 : index
    %273 = vector.load %arg25[%c1_285, %c0_286, %c0_287] : memref<3x64x64xbf16, #tpu.memory_space<vmem>>, vector<1x64x64xbf16>
    %274 = vector.shape_cast %273 : vector<1x64x64xbf16> to vector<64x64xbf16>
    %cst_288 = arith.constant dense<0.000000e+00> : vector<32x64xf32>
    %275 = tpu.matmul %272, %274, %cst_288 {dimension_numbers = #tpu.dot_dimension_numbers<[1], [0], [0], [1], [0, 0, 1, 1], [], []>} : vector<32x64xbf16>, vector<64x64xbf16>, vector<32x64xf32> -> vector<32x64xf32>
    %276 = arith.addf %270, %275 : vector<32x64xf32>
    %c0_289 = arith.constant 0 : index
    %c32_290 = arith.constant 32 : index
    %c0_291 = arith.constant 0 : index
    %277 = vector.load %arg37[%c0_289, %c32_290, %c0_291] : memref<2x48x256xbf16, #tpu.memory_space<vmem>>, vector<2x16x64xbf16>
    %278 = vector.shape_cast %277 : vector<2x16x64xbf16> to vector<32x64xbf16>
    %c2_292 = arith.constant 2 : index
    %c0_293 = arith.constant 0 : index
    %c0_294 = arith.constant 0 : index
    %279 = vector.load %arg25[%c2_292, %c0_293, %c0_294] : memref<3x64x64xbf16, #tpu.memory_space<vmem>>, vector<1x64x64xbf16>
    %280 = vector.shape_cast %279 : vector<1x64x64xbf16> to vector<64x64xbf16>
    %cst_295 = arith.constant dense<0.000000e+00> : vector<32x64xf32>
    %281 = tpu.matmul %278, %280, %cst_295 {dimension_numbers = #tpu.dot_dimension_numbers<[1], [0], [0], [1], [0, 0, 1, 1], [], []>} : vector<32x64xbf16>, vector<64x64xbf16>, vector<32x64xf32> -> vector<32x64xf32>
    %282 = arith.addf %276, %281 : vector<32x64xf32>
    %c0_296 = arith.constant 0 : index
    %c0_297 = arith.constant 0 : index
    %283 = vector.load %arg26[%c0_296, %c0_297] : memref<1x64xf32, #tpu.memory_space<vmem>>, vector<1x64xf32>
    %284 = vector.broadcast %283 : vector<1x64xf32> to vector<32x64xf32>
    %285 = arith.addf %282, %284 : vector<32x64xf32>
    %cst_298 = arith.constant 0.000000e+00 : f32
    %286 = vector.broadcast %cst_298 : f32 to vector<32x64xf32>
    %287 = arith.maximumf %285, %286 : vector<32x64xf32>
    %c0_299 = arith.constant 0 : index
    %c32_300 = arith.constant 32 : index
    %c0_301 = arith.constant 0 : index
    %288 = vector.load %arg36[%c0_299, %c32_300, %c0_301] : memref<2x48x256xbf16, #tpu.memory_space<vmem>>, vector<2x16x128xbf16>
    %289 = vector.shape_cast %288 : vector<2x16x128xbf16> to vector<32x128xbf16>
    %c0_302 = arith.constant 0 : index
    %c0_303 = arith.constant 0 : index
    %c0_304 = arith.constant 0 : index
    %290 = vector.load %arg27[%c0_302, %c0_303, %c0_304] : memref<1x128x64xbf16, #tpu.memory_space<vmem>>, vector<1x128x64xbf16>
    %291 = vector.shape_cast %290 : vector<1x128x64xbf16> to vector<128x64xbf16>
    %cst_305 = arith.constant dense<0.000000e+00> : vector<32x64xf32>
    %292 = tpu.matmul %289, %291, %cst_305 {dimension_numbers = #tpu.dot_dimension_numbers<[1], [0], [0], [1], [0, 0, 1, 1], [], []>} : vector<32x128xbf16>, vector<128x64xbf16>, vector<32x64xf32> -> vector<32x64xf32>
    %c0_306 = arith.constant 0 : index
    %c0_307 = arith.constant 0 : index
    %293 = vector.load %arg28[%c0_306, %c0_307] : memref<1x64xf32, #tpu.memory_space<vmem>>, vector<1x64xf32>
    %294 = vector.broadcast %293 : vector<1x64xf32> to vector<32x64xf32>
    %295 = arith.addf %292, %294 : vector<32x64xf32>
    %296 = arith.addf %287, %295 : vector<32x64xf32>
    %cst_308 = arith.constant 0.000000e+00 : f32
    %297 = vector.broadcast %cst_308 : f32 to vector<32x64xf32>
    %298 = arith.maximumf %296, %297 : vector<32x64xf32>
    %299 = vector.shape_cast %298 : vector<32x64xf32> to vector<2x16x64xf32>
    %300 = arith.truncf %299 : vector<2x16x64xf32> to vector<2x16x64xbf16>
    %c0_309 = arith.constant 0 : index
    %c32_310 = arith.constant 32 : index
    %c0_311 = arith.constant 0 : index
    %301 = vector.load %arg36[%c0_309, %c32_310, %c0_311] : memref<2x48x256xbf16, #tpu.memory_space<vmem>>, vector<2x16x64xbf16>
    tpu.vector_store %arg36[%c0_309, %c32_310, %c0_311], %300 {strides = array<i32>} : memref<2x48x256xbf16, #tpu.memory_space<vmem>>, vector<2x16x64xbf16>,
    %c0_312 = arith.constant 0 : index
    %c32_313 = arith.constant 32 : index
    %c0_314 = arith.constant 0 : index
    %302 = vector.load %arg36[%c0_312, %c32_313, %c0_314] : memref<2x48x256xbf16, #tpu.memory_space<vmem>>, vector<2x16x64xbf16>
    %303 = vector.shape_cast %302 : vector<2x16x64xbf16> to vector<32x64xbf16>
    %c0_315 = arith.constant 0 : index
    %c0_316 = arith.constant 0 : index
    %304 = vector.load %arg29[%c0_315, %c0_316] : memref<64x64xbf16, #tpu.memory_space<vmem>>, vector<64x64xbf16>
    %cst_317 = arith.constant dense<0.000000e+00> : vector<32x64xf32>
    %305 = tpu.matmul %303, %304, %cst_317 {dimension_numbers = #tpu.dot_dimension_numbers<[1], [0], [0], [1], [0, 0, 1, 1], [], []>} : vector<32x64xbf16>, vector<64x64xbf16>, vector<32x64xf32> -> vector<32x64xf32>
    %c0_318 = arith.constant 0 : index
    %c0_319 = arith.constant 0 : index
    %306 = vector.load %arg30[%c0_318, %c0_319] : memref<1x64xf32, #tpu.memory_space<vmem>>, vector<1x64xf32>
    %307 = vector.broadcast %306 : vector<1x64xf32> to vector<32x64xf32>
    %308 = arith.addf %305, %307 : vector<32x64xf32>
    %309 = arith.truncf %308 : vector<32x64xf32> to vector<32x64xbf16>
    %c0_320 = arith.constant 0 : index
    %c0_321 = arith.constant 0 : index
    %310 = vector.load %arg31[%c0_320, %c0_321] : memref<64x128xbf16, #tpu.memory_space<vmem>>, vector<64x128xbf16>
    %cst_322 = arith.constant dense<0.000000e+00> : vector<32x128xf32>
    %311 = tpu.matmul %309, %310, %cst_322 {dimension_numbers = #tpu.dot_dimension_numbers<[1], [0], [0], [1], [0, 0, 1, 1], [], []>} : vector<32x64xbf16>, vector<64x128xbf16>, vector<32x128xf32> -> vector<32x128xf32>
    %c0_323 = arith.constant 0 : index
    %c0_324 = arith.constant 0 : index
    %312 = vector.load %arg32[%c0_323, %c0_324] : memref<1x128xf32, #tpu.memory_space<vmem>>, vector<1x128xf32>
    %313 = vector.broadcast %312 : vector<1x128xf32> to vector<32x128xf32>
    %314 = arith.addf %311, %313 : vector<32x128xf32>
    %cst_325 = arith.constant 0.000000e+00 : f32
    %315 = vector.broadcast %cst_325 : f32 to vector<32x128xf32>
    %316 = arith.maximumf %314, %315 : vector<32x128xf32>
    %317 = arith.truncf %316 : vector<32x128xf32> to vector<32x128xbf16>
    %c0_326 = arith.constant 0 : index
    %c0_327 = arith.constant 0 : index
    %318 = vector.load %arg33[%c0_326, %c0_327] : memref<128x64xbf16, #tpu.memory_space<vmem>>, vector<128x64xbf16>
    %cst_328 = arith.constant dense<0.000000e+00> : vector<32x64xf32>
    %319 = tpu.matmul %317, %318, %cst_328 {dimension_numbers = #tpu.dot_dimension_numbers<[1], [0], [0], [1], [0, 0, 1, 1], [], []>} : vector<32x128xbf16>, vector<128x64xbf16>, vector<32x64xf32> -> vector<32x64xf32>
    %c0_329 = arith.constant 0 : index
    %c0_330 = arith.constant 0 : index
    %320 = vector.load %arg34[%c0_329, %c0_330] : memref<1x64xf32, #tpu.memory_space<vmem>>, vector<1x64xf32>
    %321 = vector.broadcast %320 : vector<1x64xf32> to vector<32x64xf32>
    %322 = arith.addf %319, %321 : vector<32x64xf32>
    %323 = vector.extract_strided_slice %322 {offsets = [0, 0], sizes = [32, 32], strides = [1, 1]} : vector<32x64xf32> to vector<32x32xf32>
    %c0_331 = arith.constant 0 : index
    %c0_332 = arith.constant 0 : index
    %c0_333 = arith.constant 0 : index
    %324 = vector.load %arg2[%c0_331, %c0_332, %c0_333] : memref<2x16x32xf32, #tpu.memory_space<vmem>>, vector<2x16x32xf32>
    %325 = vector.shape_cast %324 : vector<2x16x32xf32> to vector<32x32xf32>
    %326 = vector.extract_strided_slice %322 {offsets = [0, 32], sizes = [32, 32], strides = [1, 1]} : vector<32x64xf32> to vector<32x32xf32>
    %cst_334 = arith.constant 5.000000e-01 : f32
    %327 = vector.broadcast %cst_334 : f32 to vector<32x32xf32>
    %328 = arith.mulf %327, %326 : vector<32x32xf32>
    %329 = math.exp %328 : vector<32x32xf32>
    %330 = arith.mulf %325, %329 : vector<32x32xf32>
    %331 = arith.addf %323, %330 : vector<32x32xf32>
    %332 = vector.shape_cast %331 : vector<32x32xf32> to vector<2x16x32xf32>
    %c0_335 = arith.constant 0 : index
    %c0_336 = arith.constant 0 : index
    %c0_337 = arith.constant 0 : index
    %333 = vector.load %arg35[%c0_335, %c0_336, %c0_337] : memref<2x16x32xf32, #tpu.memory_space<vmem>>, vector<2x16x32xf32>
    tpu.vector_store %arg35[%c0_335, %c0_336, %c0_337], %332 {strides = array<i32>} : memref<2x16x32xf32, #tpu.memory_space<vmem>>, vector<2x16x32xf32>,
    return
  }
  func.func @transform_0(%arg0: i32) -> (i32, i32, i32) {
    %c0_i32 = arith.constant 0 : i32
    %c0_i32_0 = arith.constant 0 : i32
    %c0_i32_1 = arith.constant 0 : i32
    return %arg0, %c0_i32, %c0_i32_0 : i32, i32, i32
  }
  func.func @transform_1(%arg0: i32) -> (i32, i32, i32) {
    %c0_i32 = arith.constant 0 : i32
    %c0_i32_0 = arith.constant 0 : i32
    %c0_i32_1 = arith.constant 0 : i32
    return %arg0, %c0_i32, %c0_i32_0 : i32, i32, i32
  }
  func.func @transform_2(%arg0: i32) -> (i32, i32, i32) {
    %c0_i32 = arith.constant 0 : i32
    %c0_i32_0 = arith.constant 0 : i32
    %c0_i32_1 = arith.constant 0 : i32
    %c0_i32_2 = arith.constant 0 : i32
    return %c0_i32, %c0_i32_0, %c0_i32_1 : i32, i32, i32
  }
  func.func @transform_3(%arg0: i32) -> (i32, i32) {
    %c0_i32 = arith.constant 0 : i32
    %c0_i32_0 = arith.constant 0 : i32
    %c0_i32_1 = arith.constant 0 : i32
    return %c0_i32, %c0_i32_0 : i32, i32
  }
  func.func @transform_4(%arg0: i32) -> (i32, i32, i32) {
    %c0_i32 = arith.constant 0 : i32
    %c0_i32_0 = arith.constant 0 : i32
    %c0_i32_1 = arith.constant 0 : i32
    %c0_i32_2 = arith.constant 0 : i32
    return %c0_i32, %c0_i32_0, %c0_i32_1 : i32, i32, i32
  }
  func.func @transform_5(%arg0: i32) -> (i32, i32) {
    %c0_i32 = arith.constant 0 : i32
    %c0_i32_0 = arith.constant 0 : i32
    %c0_i32_1 = arith.constant 0 : i32
    return %c0_i32, %c0_i32_0 : i32, i32
  }
  func.func @transform_6(%arg0: i32) -> (i32, i32, i32) {
    %c0_i32 = arith.constant 0 : i32
    %c0_i32_0 = arith.constant 0 : i32
    %c0_i32_1 = arith.constant 0 : i32
    %c0_i32_2 = arith.constant 0 : i32
    return %c0_i32, %c0_i32_0, %c0_i32_1 : i32, i32, i32
  }
  func.func @transform_7(%arg0: i32) -> (i32, i32) {
    %c0_i32 = arith.constant 0 : i32
    %c0_i32_0 = arith.constant 0 : i32
    %c0_i32_1 = arith.constant 0 : i32
    return %c0_i32, %c0_i32_0 : i32, i32
  }
  func.func @transform_8(%arg0: i32) -> (i32, i32, i32) {
    %c0_i32 = arith.constant 0 : i32
    %c0_i32_0 = arith.constant 0 : i32
    %c0_i32_1 = arith.constant 0 : i32
    %c0_i32_2 = arith.constant 0 : i32
    return %c0_i32, %c0_i32_0, %c0_i32_1 : i32, i32, i32
  }
  func.func @transform_9(%arg0: i32) -> (i32, i32) {
    %c0_i32 = arith.constant 0 : i32
    %c0_i32_0 = arith.constant 0 : i32
    %c0_i32_1 = arith.constant 0 : i32
    return %c0_i32, %c0_i32_0 : i32, i32
  }
  func.func @transform_10(%arg0: i32) -> (i32, i32, i32) {
    %c0_i32 = arith.constant 0 : i32
    %c0_i32_0 = arith.constant 0 : i32
    %c0_i32_1 = arith.constant 0 : i32
    %c0_i32_2 = arith.constant 0 : i32
    return %c0_i32, %c0_i32_0, %c0_i32_1 : i32, i32, i32
  }
  func.func @transform_11(%arg0: i32) -> (i32, i32) {
    %c0_i32 = arith.constant 0 : i32
    %c0_i32_0 = arith.constant 0 : i32
    %c0_i32_1 = arith.constant 0 : i32
    return %c0_i32, %c0_i32_0 : i32, i32
  }
  func.func @transform_12(%arg0: i32) -> (i32, i32, i32) {
    %c0_i32 = arith.constant 0 : i32
    %c0_i32_0 = arith.constant 0 : i32
    %c0_i32_1 = arith.constant 0 : i32
    %c0_i32_2 = arith.constant 0 : i32
    return %c0_i32, %c0_i32_0, %c0_i32_1 : i32, i32, i32
  }
  func.func @transform_13(%arg0: i32) -> (i32, i32) {
    %c0_i32 = arith.constant 0 : i32
    %c0_i32_0 = arith.constant 0 : i32
    %c0_i32_1 = arith.constant 0 : i32
    return %c0_i32, %c0_i32_0 : i32, i32
  }
  func.func @transform_14(%arg0: i32) -> (i32, i32, i32) {
    %c0_i32 = arith.constant 0 : i32
    %c0_i32_0 = arith.constant 0 : i32
    %c0_i32_1 = arith.constant 0 : i32
    %c0_i32_2 = arith.constant 0 : i32
    return %c0_i32, %c0_i32_0, %c0_i32_1 : i32, i32, i32
  }
  func.func @transform_15(%arg0: i32) -> (i32, i32) {
    %c0_i32 = arith.constant 0 : i32
    %c0_i32_0 = arith.constant 0 : i32
    %c0_i32_1 = arith.constant 0 : i32
    return %c0_i32, %c0_i32_0 : i32, i32
  }
  func.func @transform_16(%arg0: i32) -> (i32, i32, i32) {
    %c0_i32 = arith.constant 0 : i32
    %c0_i32_0 = arith.constant 0 : i32
    %c0_i32_1 = arith.constant 0 : i32
    %c0_i32_2 = arith.constant 0 : i32
    return %c0_i32, %c0_i32_0, %c0_i32_1 : i32, i32, i32
  }
  func.func @transform_17(%arg0: i32) -> (i32, i32) {
    %c0_i32 = arith.constant 0 : i32
    %c0_i32_0 = arith.constant 0 : i32
    %c0_i32_1 = arith.constant 0 : i32
    return %c0_i32, %c0_i32_0 : i32, i32
  }
  func.func @transform_18(%arg0: i32) -> (i32, i32, i32) {
    %c0_i32 = arith.constant 0 : i32
    %c0_i32_0 = arith.constant 0 : i32
    %c0_i32_1 = arith.constant 0 : i32
    %c0_i32_2 = arith.constant 0 : i32
    return %c0_i32, %c0_i32_0, %c0_i32_1 : i32, i32, i32
  }
  func.func @transform_19(%arg0: i32) -> (i32, i32) {
    %c0_i32 = arith.constant 0 : i32
    %c0_i32_0 = arith.constant 0 : i32
    %c0_i32_1 = arith.constant 0 : i32
    return %c0_i32, %c0_i32_0 : i32, i32
  }
  func.func @transform_20(%arg0: i32) -> (i32, i32, i32) {
    %c0_i32 = arith.constant 0 : i32
    %c0_i32_0 = arith.constant 0 : i32
    %c0_i32_1 = arith.constant 0 : i32
    %c0_i32_2 = arith.constant 0 : i32
    return %c0_i32, %c0_i32_0, %c0_i32_1 : i32, i32, i32
  }
  func.func @transform_21(%arg0: i32) -> (i32, i32) {
    %c0_i32 = arith.constant 0 : i32
    %c0_i32_0 = arith.constant 0 : i32
    %c0_i32_1 = arith.constant 0 : i32
    return %c0_i32, %c0_i32_0 : i32, i32
  }
  func.func @transform_22(%arg0: i32) -> (i32, i32, i32) {
    %c0_i32 = arith.constant 0 : i32
    %c0_i32_0 = arith.constant 0 : i32
    %c0_i32_1 = arith.constant 0 : i32
    %c0_i32_2 = arith.constant 0 : i32
    return %c0_i32, %c0_i32_0, %c0_i32_1 : i32, i32, i32
  }
  func.func @transform_23(%arg0: i32) -> (i32, i32) {
    %c0_i32 = arith.constant 0 : i32
    %c0_i32_0 = arith.constant 0 : i32
    %c0_i32_1 = arith.constant 0 : i32
    return %c0_i32, %c0_i32_0 : i32, i32
  }
  func.func @transform_24(%arg0: i32) -> (i32, i32, i32) {
    %c0_i32 = arith.constant 0 : i32
    %c0_i32_0 = arith.constant 0 : i32
    %c0_i32_1 = arith.constant 0 : i32
    %c0_i32_2 = arith.constant 0 : i32
    return %c0_i32, %c0_i32_0, %c0_i32_1 : i32, i32, i32
  }
  func.func @transform_25(%arg0: i32) -> (i32, i32) {
    %c0_i32 = arith.constant 0 : i32
    %c0_i32_0 = arith.constant 0 : i32
    %c0_i32_1 = arith.constant 0 : i32
    return %c0_i32, %c0_i32_0 : i32, i32
  }
  func.func @transform_26(%arg0: i32) -> (i32, i32, i32) {
    %c0_i32 = arith.constant 0 : i32
    %c0_i32_0 = arith.constant 0 : i32
    %c0_i32_1 = arith.constant 0 : i32
    %c0_i32_2 = arith.constant 0 : i32
    return %c0_i32, %c0_i32_0, %c0_i32_1 : i32, i32, i32
  }
  func.func @transform_27(%arg0: i32) -> (i32, i32) {
    %c0_i32 = arith.constant 0 : i32
    %c0_i32_0 = arith.constant 0 : i32
    %c0_i32_1 = arith.constant 0 : i32
    return %c0_i32, %c0_i32_0 : i32, i32
  }
  func.func @transform_28(%arg0: i32) -> (i32, i32) {
    %c0_i32 = arith.constant 0 : i32
    %c0_i32_0 = arith.constant 0 : i32
    %c0_i32_1 = arith.constant 0 : i32
    return %c0_i32, %c0_i32_0 : i32, i32
  }
  func.func @transform_29(%arg0: i32) -> (i32, i32) {
    %c0_i32 = arith.constant 0 : i32
    %c0_i32_0 = arith.constant 0 : i32
    %c0_i32_1 = arith.constant 0 : i32
    return %c0_i32, %c0_i32_0 : i32, i32
  }
  func.func @transform_30(%arg0: i32) -> (i32, i32) {
    %c0_i32 = arith.constant 0 : i32
    %c0_i32_0 = arith.constant 0 : i32
    %c0_i32_1 = arith.constant 0 : i32
    return %c0_i32, %c0_i32_0 : i32, i32
  }
  func.func @transform_31(%arg0: i32) -> (i32, i32) {
    %c0_i32 = arith.constant 0 : i32
    %c0_i32_0 = arith.constant 0 : i32
    %c0_i32_1 = arith.constant 0 : i32
    return %c0_i32, %c0_i32_0 : i32, i32
  }
  func.func @transform_32(%arg0: i32) -> (i32, i32) {
    %c0_i32 = arith.constant 0 : i32
    %c0_i32_0 = arith.constant 0 : i32
    %c0_i32_1 = arith.constant 0 : i32
    return %c0_i32, %c0_i32_0 : i32, i32
  }
  func.func @transform_33(%arg0: i32) -> (i32, i32) {
    %c0_i32 = arith.constant 0 : i32
    %c0_i32_0 = arith.constant 0 : i32
    %c0_i32_1 = arith.constant 0 : i32
    return %c0_i32, %c0_i32_0 : i32, i32
  }
  func.func @transform_34(%arg0: i32) -> (i32, i32, i32) {
    %c0_i32 = arith.constant 0 : i32
    %c0_i32_0 = arith.constant 0 : i32
    %c0_i32_1 = arith.constant 0 : i32
    return %arg0, %c0_i32, %c0_i32_0 : i32, i32, i32
  }
}

</mosaic_0001>

<bundles_post_ra>
// kernel: _lambda_.1
= control target key start
LH: loop header
LB: loop body
LE: loop exit
PB: predicated region body
PF: predicated region fallthrough
CT: control target
= control target key end

     0   :  { %s9733_s6 = smov 1   ;;  %s9734_s10 = smov 2   ;;  %s10734_s0 = inlined_call_operand.smem [shape: u32[35], index: -1, kind: input, shape index: {}] }
   0x1   :  { %s9777_s5 = sld [smem:[%s10734_s0]]   ;;  %s9735_s14 = smov 3  }
   0x2   :  { %s9782_s9 = sld [smem:[%s10734_s0 + %s9733_s6]]   ;;  %s9736_s18 = smov 4  }
   0x3   :  { %s9787_s13 = sld [smem:[%s10734_s0 + %s9734_s10]]   ;;  %s9737_s22 = smov 5  }
   0x4   :  { %s9792_s17 = sld [smem:[%s10734_s0 + %s9735_s14]]   ;;  %s9738_s26 = smov 6  }
   0x5   :  { %s9797_s21 = sld [smem:[%s10734_s0 + %s9736_s18]]   ;;  %s9739_s30 = smov 7  }
   0x6   :  { %s9802_s25 = sld [smem:[%s10734_s0 + %s9737_s22]]   ;;  %s9740_s4 = smov 8  }
   0x7   :  { %s9807_s29 = sld [smem:[%s10734_s0 + %s9738_s26]]   ;;  %s9741_s10 = smov 9  }
   0x8   :  { %10742 = sst [smem:[#allocation4_spill]] %s9782_s9  ;;  %s9742_s15 = smov 10  }
   0x9   :  { %s9812_s3 = sld [smem:[%s10734_s0 + %s9739_s30]]   ;;  %s9743_s20 = smov 11  }
   0xa   :  { %s9817_s8 = sld [smem:[%s10734_s0 + %s9740_s4]]   ;;  %s9744_s26 = smov 12  }
   0xb   :  { %s9822_s14 = sld [smem:[%s10734_s0 + %s9741_s10]]   ;;  %s9745_s1 = smov 13  }
   0xc   :  { %s9827_s19 = sld [smem:[%s10734_s0 + %s9742_s15]]   ;;  %s9746_s7 = smov 14  }
   0xd   :  { %s9832_s24 = sld [smem:[%s10734_s0 + %s9743_s20]]   ;;  %s9747_s15 = smov 15  }
   0xe   :  { %s9837_s30 = sld [smem:[%s10734_s0 + %s9744_s26]]   ;;  %s9748_s22 = smov 16  }
   0xf   :  { %s9842_s6 = sld [smem:[%s10734_s0 + %s9745_s1]]   ;;  %s9749_s28 = smov 17  }
  0x10   :  { %s9847_s12 = sld [smem:[%s10734_s0 + %s9746_s7]]   ;;  %s9750_s7 = smov 18  }
  0x11   :  { %s9852_s20 = sld [smem:[%s10734_s0 + %s9747_s15]]   ;;  %s9751_s15 = smov 19  }
  0x12   :  { %s9857_s27 = sld [smem:[%s10734_s0 + %s9748_s22]]   ;;  %s9752_s22 = smov 20  }
  0x13   :  { %s9862_s4 = sld [smem:[%s10734_s0 + %s9749_s28]]   ;;  %s9753_s28 = smov 21  }
  0x14   :  { %s9867_s9 = sld [smem:[%s10734_s0 + %s9750_s7]]   ;;  %s9754_s7 = smov 22  }
  0x15   :  { %10743 = sst [smem:[#allocation5_spill]] %s9842_s6 }
  0x16   :  { %s9877_s6 = sld [smem:[%s10734_s0 + %s9752_s22]]   ;;  %s9756_s22 = smov 24  }
  0x17   :  { %10744 = sst [smem:[#allocation6_spill]] %s9852_s20 }
  0x18   :  { %s9872_s20 = sld [smem:[%s10734_s0 + %s9751_s15]]   ;;  %s9755_s15 = smov 23  }
  0x19   :  { %10745 = sst [smem:[#allocation7_spill]] %s9862_s4 }
  0x1a   :  { %10746 = sst [smem:[#allocation8_spill]] %s9867_s9 }
  0x1b   :  { %s9882_s4 = sld [smem:[%s10734_s0 + %s9753_s28]]   ;;  %s9757_s28 = smov 25  }
  0x1c   :  { %10748 = sst [smem:[#allocation10_spill]] %s9877_s6 }
  0x1d   :  { %s9887_s9 = sld [smem:[%s10734_s0 + %s9754_s7]]   ;;  %s9758_s7 = smov 26  }
  0x1e   :  { %10747 = sst [smem:[#allocation9_spill]] %s9872_s20 }
  0x1f   :  { %s9892_s20 = sld [smem:[%s10734_s0 + %s9755_s15]]   ;;  %s9759_s15 = smov 27  }
  0x20   :  { %s9897_s6 = sld [smem:[%s10734_s0 + %s9756_s22]]   ;;  %s9760_s22 = smov 28  }
  0x21   :  { %10749 = sst [smem:[#allocation11_spill]] %s9882_s4 }
  0x22   :  { %s9902_s4 = sld [smem:[%s10734_s0 + %s9757_s28]]   ;;  %s9761_s28 = smov 29  }
  0x23   :  { %10750 = sst [smem:[#allocation12_spill]] %s9887_s9 }
  0x24   :  { %s9907_s9 = sld [smem:[%s10734_s0 + %s9758_s7]]   ;;  %s9762_s7 = smov 30  }
  0x25   :  { %10751 = sst [smem:[#allocation13_spill]] %s9892_s20 }
  0x26   :  { %10752 = sst [smem:[#allocation14_spill]] %s9897_s6 }
  0x27   :  { %s9912_s20 = sld [smem:[%s10734_s0 + %s9759_s15]]   ;;  %s9763_s15 = smov 31  }
  0x28   :  { %10753 = sst [smem:[#allocation15_spill]] %s9902_s4 }
  0x29   :  { %s9917_s6 = sld [smem:[%s10734_s0 + %s9760_s22]]   ;;  %s9764_s22 = smov 32  }
  0x2a   :  { %10754 = sst [smem:[#allocation16_spill]] %s9907_s9 }
  0x2b   :  { %s9922_s4 = sld [smem:[%s10734_s0 + %s9761_s28]]   ;;  %s9765_s28 = smov 33  }
  0x2c   :  { %s9927_s9 = sld [smem:[%s10734_s0 + %s9762_s7]]   ;;  %s9766_s7 = smov 34  }
  0x2d   :  { %10755 = sst [smem:[#allocation17_spill]] %s9912_s20 }
  0x2e   :  { %s9932_s20 = sld [smem:[%s10734_s0 + %s9763_s15]]   ;;  %s9949_s15 = smov 0  }
  0x2f   :  { %10756 = sst [smem:[#allocation18_spill]] %s9917_s6 }
  0x30   :  { %s9937_s6 = sld [smem:[%s10734_s0 + %s9764_s22]]  }
  0x31   :  { %10757 = sst [smem:[#allocation19_spill]] %s9922_s4 }
  0x32   :  { %10758 = sst [smem:[#allocation20_spill]] %s9927_s9 }
  0x33   :  { %s9942_s4 = sld [smem:[%s10734_s0 + %s9765_s28]]  }
  0x34   :  { %s9947_s9 = sld [smem:[%s10734_s0 + %s9766_s7]]  }
  0x35 LB: > { %s7359_s16 = sadd.s32 4294967295, %s9731_s15   ;;  %p7363_p0 = scmp.ge.s32.totalorder %s9731_s15, 1  ;;  %s9731_s15 = sphi %s9949_s15, %s79_s15  }
  0x36   : > { %p961_p1 = scmp.lt.s32.totalorder %s9731_s15, 3 }
  0x38   : > { %p962_p2 = pnand %p7363_p0, %p961_p1 }
  0x39   : > { %v9073_v0 = vld [vmem:[%s9787_s13 + $0x14] ss:$8 sps:$4 sm:$0xff] (!%p962_p2)   ;;  %s7364_s0 = sshll.u32 (!%p962_p2), %s7359_s16, 1  ;;  %v9075_v1 = vld [vmem:[%s9787_s13 + $0x10] ss:$8 sps:$4 sm:$0xff] (!%p962_p2)   ;;  %v9767_v2 = vmov (!%p962_p2), 0  }
  0x3a   : > { %965 = sbr.rel (%p962_p2) target bundleno = 3924 (0xf54), region = 156  ;;  %1078 = vst [vmem:[#allocation2 + $0x8] sm:$0xff] (!%p962_p2), %v9767_v2  ;;  %1197 = vmatprep.mubr.bf16.mxu0 (!%p962_p2), %v9767_v2  ;;  %1079 = vst [vmem:[#allocation2 + $0x10] sm:$0xff] (!%p962_p2), %v9767_v2  ;;  %p1056_p3 = scmp.lt.s32.totalorder (!%p962_p2), %s7364_s0, 3  ;;  %1165 = vmatprep.subr.bf16.mxu0 (!%p962_p2), %v9073_v0  ;;  %v9078_v3 = vld [vmem:[%s9787_s13 + $0x4] ss:$8 sps:$4 sm:$0xff] (!%p962_p2)  }
  0x3b   : > { %1080 = vst [vmem:[#allocation2 + $0x18] sm:$0xff] (!%p962_p2), %v9767_v2  ;;  %1083 = vst [vmem:[#allocation2 + $0x40] sm:$0xff] (!%p962_p2), %v9767_v2  ;;  %1166 = vmatpush1.bf16.msra.mxu0 (!%p962_p2), %v9075_v1  ;;  %v9082_v4 = vld [vmem:[%s9797_s21 + $0x104] ss:$8 sps:$4 sm:$0xff] (!%p962_p2)   ;;  %v9084_v5 = vld [vmem:[%s9797_s21 + $0x100] ss:$8 sps:$4 sm:$0xff] (!%p962_p2)  }
  0x3c   : > { %1084 = vst [vmem:[#allocation2 + $0x48] sm:$0xff] (!%p962_p2), %v9767_v2  ;;  %1087 = vst [vmem:[#allocation3 + $0x10] sm:$0xff] (!%p962_p2), %v9767_v2  ;;  %1234 = vmatprep.subr.bf16.mxu0 (!%p962_p2), %v9078_v3  ;;  %v9085_v6 = vld [vmem:[%s9797_s21 + $0x114] ss:$8 sps:$4 sm:$0xff] (!%p962_p2)   ;;  %vm1099_vm0 = vcmask (!%p962_p2), 130048   ;;  %1714 = vmatprep.subr.bf16.mxu1 (!%p962_p2), %v9082_v4  ;;  %vm1110_vm2 = vcmask (!%p962_p2), 1040384  }
  0x3d   : > { %1088 = vst [vmem:[#allocation3 + $0x18] sm:$0xff] (!%p962_p2), %v9767_v2  ;;  %1091 = vst [vmem:[#allocation3 + $0x40] sm:$0xff] (!%p962_p2), %v9767_v2  ;;  %1715 = vmatpush1.bf16.msra.mxu1 (!%p962_p2), %v9084_v5  ;;  %v9087_v12 = vld [vmem:[%s9797_s21 + $0x110] ss:$8 sps:$4 sm:$0xff] (!%p962_p2)   ;;  %v9088_v14 = vld [vmem:[%s9797_s21 + $0x124] ss:$8 sps:$4 sm:$0xff] (!%p962_p2)  }
  0x3e   : > { %1092 = vst [vmem:[#allocation3 + $0x48] sm:$0xff] (!%p962_p2), %v9767_v2  ;;  %1716 = vmatprep.subr.bf16.mxu1 (!%p962_p2), %v9085_v6  ;;  %v9090_v16 = vld [vmem:[%s9797_s21 + $0x120] ss:$8 sps:$4 sm:$0xff] (!%p962_p2)   ;;  %v9091_v17 = vld [vmem:[%s9797_s21 + $0x134] ss:$8 sps:$4 sm:$0xff] (!%p962_p2)   ;;  %vm2387_vm3 = vcmask (!%p962_p2), 1041408  }
  0x3f   : > { %v9093_v19 = vld [vmem:[%s9797_s21 + $0x130] ss:$8 sps:$4 sm:$0xff] (!%p962_p2)   ;;  %v9094_v21 = vld [vmem:[%s9797_s21 + $0x144] ss:$8 sps:$4 sm:$0xff] (!%p962_p2)   ;;  %vm1121_vm1 = vsmask.f32 (!%p962_p2), 256 }
  0x40   : > { %v9076_v27 = vld [vmem:[%s9787_s13] ss:$8 sps:$4 sm:$0xff] (!%p962_p2)   ;;  %v9081_v31 = vld [vmem:[%s9787_s13 + $0x24] ss:$8 sps:$4 sm:$0xff] (!%p962_p2)   ;;  %v9097_v32 = vld [vmem:[%s9797_s21 + $0x154] ss:$8 sps:$4 sm:$0xff] (!%p962_p2)  }
  0x41   : > { %s10777_s0 = smov (!%p1056_p3, %s7364_s0), 3  ;;  %v9980_v15 = vld [vmem:[#allocation2 + $0x10] sm:$0x80]  ;;  %1717 = vmatpush1.bf16.msra.mxu1 %v9087_v12  ;;  %v9096_v30 = vld [vmem:[%s9797_s21 + $0x140] ss:$8 sps:$4 sm:$0xff]   ;;  %vm4114_vm4 = vcmask 1043456  }
  0x42   : > { %s9970_s18 = sshll.u32 %s10777_s0, 4  ;;  %1718 = vmatprep.subr.bf16.mxu1 %v9088_v14  ;;  %v1123_v18 = vshrl.u32 %v9980_v15, 16  ;;  %v1104_v24 = vld [vmem:[#allocation2 + $0x40] sm:$0x80]  ;;  %v9099_v37 = vld [vmem:[%s9797_s21 + $0x150] ss:$8 sps:$4 sm:$0xff]  }
  0x43   : > { %s1060_s22 = scalar_lea.vmem %s9777_s5, %s9970_s18  ;;  %v1135_v34 = vshrl.u32 %v1104_v24, 16  ;;  %v9100_v38 = vld [vmem:[%s9797_s21 + $0x164] ss:$8 sps:$4 sm:$0xff]   ;;  %v9102_v42 = vld [vmem:[%s9797_s21 + $0x160] ss:$8 sps:$4 sm:$0xff]   ;;  %v1111_v48 = vrot.slane %v9980_v15, 7 }
  0x44   : > { %v1093_v7 = vld [vmem:[%s1060_s22] sm:$0xff]  ;;  %v1094_v8 = vld [vmem:[%s1060_s22 + $0x8] sm:$0xff]  ;;  %v1095_v9 = vld [vmem:[%s1060_s22 + $0x10] sm:$0xff]  ;;  %v1125_v28 = vrot.slane %v1123_v18, 7  ;;  %v1114_v56 = vrot.slane %v1104_v24, 7  ;;  %s10759_s23 = sld [smem:[#allocation8_spill]] }
  0x45   : > { %v1097_v10 = vpack.c.bf16 %v1094_v8, %v1093_v7  ;;  %v1096_v11 = vld [vmem:[%s1060_s22 + $0x18] sm:$0xff]  ;;  %1719 = vmatpush1.bf16.msra.mxu1 %v9090_v16  ;;  %v1137_v40 = vrot.slane %v1135_v34, 7  ;;  %v9106_v47 = vld [vmem:[%s9797_s21 + $0x184] ss:$8 sps:$4 sm:$0xff]   ;;  %v9108_v50 = vld [vmem:[%s9797_s21 + $0x180] ss:$8 sps:$4 sm:$0xff]   ;;  %v1367_v8 = vlaneseq }
  0x46   : > { %v1098_v13 = vpack.c.bf16 %v1096_v11, %v1095_v9  ;;  %1720 = vmatprep.subr.bf16.mxu1 %v9091_v17  ;;  %v9103_v43 = vld [vmem:[%s9797_s21 + $0x174] ss:$8 sps:$4 sm:$0xff]   ;;  %v9105_v46 = vld [vmem:[%s9797_s21 + $0x170] ss:$8 sps:$4 sm:$0xff]   ;;  %v9079_v52 = vld [vmem:[%s9787_s13 + $0x20] ss:$8 sps:$4 sm:$0xff]  }
  0x47   : > { %1100 = vst.msk [vmem:[#allocation2 + $0x20] sm:$0xff] %vm1099_vm0, %v1097_v10  ;;  %v9109_v51 = vld [vmem:[%s9797_s21 + $0x194] ss:$8 sps:$4 sm:$0xff]   ;;  %v9111_v55 = vld [vmem:[%s9797_s21 + $0x190] ss:$8 sps:$4 sm:$0xff]   ;;  %v1368_v9 = vshrl.u32 %v1367_v8, 7 }
  0x48   : > { %1101 = vst.msk [vmem:[#allocation2 + $0x50] sm:$0xff] %vm1099_vm0, %v1098_v13  ;;  %v9112_v59 = vld [vmem:[%s9797_s21 + $0x1a4] ss:$8 sps:$4 sm:$0xff]   ;;  %v9114_v60 = vld [vmem:[%s9797_s21 + $0x1a0] ss:$8 sps:$4 sm:$0xff]   ;;  %s10760_s26 = sld [smem:[#allocation5_spill]] }
  0x49   : > { %1721 = vmatpush1.bf16.msra.mxu1 %v9093_v19  ;;  %v9115_v61 = vld [vmem:[%s9797_s21 + $0x1b4] ss:$8 sps:$4 sm:$0xff]   ;;  %v9117_v62 = vld [vmem:[%s9797_s21 + $0x1b0] ss:$8 sps:$4 sm:$0xff]   ;;  %v9118_v63 = vld [vmem:[%s9797_s21 + $0x1c4] ss:$8 sps:$4 sm:$0xff]  }
  0x4a   : > { %1722 = vmatprep.subr.bf16.mxu1 %v9094_v21  ;;  %v9120_v0 = vld [vmem:[%s9797_s21 + $0x1c0] ss:$8 sps:$4 sm:$0xff]   ;;  %v9121_v1 = vld [vmem:[%s9797_s21 + $0x1d4] ss:$8 sps:$4 sm:$0xff]   ;;  %v9123_v3 = vld [vmem:[%s9797_s21 + $0x1d0] ss:$8 sps:$4 sm:$0xff]  }
  0x4b   : > { %v9126_v4 = vld [vmem:[%s9797_s21 + $0x1e0] ss:$8 sps:$4 sm:$0xff]   ;;  %v9127_v5 = vld [vmem:[%s9797_s21 + $0x1f4] ss:$8 sps:$4 sm:$0xff]   ;;  %v9129_v6 = vld [vmem:[%s9797_s21 + $0x1f0] ss:$8 sps:$4 sm:$0xff]  }
  0x4c   : > { %v9132_v7 = vld [vmem:[%s9797_s21 + $0x4] ss:$8 sps:$4 sm:$0xff]   ;;  %v10037_v10 = vsub.s32 0, %v1368_v9  ;;  %v10039_v11 = vsub.s32 1, %v1368_v9  ;;  %v1365_v12 = vld [vmem:[%s9792_s17] sm:$0x3] }
  0x4d   : > { %1723 = vmatpush1.bf16.msra.mxu1 %v9096_v30  ;;  %v9133_v8 = vld [vmem:[%s9797_s21 + $0x10] ss:$8 sps:$4 sm:$0xff]   ;;  %s10761_s28 = sld [smem:[#allocation10_spill]]  ;;  %s10762_s1 = sld [smem:[#allocation6_spill]]  ;;  %vm6467_vm5 = vcmask 523264   ;;  %vm7250_vm6 = vcmask 261120  }
  0x4e   : > { %v9987_v20 = vld [vmem:[#allocation2 + $0x20] sm:$0xff]  ;;  %1724 = vmatprep.subr.bf16.mxu1 %v9097_v32  ;;  %v1370_v13 = vrot.slane %v1365_v12, %v10037_v10  ;;  %v1374_v14 = vrot.slane %v1365_v12, %v10039_v11  ;;  %s10763_s2 = sld [smem:[#allocation7_spill]]  ;;  %s10764_s7 = sld [smem:[#allocation12_spill]] }
  0x4f   : > { %v1127_v22 = vshrl.u32 %v9987_v20, 16  ;;  %v1130_v23 = vshll.u32 %v9987_v20, 16  ;;  %v1120_v25 = vld [vmem:[#allocation2 + $0x50] sm:$0xff]  ;;  %v1103_v44 = vld [vmem:[#allocation2 + $0x20] sm:$0x7f]  ;;  %s10765_s10 = sld [smem:[#allocation9_spill]] }
  0x50   : > { %v1139_v26 = vshrl.u32 %v1120_v25, 16  ;;  %v1142_v36 = vshll.u32 %v1120_v25, 16  ;;  %v1112_v49 = vrot.slane %v1103_v44, 7  ;;  %v1105_v53 = vld [vmem:[#allocation2 + $0x50] sm:$0x7f]  ;;  %s10766_s11 = sld [smem:[#allocation14_spill]] }
  0x51   : > { %v1129_v29 = vrot.slane %v1127_v22, 7  ;;  %1725 = vmatpush1.bf16.msra.mxu1 %v9099_v37  ;;  %v1115_v57 = vrot.slane %v1105_v53, 7  ;;  %v9217_v22 = vld [vmem:[%s9807_s29] ss:$8 sps:$4 sm:$0xff]   ;;  %s10767_s16 = sld [smem:[#allocation11_spill]]  ;;  %s10768_s0 = sld [smem:[#allocation16_spill]] }
  0x52   : > { %v1141_v35 = vrot.slane %v1139_v26, 7  ;;  %1726 = vmatprep.subr.bf16.mxu1 %v9100_v38  ;;  %v1113_v54 = vsel %vm1110_vm2, %v1111_v48, %v1112_v49  ;;  %v10048_v26 = vld [vmem:[#allocation3 + $0x10] sm:$0x80]  ;;  %s10769_s22 = sld [smem:[#allocation13_spill]] }
  0x53   : > { %v1132_v33 = vor.u32 %v1130_v23, %v1129_v29  ;;  %v1116_v58 = vsel %vm1110_vm2, %v1114_v56, %v1115_v57  ;;  %v9219_v23 = vld [vmem:[%s9807_s29 + $0x4] ss:$8 sps:$4 sm:$0xff]   ;;  %v1470_v37 = vshrl.u32 %v10048_v26, 16 }
  0x54   : > { %v1144_v41 = vor.u32 %v1142_v36, %v1141_v35  ;;  %v10063_v56 = vld [vmem:[#allocation3 + $0x48] sm:$0x80] }
  0x55   : > { %v1133_v39 = vsel %vm1121_vm1, %v1125_v28, %v1132_v33  ;;  %1727 = vmatpush1.bf16.msra.mxu1 %v9102_v42 }
  0x56   : > { %7377 = vmatmul.mubr.msk.bf16.vlgmr.msra.gmra.mrb[0].mxu0 %vm1099_vm0, %v1133_v39  ;;  %v1145_v45 = vsel %vm1121_vm1, %v1137_v40, %v1144_v41  ;;  %1728 = vmatprep.subr.bf16.mxu1 %v9103_v43  ;;  %v9721_v39 = vld [vmem:[#allocation2 + $0x20] sm:$0xff]  ;;  %v9722_v43 = vld [vmem:[#allocation2 + $0x8] sm:$0xff] }
  0x57   : > { %1235 = vmatpush1.bf16.msra.mxu0 %v9076_v27  ;;  %1207 = vmatprep.mubr.bf16.mxu0 %v9767_v2 }
  0x58   : > { %1304 = vmatprep.subr.bf16.mxu0 %v9081_v31 }
  0x59   : > { %1729 = vmatpush1.bf16.msra.mxu1 %v9105_v46 }
  0x5a   : > { %1730 = vmatprep.subr.bf16.mxu1 %v9106_v47 }
  0x5d   : > { %1731 = vmatpush1.bf16.msra.mxu1 %v9108_v50 }
  0x5e   : > { %7378 = vmatmul.mubr.msk.bf16.gmra.mrb[4].mxu0 %vm1099_vm0, %v1145_v45  ;;  %1732 = vmatprep.subr.bf16.mxu1 %v9109_v51 }
  0x5f   : > { %1266 = vmatprep.mubr.bf16.mxu0 %v9767_v2 }
  0x61   : > { %1733 = vmatpush1.bf16.msra.mxu1 %v9111_v55 }
  0x62   : > { %1734 = vmatprep.subr.bf16.mxu1 %v9112_v59 }
  0x65   : > { %1735 = vmatpush1.bf16.msra.mxu1 %v9114_v60  ;;  %v10065_v60 = vld [vmem:[#allocation3 + $0x40] sm:$0x80] }
  0x66   : > { %7381 = vmatmul.mubr.msk.bf16.vlgmr.msra.gmra.mrb[0].mxu0 %vm1099_vm0, %v1113_v54  ;;  %1736 = vmatprep.subr.bf16.mxu1 %v9115_v61  ;;  %v1472_v54 = vrot.slane %v1470_v37, 7  ;;  %v9237_v37 = vld [vmem:[%s9817_s8 + $0x124] ss:$8 sps:$4 sm:$0xff]  }
  0x67   : > { %1305 = vmatpush1.bf16.msra.mxu0 %v9079_v52  ;;  %1276 = vmatprep.mubr.bf16.mxu0 %v9767_v2 }
  0x68   : > { %2294 = vmatprep.subr.bf16.mxu0 %v9219_v23  ;;  %v9136_v23 = vld [vmem:[%s9797_s21 + $0x20] ss:$8 sps:$4 sm:$0xff]  }
  0x69   : > { %1737 = vmatpush1.bf16.msra.mxu1 %v9117_v62  ;;  %v9130_v62 = vld [vmem:[%s9797_s21] ss:$8 sps:$4 sm:$0xff]  }
  0x6a   : > { %1738 = vmatprep.subr.bf16.mxu1 %v9118_v63 }
  0x6d   : > { %1739 = vmatpush1.bf16.msra.mxu1 %v9120_v0 }
  0x6e   : > { %7382 = vmatmul.mubr.msk.bf16.gmra.mrb[4].mxu0 %vm1099_vm0, %v1116_v58  ;;  %1740 = vmatprep.subr.bf16.mxu1 %v9121_v1  ;;  %v9135_v1 = vld [vmem:[%s9797_s21 + $0x14] ss:$8 sps:$4 sm:$0xff]  }
  0x6f   : > { %1336 = vmatprep.mubr.bf16.mxu0 %v9767_v2 }
  0x71   : > { %1741 = vmatpush1.bf16.msra.mxu1 %v9123_v3  ;;  %v1506_v3 = vshrl.u32 %v10063_v56, 16 }
  0x76   : > { %7387 = vmatmul.mubr.msk.bf16.vlgmr.msra.gmra.mrb[0].mxu0 %vm1099_vm0, %v9987_v20 }
  0x77   : > { %1346 = vmatprep.mubr.bf16.mxu0 %v9767_v2  ;;  %2295 = vmatpush1.bf16.msra.mxu0 %v9217_v22 }
  0x7e   : > { %7388 = vmatmul.mubr.msk.bf16.gmra.mrb[4].mxu0 %vm1099_vm0, %v1120_v25  ;;  %v10046_v25 = vld [vmem:[#allocation3 + $0x18] sm:$0x80] }
  0x7f   : > { %2326 = vmatprep.mubr.bf16.mxu0 %v9767_v2  ;;  %v9124_v2 = vld [vmem:[%s9797_s21 + $0x1e4] ss:$8 sps:$4 sm:$0xff]   ;;  %v1482_v34 = vshrl.u32 %v10046_v25, 16 }
  0x80   : > { %1742 = vmatprep.subr.bf16.mxu1 %v9124_v2 }
  0x81   : > { %1743 = vmatpush1.bf16.msra.mxu1 %v9126_v4  ;;  %v1484_v49 = vrot.slane %v1482_v34, 7  ;;  %v1494_v4 = vshrl.u32 %v10065_v60, 16  ;;  %v9234_v34 = vld [vmem:[%s9817_s8 + $0x114] ss:$8 sps:$4 sm:$0xff]  }
  0x82   : > { %1744 = vmatprep.subr.bf16.mxu1 %v9127_v5 }
  0x85   : > { %1745 = vmatpush1.bf16.msra.mxu1 %v9129_v6  ;;  %v9723_v6 = vld [vmem:[#allocation2 + $0x50] sm:$0xff] }
  0x86   : > { %1927 = vmatprep.subr.bf16.mxu1 %v9132_v7  ;;  %7551 = vmatmul.mubr.msk.bf16.vlgmr.msra.gmra.mrb[8].mxu0 %vm1099_vm0, %v9721_v39  ;;  %v9147_v39 = vld [vmem:[%s9797_s21 + $0x54] ss:$8 sps:$4 sm:$0xff]  }
  0x87   : > { %2336 = vmatprep.mubr.bf16.mxu0 %v9722_v43  ;;  %v9150_v43 = vld [vmem:[%s9797_s21 + $0x64] ss:$8 sps:$4 sm:$0xff]  }
  0x8e   : > { %7552 = vmatmul.mubr.msk.bf16.gmra.mrb[12].mxu0 %vm1099_vm0, %v9723_v6  ;;  %v9163_v6 = vld [vmem:[%s9797_s21 + $0xb0] ss:$8 sps:$4 sm:$0xff]  }
 0x149   : > { %v1338_v15 = vpop.f32.mrb[0].mxu0 }
 0x14a   : > { %v1377_v16 = vadd.f32 %v1370_v13, %v1338_v15  ;;  %v1340_v17 = vpop.f32.mrb[1].mxu0 }
 0x14b   : > { %v1378_v18 = vadd.f32 %v1374_v14, %v1340_v17  ;;  %v1342_v19 = vpop.f32.mrb[2].mxu0  ;;  %v9138_v17 = vld [vmem:[%s9797_s21 + $0x24] ss:$8 sps:$4 sm:$0xff]  }
 0x14c   : > { %v1379_v20 = vadd.f32 %v1370_v13, %v1342_v19  ;;  %v1344_v21 = vpop.f32.mrb[3].mxu0  ;;  %v1385_v27 = vmax.f32 %v1377_v16, 0.0 }
 0x14d   : > { %v1380_v24 = vadd.f32 %v1374_v14, %v1344_v21  ;;  %v1386_v29 = vmax.f32 %v1378_v18, 0.0  ;;  %v1496_v18 = vrot.slane %v1494_v4, 7  ;;  %v1420_v21 = vrot.slane %v10046_v25, 7  ;;  %v9231_v25 = vld [vmem:[%s9817_s8 + $0x104] ss:$8 sps:$4 sm:$0xff]  }
 0x14e   : > { %v1387_v28 = vmax.f32 %v1379_v20, 0.0  ;;  %2661 = vmatprep.subr.bf16.mxu0 %v9231_v25  ;;  %v9253_v4 = vld [vmem:[%s9817_s8 + $0x180] ss:$8 sps:$4 sm:$0xff]  }
 0x14f   : > { %v1388_v30 = vmax.f32 %v1380_v24, 0.0 }
 0x150   : > { %v10050_v31 = vpack.c.bf16 %v1387_v28, %v1385_v27  ;;  %v9141_v27 = vld [vmem:[%s9797_s21 + $0x34] ss:$8 sps:$4 sm:$0xff]  }
 0x151   : > { %v10052_v32 = vpack.c.bf16 %v1388_v30, %v1386_v29  ;;  %v1348_v33 = vpop.f32.mrb[4].mxu0  ;;  %v9229_v30 = vld [vmem:[%s9817_s8 + $0x100] ss:$8 sps:$4 sm:$0xff]  }
 0x152   : > { %1397 = vst [vmem:[#allocation3 + $0x20] sm:$0xff] %v10050_v31  ;;  %v1381_v35 = vadd.f32 %v1370_v13, %v1348_v33  ;;  %v1350_v36 = vpop.f32.mrb[5].mxu0  ;;  %v1474_v38 = vshrl.u32 %v10050_v31, 16  ;;  %v1477_v47 = vshll.u32 %v10050_v31, 16  ;;  %v9139_v33 = vld [vmem:[%s9797_s21 + $0x30] ss:$8 sps:$4 sm:$0xff]   ;;  %2662 = vmatpush1.bf16.msra.mxu0 %v9229_v30 }
 0x153   : > { %1398 = vst [vmem:[#allocation3 + $0x28] sm:$0xff] %v10052_v32  ;;  %v1382_v40 = vadd.f32 %v1374_v14, %v1350_v36  ;;  %v1352_v41 = vpop.f32.mrb[6].mxu0  ;;  %v1486_v42 = vshrl.u32 %v10052_v32, 16  ;;  %v1489_v51 = vshll.u32 %v10052_v32, 16  ;;  %v9232_v36 = vld [vmem:[%s9817_s8 + $0x110] ss:$8 sps:$4 sm:$0xff]   ;;  %2663 = vmatprep.subr.bf16.mxu0 %v9234_v34 }
 0x154   : > { %v1383_v44 = vadd.f32 %v1370_v13, %v1352_v41  ;;  %v1354_v45 = vpop.f32.mrb[7].mxu0  ;;  %v1476_v46 = vrot.slane %v1474_v38, 7  ;;  %v1389_v52 = vmax.f32 %v1381_v35, 0.0  ;;  %v9144_v35 = vld [vmem:[%s9797_s21 + $0x44] ss:$8 sps:$4 sm:$0xff]  }
 0x155   : > { %v1384_v48 = vadd.f32 %v1374_v14, %v1354_v45  ;;  %v1488_v50 = vrot.slane %v1486_v42, 7  ;;  %v1390_v57 = vmax.f32 %v1382_v40, 0.0  ;;  %v1508_v14 = vrot.slane %v1506_v3, 7  ;;  %v9142_v38 = vld [vmem:[%s9797_s21 + $0x40] ss:$8 sps:$4 sm:$0xff]  }
 0x156   : > { %v1391_v53 = vmax.f32 %v1383_v44, 0.0  ;;  %v1479_v55 = vor.u32 %v1477_v47, %v1476_v46  ;;  %2664 = vmatpush1.bf16.msra.mxu0 %v9232_v36  ;;  %v9235_v40 = vld [vmem:[%s9817_s8 + $0x120] ss:$8 sps:$4 sm:$0xff]   ;;  %v9240_v41 = vld [vmem:[%s9817_s8 + $0x134] ss:$8 sps:$4 sm:$0xff]  }
 0x157   : > { %v1392_v58 = vmax.f32 %v1384_v48, 0.0  ;;  %v1491_v59 = vor.u32 %v1489_v51, %v1488_v50  ;;  %2665 = vmatprep.subr.bf16.mxu0 %v9237_v37  ;;  %v9145_v42 = vld [vmem:[%s9797_s21 + $0x50] ss:$8 sps:$4 sm:$0xff]   ;;  %v9243_v45 = vld [vmem:[%s9817_s8 + $0x144] ss:$8 sps:$4 sm:$0xff]  }
 0x158   : > { %v10067_v61 = vpack.c.bf16 %v1391_v53, %v1389_v52  ;;  %v1480_v2 = vsel %vm1121_vm1, %v1472_v54, %v1479_v55  ;;  %v9238_v44 = vld [vmem:[%s9817_s8 + $0x130] ss:$8 sps:$4 sm:$0xff]   ;;  %v9148_v46 = vld [vmem:[%s9797_s21 + $0x60] ss:$8 sps:$4 sm:$0xff]   ;;  %v9153_v47 = vld [vmem:[%s9797_s21 + $0x74] ss:$8 sps:$4 sm:$0xff]  }
 0x159   : > { %v10070_v63 = vpack.c.bf16 %v1392_v58, %v1390_v57  ;;  %v1492_v0 = vsel %vm1121_vm1, %v1484_v49, %v1491_v59  ;;  %v9241_v48 = vld [vmem:[%s9817_s8 + $0x140] ss:$8 sps:$4 sm:$0xff]   ;;  %v9246_v49 = vld [vmem:[%s9817_s8 + $0x154] ss:$8 sps:$4 sm:$0xff]   ;;  %v9151_v50 = vld [vmem:[%s9797_s21 + $0x70] ss:$8 sps:$4 sm:$0xff]  }
 0x15a   : > { %1399 = vst [vmem:[#allocation3 + $0x50] sm:$0xff] %v10067_v61  ;;  %1746 = vmatprep.mubr.bf16.mxu1 %v1492_v0  ;;  %v1498_v5 = vshrl.u32 %v10067_v61, 16  ;;  %v1501_v12 = vshll.u32 %v10067_v61, 16  ;;  %v1404_v13 = vld [vmem:[#allocation3 + $0x28] sm:$0x7f]  ;;  %2666 = vmatpush1.bf16.msra.mxu0 %v9235_v40 }
 0x15b   : > { %1400 = vst [vmem:[#allocation3 + $0x58] sm:$0xff] %v10070_v63  ;;  %1747 = vmatmul.mubr.bf16.vlgmr.msra.gmra.mrb[0].mxu1 %v1480_v2  ;;  %v1510_v7 = vshrl.u32 %v10070_v63, 16  ;;  %v1513_v16 = vshll.u32 %v10070_v63, 16  ;;  %v1421_v22 = vrot.slane %v1404_v13, 7  ;;  %2667 = vmatprep.subr.bf16.mxu0 %v9240_v41  ;;  %v9156_v51 = vld [vmem:[%s9797_s21 + $0x84] ss:$8 sps:$4 sm:$0xff]  }
 0x15c   : > { %1928 = vmatpush1.bf16.msra.mxu1 %v9130_v62  ;;  %v1500_v9 = vrot.slane %v1498_v5, 7  ;;  %v9244_v52 = vld [vmem:[%s9817_s8 + $0x150] ss:$8 sps:$4 sm:$0xff]   ;;  %v9249_v53 = vld [vmem:[%s9817_s8 + $0x164] ss:$8 sps:$4 sm:$0xff]  }
 0x15d   : > { %1929 = vmatprep.subr.bf16.mxu1 %v9135_v1  ;;  %v1512_v15 = vrot.slane %v1510_v7, 7  ;;  %v1422_v29 = vsel %vm1110_vm2, %v1420_v21, %v1421_v22  ;;  %v9154_v54 = vld [vmem:[%s9797_s21 + $0x80] ss:$8 sps:$4 sm:$0xff]   ;;  %v9159_v55 = vld [vmem:[%s9797_s21 + $0x94] ss:$8 sps:$4 sm:$0xff]   ;;  %v1417_v21 = vrot.slane %v10048_v26, 7 }
 0x15e   : > { %v1503_v19 = vor.u32 %v1501_v12, %v1500_v9  ;;  %2668 = vmatpush1.bf16.msra.mxu0 %v9238_v44  ;;  %v9247_v57 = vld [vmem:[%s9817_s8 + $0x160] ss:$8 sps:$4 sm:$0xff]   ;;  %v9252_v58 = vld [vmem:[%s9817_s8 + $0x174] ss:$8 sps:$4 sm:$0xff]   ;;  %v9157_v59 = vld [vmem:[%s9797_s21 + $0x90] ss:$8 sps:$4 sm:$0xff]  }
 0x15f   : > { %v1515_v20 = vor.u32 %v1513_v16, %v1512_v15  ;;  %2669 = vmatprep.subr.bf16.mxu0 %v9243_v45  ;;  %v9162_v62 = vld [vmem:[%s9797_s21 + $0xa4] ss:$8 sps:$4 sm:$0xff]   ;;  %v9250_v0 = vld [vmem:[%s9817_s8 + $0x170] ss:$8 sps:$4 sm:$0xff]   ;;  %v9160_v3 = vld [vmem:[%s9797_s21 + $0xa0] ss:$8 sps:$4 sm:$0xff]  }
 0x160   : > { %1930 = vmatpush1.bf16.msra.mxu1 %v9133_v8  ;;  %v1504_v28 = vsel %vm1121_vm1, %v1496_v18, %v1503_v19  ;;  %v9255_v1 = vld [vmem:[%s9817_s8 + $0x184] ss:$8 sps:$4 sm:$0xff]   ;;  %v9165_v2 = vld [vmem:[%s9797_s21 + $0xb4] ss:$8 sps:$4 sm:$0xff]   ;;  %v9256_v8 = vld [vmem:[%s9817_s8 + $0x190] ss:$8 sps:$4 sm:$0xff]  }
 0x161   : > { %v1516_v24 = vsel %vm1121_vm1, %v1508_v14, %v1515_v20  ;;  %1931 = vmatprep.subr.bf16.mxu1 %v9138_v17  ;;  %v9258_v5 = vld [vmem:[%s9817_s8 + $0x194] ss:$8 sps:$4 sm:$0xff]   ;;  %v9168_v7 = vld [vmem:[%s9797_s21 + $0xc4] ss:$8 sps:$4 sm:$0xff]   ;;  %v9166_v9 = vld [vmem:[%s9797_s21 + $0xc0] ss:$8 sps:$4 sm:$0xff]  }
 0x162   : > { %1756 = vmatprep.mubr.bf16.mxu1 %v1516_v24  ;;  %2670 = vmatpush1.bf16.msra.mxu0 %v9241_v48  ;;  %v9171_v12 = vld [vmem:[%s9797_s21 + $0xd4] ss:$8 sps:$4 sm:$0xff]   ;;  %v9169_v13 = vld [vmem:[%s9797_s21 + $0xd0] ss:$8 sps:$4 sm:$0xff]   ;;  %v9174_v14 = vld [vmem:[%s9797_s21 + $0xe4] ss:$8 sps:$4 sm:$0xff]  }
 0x163   : > { %1757 = vmatmul.mubr.bf16.gmra.mrb[4].mxu1 %v1504_v28  ;;  %2671 = vmatprep.subr.bf16.mxu0 %v9246_v49  ;;  %v9172_v15 = vld [vmem:[%s9797_s21 + $0xe0] ss:$8 sps:$4 sm:$0xff]   ;;  %v9177_v16 = vld [vmem:[%s9797_s21 + $0xf4] ss:$8 sps:$4 sm:$0xff]   ;;  %v9175_v18 = vld [vmem:[%s9797_s21 + $0xf0] ss:$8 sps:$4 sm:$0xff]  }
 0x164   : > { %1932 = vmatpush1.bf16.msra.mxu1 %v9136_v23  ;;  %1959 = vmatprep.mubr.bf16.mxu1 %v1422_v29  ;;  %v1403_v17 = vld [vmem:[#allocation3 + $0x20] sm:$0x7f]  ;;  %v1408_v19 = vld [vmem:[#allocation3 + $0x58] sm:$0x7f]  ;;  %v1426_v23 = vrot.slane %v10063_v56, 7 }
 0x165   : > { %1933 = vmatprep.subr.bf16.mxu1 %v9141_v27  ;;  %v9180_v20 = vld [vmem:[%s9797_s21 + $0x204] ss:$8 sps:$4 sm:$0xff]   ;;  %v1418_v22 = vrot.slane %v1403_v17, 7  ;;  %v1427_v24 = vrot.slane %v1408_v19, 7  ;;  %v9178_v27 = vld [vmem:[%s9797_s21 + $0x200] ss:$8 sps:$4 sm:$0xff]  }
 0x166   : > { %2672 = vmatpush1.bf16.msra.mxu0 %v9244_v52  ;;  %v9183_v28 = vld [vmem:[%s9797_s21 + $0x214] ss:$8 sps:$4 sm:$0xff]   ;;  %v9181_v26 = vld [vmem:[%s9797_s21 + $0x210] ss:$8 sps:$4 sm:$0xff]   ;;  %v9186_v56 = vld [vmem:[%s9797_s21 + $0x224] ss:$8 sps:$4 sm:$0xff]  }
 0x167   : > { %2673 = vmatprep.subr.bf16.mxu0 %v9249_v53  ;;  %v1419_v29 = vsel %vm1110_vm2, %v1417_v21, %v1418_v22  ;;  %v1428_v30 = vsel %vm1110_vm2, %v1426_v23, %v1427_v24  ;;  %v1407_v25 = vld [vmem:[#allocation3 + $0x50] sm:$0x7f]  ;;  %v9204_v45 = vld [vmem:[%s9797_s21 + $0x284] ss:$8 sps:$4 sm:$0xff]   ;;  %v9271_v17 = vld [vmem:[%s9817_s8 + $0x1e0] ss:$8 sps:$4 sm:$0xff]  }
 0x168   : > { %1934 = vmatpush1.bf16.msra.mxu1 %v9139_v33  ;;  %v1423_v33 = vrot.slane %v10065_v60, 7  ;;  %v1424_v34 = vrot.slane %v1407_v25, 7  ;;  %v9189_v36 = vld [vmem:[%s9797_s21 + $0x234] ss:$8 sps:$4 sm:$0xff]   ;;  %v9192_v60 = vld [vmem:[%s9797_s21 + $0x244] ss:$8 sps:$4 sm:$0xff]  }
 0x169   : > { %1935 = vmatprep.subr.bf16.mxu1 %v9144_v35  ;;  %v9184_v35 = vld [vmem:[%s9797_s21 + $0x220] ss:$8 sps:$4 sm:$0xff]   ;;  %v9195_v40 = vld [vmem:[%s9797_s21 + $0x254] ss:$8 sps:$4 sm:$0xff]   ;;  %v9193_v41 = vld [vmem:[%s9797_s21 + $0x250] ss:$8 sps:$4 sm:$0xff]  }
 0x16a   : > { %2674 = vmatpush1.bf16.msra.mxu0 %v9247_v57  ;;  %v1425_v37 = vsel %vm1110_vm2, %v1423_v33, %v1424_v34  ;;  %v9199_v44 = vld [vmem:[%s9797_s21 + $0x270] ss:$8 sps:$4 sm:$0xff]   ;;  %v9210_v49 = vld [vmem:[%s9797_s21 + $0x2a4] ss:$8 sps:$4 sm:$0xff]   ;;  %v2266_v21 = vld [vmem:[%s9812_s3] sm:$0x3] }
 0x16b   : > { %2675 = vmatprep.subr.bf16.mxu0 %v9252_v58  ;;  %v9205_v48 = vld [vmem:[%s9797_s21 + $0x290] ss:$8 sps:$4 sm:$0xff]   ;;  %v9216_v53 = vld [vmem:[%s9797_s21 + $0x2c4] ss:$8 sps:$4 sm:$0xff]   ;;  %v2234_v22 = vld [vmem:[%s9802_s25] sm:$0x3]  ;;  %v2271_v23 = vrot.slane %v2266_v21, %v10037_v10 }
 0x16c   : > { %1936 = vmatpush1.bf16.msra.mxu1 %v9142_v38  ;;  %v9187_v38 = vld [vmem:[%s9797_s21 + $0x230] ss:$8 sps:$4 sm:$0xff]   ;;  %v9225_v58 = vld [vmem:[%s9797_s21 + $0x2e4] ss:$8 sps:$4 sm:$0xff]   ;;  %v2239_v24 = vrot.slane %v2234_v22, %v10037_v10 }
 0x16d   : > { %1937 = vmatprep.subr.bf16.mxu1 %v9147_v39  ;;  %v9190_v39 = vld [vmem:[%s9797_s21 + $0x240] ss:$8 sps:$4 sm:$0xff]   ;;  %v9211_v52 = vld [vmem:[%s9797_s21 + $0x2b0] ss:$8 sps:$4 sm:$0xff]  }
 0x16e   : > { %2676 = vmatpush1.bf16.msra.mxu0 %v9250_v0  ;;  %v9220_v57 = vld [vmem:[%s9797_s21 + $0x2d0] ss:$8 sps:$4 sm:$0xff]  }
 0x16f   : > { %2677 = vmatprep.subr.bf16.mxu0 %v9255_v1  ;;  %v9226_v0 = vld [vmem:[%s9797_s21 + $0x2f0] ss:$8 sps:$4 sm:$0xff]   ;;  %v2328_v1 = vpop.f32.mrb[8].mxu0 }
 0x170   : > { %1938 = vmatpush1.bf16.msra.mxu1 %v9145_v42  ;;  %v9198_v42 = vld [vmem:[%s9797_s21 + $0x264] ss:$8 sps:$4 sm:$0xff]   ;;  %v9274_v19 = vld [vmem:[%s9817_s8 + $0x1f0] ss:$8 sps:$4 sm:$0xff]  }
 0x171   : > { %1939 = vmatprep.subr.bf16.mxu1 %v9150_v43  ;;  %v9196_v43 = vld [vmem:[%s9797_s21 + $0x260] ss:$8 sps:$4 sm:$0xff]  }
 0x172   : > { %2678 = vmatpush1.bf16.msra.mxu0 %v9253_v4  ;;  %v9259_v4 = vld [vmem:[%s9817_s8 + $0x1a0] ss:$8 sps:$4 sm:$0xff]  }
 0x173   : > { %2679 = vmatprep.subr.bf16.mxu0 %v9258_v5 }
 0x174   : > { %1940 = vmatpush1.bf16.msra.mxu1 %v9148_v46  ;;  %v9202_v46 = vld [vmem:[%s9797_s21 + $0x280] ss:$8 sps:$4 sm:$0xff]  }
 0x175   : > { %1941 = vmatprep.subr.bf16.mxu1 %v9153_v47  ;;  %v9207_v47 = vld [vmem:[%s9797_s21 + $0x294] ss:$8 sps:$4 sm:$0xff]  }
 0x176   : > { %2680 = vmatpush1.bf16.msra.mxu0 %v9256_v8  ;;  %v9262_v8 = vld [vmem:[%s9817_s8 + $0x1b0] ss:$8 sps:$4 sm:$0xff]  }
 0x178   : > { %1942 = vmatpush1.bf16.msra.mxu1 %v9151_v50  ;;  %v9208_v50 = vld [vmem:[%s9797_s21 + $0x2a0] ss:$8 sps:$4 sm:$0xff]  }
 0x179   : > { %1943 = vmatprep.subr.bf16.mxu1 %v9156_v51  ;;  %v9213_v51 = vld [vmem:[%s9797_s21 + $0x2b4] ss:$8 sps:$4 sm:$0xff]  }
 0x17c   : > { %1944 = vmatpush1.bf16.msra.mxu1 %v9154_v54  ;;  %v9214_v54 = vld [vmem:[%s9797_s21 + $0x2c0] ss:$8 sps:$4 sm:$0xff]  }
 0x17d   : > { %1945 = vmatprep.subr.bf16.mxu1 %v9159_v55  ;;  %v9222_v55 = vld [vmem:[%s9797_s21 + $0x2d4] ss:$8 sps:$4 sm:$0xff]  }
 0x180   : > { %1946 = vmatpush1.bf16.msra.mxu1 %v9157_v59  ;;  %v9223_v59 = vld [vmem:[%s9797_s21 + $0x2e0] ss:$8 sps:$4 sm:$0xff]  }
 0x181   : > { %1947 = vmatprep.subr.bf16.mxu1 %v9162_v62  ;;  %v9228_v62 = vld [vmem:[%s9797_s21 + $0x2f4] ss:$8 sps:$4 sm:$0xff]  }
 0x184   : > { %1948 = vmatpush1.bf16.msra.mxu1 %v9160_v3  ;;  %v9261_v3 = vld [vmem:[%s9817_s8 + $0x1a4] ss:$8 sps:$4 sm:$0xff]  }
 0x185   : > { %1949 = vmatprep.subr.bf16.mxu1 %v9165_v2  ;;  %v2330_v2 = vpop.f32.mrb[9].mxu0  ;;  %2681 = vmatprep.subr.bf16.mxu0 %v9261_v3 }
 0x186   : > { %v2332_v5 = vpop.f32.mrb[10].mxu0  ;;  %2682 = vmatpush1.bf16.msra.mxu0 %v9259_v4 }
 0x188   : > { %1950 = vmatpush1.bf16.msra.mxu1 %v9163_v6  ;;  %v2334_v6 = vpop.f32.mrb[11].mxu0 }
 0x189   : > { %1951 = vmatprep.subr.bf16.mxu1 %v9168_v7  ;;  %v9264_v7 = vld [vmem:[%s9817_s8 + $0x1b4] ss:$8 sps:$4 sm:$0xff]  }
 0x18a   : > { %2683 = vmatprep.subr.bf16.mxu0 %v9264_v7 }
 0x18b   : > { %2684 = vmatpush1.bf16.msra.mxu0 %v9262_v8 }
 0x18c   : > { %1952 = vmatpush1.bf16.msra.mxu1 %v9166_v9 }
 0x18d   : > { %1953 = vmatprep.subr.bf16.mxu1 %v9171_v12  ;;  %v9270_v12 = vld [vmem:[%s9817_s8 + $0x1d4] ss:$8 sps:$4 sm:$0xff]  }
 0x190   : > { %1954 = vmatpush1.bf16.msra.mxu1 %v9169_v13 }
 0x191   : > { %1955 = vmatprep.subr.bf16.mxu1 %v9174_v14  ;;  %v9268_v14 = vld [vmem:[%s9817_s8 + $0x1d0] ss:$8 sps:$4 sm:$0xff]  }
 0x194   : > { %1956 = vmatpush1.bf16.msra.mxu1 %v9172_v15 }
 0x195   : > { %1957 = vmatprep.subr.bf16.mxu1 %v9177_v16  ;;  %v9273_v16 = vld [vmem:[%s9817_s8 + $0x1e4] ss:$8 sps:$4 sm:$0xff]  }
 0x198   : > { %1958 = vmatpush1.bf16.msra.mxu1 %v9175_v18  ;;  %v9276_v18 = vld [vmem:[%s9817_s8 + $0x1f4] ss:$8 sps:$4 sm:$0xff]  }
 0x199   : > { %2173 = vmatprep.subr.bf16.mxu1 %v9180_v20  ;;  %v9279_v20 = vld [vmem:[%s9817_s8 + $0x4] ss:$8 sps:$4 sm:$0xff]  }
 0x19b   : > { %1960 = vmatmul.mubr.bf16.vlgmr.msra.gmra.mrb[0].mxu1 %v1419_v29 }
 0x19c   : > { %1969 = vmatprep.mubr.bf16.mxu1 %v1428_v30  ;;  %2174 = vmatpush1.bf16.msra.mxu1 %v9178_v27  ;;  %v2275_v27 = vrot.slane %v2266_v21, %v10039_v11  ;;  %v2329_v30 = vadd.f32 %v2328_v1, %v2271_v23 }
 0x19d   : > { %2175 = vmatprep.subr.bf16.mxu1 %v9183_v28  ;;  %v2243_v28 = vrot.slane %v2234_v22, %v10039_v11 }
 0x1a0   : > { %2176 = vmatpush1.bf16.msra.mxu1 %v9181_v26 }
 0x1a1   : > { %2177 = vmatprep.subr.bf16.mxu1 %v9186_v56  ;;  %v2331_v56 = vadd.f32 %v2330_v2, %v2275_v27 }
 0x1a3   : > { %1970 = vmatmul.mubr.bf16.gmra.mrb[4].mxu1 %v1425_v37 }
 0x1a4   : > { %2178 = vmatpush1.bf16.msra.mxu1 %v9184_v35  ;;  %2205 = vmatprep.mubr.bf16.mxu1 %v10052_v32  ;;  %v9201_v32 = vld [vmem:[%s9797_s21 + $0x274] ss:$8 sps:$4 sm:$0xff]  }
 0x1a5   : > { %2179 = vmatprep.subr.bf16.mxu1 %v9189_v36 }
 0x1a8   : > { %2180 = vmatpush1.bf16.msra.mxu1 %v9187_v38 }
 0x1a9   : > { %2181 = vmatprep.subr.bf16.mxu1 %v9192_v60 }
 0x1ac   : > { %2182 = vmatpush1.bf16.msra.mxu1 %v9190_v39 }
 0x1ad   : > { %2183 = vmatprep.subr.bf16.mxu1 %v9195_v40  ;;  %v2333_v40 = vadd.f32 %v2332_v5, %v2271_v23 }
 0x1b0   : > { %2184 = vmatpush1.bf16.msra.mxu1 %v9193_v41 }
 0x1b1   : > { %2185 = vmatprep.subr.bf16.mxu1 %v9198_v42 }
 0x1b4   : > { %2186 = vmatpush1.bf16.msra.mxu1 %v9196_v43  ;;  %v2335_v43 = vadd.f32 %v2334_v6, %v2275_v27 }
 0x1b5   : > { %2187 = vmatprep.subr.bf16.mxu1 %v9201_v32 }
 0x1b8   : > { %2188 = vmatpush1.bf16.msra.mxu1 %v9199_v44 }
 0x1b9   : > { %2189 = vmatprep.subr.bf16.mxu1 %v9204_v45 }
 0x1bc   : > { %2190 = vmatpush1.bf16.msra.mxu1 %v9202_v46 }
 0x1bd   : > { %2191 = vmatprep.subr.bf16.mxu1 %v9207_v47 }
 0x1c0   : > { %2192 = vmatpush1.bf16.msra.mxu1 %v9205_v48 }
 0x1c1   : > { %2193 = vmatprep.subr.bf16.mxu1 %v9210_v49 }
 0x1c4   : > { %2194 = vmatpush1.bf16.msra.mxu1 %v9208_v50 }
 0x1c5   : > { %2195 = vmatprep.subr.bf16.mxu1 %v9213_v51 }
 0x1c8   : > { %2196 = vmatpush1.bf16.msra.mxu1 %v9211_v52 }
 0x1c9   : > { %2197 = vmatprep.subr.bf16.mxu1 %v9216_v53 }
 0x1cc   : > { %2198 = vmatpush1.bf16.msra.mxu1 %v9214_v54 }
 0x1cd   : > { %2199 = vmatprep.subr.bf16.mxu1 %v9222_v55 }
 0x1d0   : > { %2200 = vmatpush1.bf16.msra.mxu1 %v9220_v57 }
 0x1d1   : > { %2201 = vmatprep.subr.bf16.mxu1 %v9225_v58 }
 0x1d4   : > { %2202 = vmatpush1.bf16.msra.mxu1 %v9223_v59 }
 0x1d5   : > { %2203 = vmatprep.subr.bf16.mxu1 %v9228_v62 }
 0x1d8   : > { %2204 = vmatpush1.bf16.msra.mxu1 %v9226_v0 }
 0x1db   : > { %2206 = vmatmul.mubr.bf16.vlgmr.msra.gmra.mrb[0].mxu1 %v10050_v31  ;;  %v9267_v31 = vld [vmem:[%s9817_s8 + $0x1c4] ss:$8 sps:$4 sm:$0xff]  }
 0x1dc   : > { %2215 = vmatprep.mubr.bf16.mxu1 %v10070_v63  ;;  %v9265_v63 = vld [vmem:[%s9817_s8 + $0x1c0] ss:$8 sps:$4 sm:$0xff]   ;;  %2685 = vmatprep.subr.bf16.mxu0 %v9267_v31 }
 0x1dd   : > { %2686 = vmatpush1.bf16.msra.mxu0 %v9265_v63 }
 0x1de   : > { %2687 = vmatprep.subr.bf16.mxu0 %v9270_v12 }
 0x1e1   : > { %2688 = vmatpush1.bf16.msra.mxu0 %v9268_v14  ;;  %v2437_v14 = vld [vmem:[#allocation2 + $0x18] sm:$0x80] }
 0x1e2   : > { %2689 = vmatprep.subr.bf16.mxu0 %v9273_v16 }
 0x1e3   : > { %2216 = vmatmul.mubr.bf16.gmra.mrb[4].mxu1 %v10067_v61  ;;  %v2338_v61 = vpop.f32.mrb[12].mxu0 }
 0x1e4   : > { %v2340_v9 = vpop.f32.mrb[13].mxu0  ;;  %v2339_v51 = vadd.f32 %v2338_v61, %v2271_v23 }
 0x1e5   : > { %v2342_v13 = vpop.f32.mrb[14].mxu0  ;;  %2690 = vmatpush1.bf16.msra.mxu0 %v9271_v17  ;;  %v2341_v57 = vadd.f32 %v2340_v9, %v2275_v27  ;;  %v2436_v17 = vld [vmem:[#allocation2 + $0x10] sm:$0x80] }
 0x1e6   : > { %v2344_v15 = vpop.f32.mrb[15].mxu0  ;;  %2691 = vmatprep.subr.bf16.mxu0 %v9276_v18  ;;  %v2343_v1 = vadd.f32 %v2342_v13, %v2271_v23  ;;  %v2452_v22 = vrot.slane %v2436_v17, 7  ;;  %v9309_v17 = vld [vmem:[%s9817_s8 + $0xa4] ss:$8 sps:$4 sm:$0xff]  }
 0x1e7   : > { %v2345_v5 = vadd.f32 %v2344_v15, %v2275_v27  ;;  %v9277_v27 = vld [vmem:[%s9817_s8] ss:$8 sps:$4 sm:$0xff]  }
 0x1e9   : > { %2692 = vmatpush1.bf16.msra.mxu0 %v9274_v19  ;;  %v2455_v19 = vrot.slane %v2437_v14, 7  ;;  %v9391_v14 = vld [vmem:[%s9827_s19 + $0x160] ss:$8 sps:$4 sm:$0xff]  }
 0x1ea   : > { %2874 = vmatprep.subr.bf16.mxu0 %v9279_v20 }
 0x2ae   : > { %v2207_v29 = vpop.f32.mrb[0].mxu1 }
 0x2af   : > { %v2246_v25 = vadd.f32 %v2239_v24, %v2207_v29  ;;  %v2209_v26 = vpop.f32.mrb[1].mxu1  ;;  %v9282_v29 = vld [vmem:[%s9817_s8 + $0x14] ss:$8 sps:$4 sm:$0xff]  }
 0x2b0   : > { %v2247_v33 = vadd.f32 %v2243_v28, %v2209_v26  ;;  %v2211_v34 = vpop.f32.mrb[2].mxu1  ;;  %v2440_v26 = vld [vmem:[#allocation2 + $0x40] sm:$0x80] }
 0x2b1   : > { %v2254_v35 = vmax.f32 %v2246_v25, 0.0  ;;  %v2248_v36 = vadd.f32 %v2239_v24, %v2211_v34  ;;  %v2213_v37 = vpop.f32.mrb[3].mxu1  ;;  %v2441_v25 = vld [vmem:[#allocation2 + $0x48] sm:$0x80] }
 0x2b2   : > { %v2255_v38 = vmax.f32 %v2247_v33, 0.0  ;;  %v2249_v60 = vadd.f32 %v2243_v28, %v2213_v37  ;;  %v2372_v33 = vld [vmem:[#allocation2 + $0x18] sm:$0xc0] }
 0x2b3   : > { %v2347_v39 = vadd.f32 %v2329_v30, %v2254_v35  ;;  %v2256_v41 = vmax.f32 %v2248_v36, 0.0  ;;  %v2461_v35 = vrot.slane %v2441_v25, 7  ;;  %v9285_v36 = vld [vmem:[%s9817_s8 + $0x24] ss:$8 sps:$4 sm:$0xff]   ;;  %v9313_v25 = vld [vmem:[%s9817_s8 + $0xc0] ss:$8 sps:$4 sm:$0xff]  }
 0x2b4   : > { %v2348_v42 = vadd.f32 %v2331_v56, %v2255_v38  ;;  %v2257_v32 = vmax.f32 %v2249_v60, 0.0  ;;  %v9280_v56 = vld [vmem:[%s9817_s8 + $0x10] ss:$8 sps:$4 sm:$0xff]   ;;  %v2458_v60 = vrot.slane %v2440_v26, 7  ;;  %v9318_v26 = vld [vmem:[%s9817_s8 + $0xd4] ss:$8 sps:$4 sm:$0xff]  }
 0x2b5   : > { %v2349_v44 = vadd.f32 %v2333_v40, %v2256_v41  ;;  %v2355_v47 = vmax.f32 %v2347_v39, 0.0  ;;  %v2391_v41 = vrot.slane %v2372_v33, 6  ;;  %v9316_v33 = vld [vmem:[%s9817_s8 + $0xd0] ss:$8 sps:$4 sm:$0xff]  }
 0x2b6   : > { %v2350_v45 = vadd.f32 %v2335_v43, %v2257_v32  ;;  %v2217_v46 = vpop.f32.mrb[4].mxu1  ;;  %v2356_v52 = vmax.f32 %v2348_v42, 0.0  ;;  %v9283_v43 = vld [vmem:[%s9817_s8 + $0x20] ss:$8 sps:$4 sm:$0xff]  }
 0x2b7   : > { %v2357_v48 = vmax.f32 %v2349_v44, 0.0  ;;  %v2250_v49 = vadd.f32 %v2239_v24, %v2217_v46  ;;  %v2219_v50 = vpop.f32.mrb[5].mxu1  ;;  %v9288_v44 = vld [vmem:[%s9817_s8 + $0x34] ss:$8 sps:$4 sm:$0xff]  }
 0x2b8   : > { %v2358_v53 = vmax.f32 %v2350_v45, 0.0  ;;  %v2251_v54 = vadd.f32 %v2243_v28, %v2219_v50  ;;  %v2221_v55 = vpop.f32.mrb[6].mxu1  ;;  %v9378_v50 = vld [vmem:[%s9827_s19 + $0x114] ss:$8 sps:$4 sm:$0xff]  }
 0x2b9   : > { %v10198_v58 = vpack.c.bf16 %v2357_v48, %v2355_v47  ;;  %v2258_v59 = vmax.f32 %v2250_v49, 0.0  ;;  %v2252_v62 = vadd.f32 %v2239_v24, %v2221_v55  ;;  %v2223_v0 = vpop.f32.mrb[7].mxu1  ;;  %v9373_v47 = vld [vmem:[%s9827_s19 + $0x100] ss:$8 sps:$4 sm:$0xff]   ;;  %v9375_v48 = vld [vmem:[%s9827_s19 + $0x104] ss:$8 sps:$4 sm:$0xff]  }
 0x2ba   : > { %v10200_v3 = vpack.c.bf16 %v2358_v53, %v2356_v52  ;;  %v2259_v2 = vmax.f32 %v2251_v54, 0.0  ;;  %v2253_v4 = vadd.f32 %v2243_v28, %v2223_v0  ;;  %v9286_v49 = vld [vmem:[%s9817_s8 + $0x30] ss:$8 sps:$4 sm:$0xff]   ;;  %3510 = vmatprep.subr.bf16.mxu1 %v9375_v48  ;;  %v9381_v53 = vld [vmem:[%s9827_s19 + $0x124] ss:$8 sps:$4 sm:$0xff]  }
 0x2bb   : > { %2367 = vst [vmem:[#allocation2 + $0x20] sm:$0xff] %v10198_v58  ;;  %v2260_v6 = vmax.f32 %v2252_v62, 0.0  ;;  %v2351_v7 = vadd.f32 %v2339_v51, %v2258_v59  ;;  %v9291_v51 = vld [vmem:[%s9817_s8 + $0x44] ss:$8 sps:$4 sm:$0xff]   ;;  %3511 = vmatpush1.bf16.msra.mxu1 %v9373_v47  ;;  %v9376_v52 = vld [vmem:[%s9827_s19 + $0x110] ss:$8 sps:$4 sm:$0xff]  }
 0x2bc   : > { %2368 = vst [vmem:[#allocation2 + $0x28] sm:$0xff] %v10200_v3  ;;  %v2261_v8 = vmax.f32 %v2253_v4, 0.0  ;;  %v2352_v31 = vadd.f32 %v2341_v57, %v2259_v2  ;;  %3512 = vmatprep.subr.bf16.mxu1 %v9378_v50  ;;  %v9289_v54 = vld [vmem:[%s9817_s8 + $0x40] ss:$8 sps:$4 sm:$0xff]   ;;  %v9294_v55 = vld [vmem:[%s9817_s8 + $0x54] ss:$8 sps:$4 sm:$0xff]  }
 0x2bd   : > { %v2353_v63 = vadd.f32 %v2343_v1, %v2260_v6  ;;  %v2359_v9 = vmax.f32 %v2351_v7, 0.0  ;;  %v9379_v57 = vld [vmem:[%s9827_s19 + $0x120] ss:$8 sps:$4 sm:$0xff]   ;;  %v9384_v59 = vld [vmem:[%s9827_s19 + $0x134] ss:$8 sps:$4 sm:$0xff]  }
 0x2be   : > { %v2354_v61 = vadd.f32 %v2345_v5, %v2261_v8  ;;  %v2360_v13 = vmax.f32 %v2352_v31, 0.0  ;;  %v9292_v62 = vld [vmem:[%s9817_s8 + $0x50] ss:$8 sps:$4 sm:$0xff]   ;;  %v9297_v0 = vld [vmem:[%s9817_s8 + $0x64] ss:$8 sps:$4 sm:$0xff]  }
 0x2bf   : > { %v2361_v12 = vmax.f32 %v2353_v63, 0.0  ;;  %3513 = vmatpush1.bf16.msra.mxu1 %v9376_v52  ;;  %v9382_v1 = vld [vmem:[%s9827_s19 + $0x130] ss:$8 sps:$4 sm:$0xff]   ;;  %v9387_v2 = vld [vmem:[%s9827_s19 + $0x144] ss:$8 sps:$4 sm:$0xff]  }
 0x2c0   : > { %v2362_v16 = vmax.f32 %v2354_v61, 0.0  ;;  %3514 = vmatprep.subr.bf16.mxu1 %v9381_v53  ;;  %v9295_v4 = vld [vmem:[%s9817_s8 + $0x60] ss:$8 sps:$4 sm:$0xff]   ;;  %v9300_v5 = vld [vmem:[%s9817_s8 + $0x74] ss:$8 sps:$4 sm:$0xff]  }
 0x2c1   : > { %v10204_v18 = vpack.c.bf16 %v2361_v12, %v2359_v9  ;;  %v9385_v6 = vld [vmem:[%s9827_s19 + $0x140] ss:$8 sps:$4 sm:$0xff]   ;;  %v9390_v7 = vld [vmem:[%s9827_s19 + $0x154] ss:$8 sps:$4 sm:$0xff]   ;;  %v9298_v8 = vld [vmem:[%s9817_s8 + $0x70] ss:$8 sps:$4 sm:$0xff]  }
 0x2c2   : > { %v10206_v15 = vpack.c.bf16 %v2362_v16, %v2360_v13  ;;  %v2438_v20 = vld [vmem:[#allocation2 + $0x20] sm:$0x7f]  ;;  %v9388_v63 = vld [vmem:[%s9827_s19 + $0x150] ss:$8 sps:$4 sm:$0xff]   ;;  %v9306_v12 = vld [vmem:[%s9817_s8 + $0x94] ss:$8 sps:$4 sm:$0xff]  }
 0x2c3   : > { %2369 = vst [vmem:[#allocation2 + $0x50] sm:$0xff] %v10204_v18  ;;  %v2439_v21 = vld [vmem:[#allocation2 + $0x28] sm:$0x7f]  ;;  %v2453_v23 = vrot.slane %v2438_v20, 7  ;;  %3515 = vmatpush1.bf16.msra.mxu1 %v9379_v57  ;;  %v9396_v13 = vld [vmem:[%s9827_s19 + $0x174] ss:$8 sps:$4 sm:$0xff]  }
 0x2c4   : > { %2370 = vst [vmem:[#allocation2 + $0x58] sm:$0xff] %v10206_v15  ;;  %v2456_v24 = vrot.slane %v2439_v21, 7  ;;  %v2374_v34 = vld [vmem:[#allocation2 + $0x28] sm:$0x3f]  ;;  %3516 = vmatprep.subr.bf16.mxu1 %v9384_v59  ;;  %v9304_v16 = vld [vmem:[%s9817_s8 + $0x90] ss:$8 sps:$4 sm:$0xff]  }
 0x2c5   : > { %v2454_v30 = vsel %vm1110_vm2, %v2452_v22, %v2453_v23  ;;  %v2392_v42 = vrot.slane %v2374_v34, 6  ;;  %v9303_v31 = vld [vmem:[%s9817_s8 + $0x84] ss:$8 sps:$4 sm:$0xff]   ;;  %v9301_v9 = vld [vmem:[%s9817_s8 + $0x80] ss:$8 sps:$4 sm:$0xff]  }
 0x2c6   : > { %v2457_v28 = vsel %vm1110_vm2, %v2455_v19, %v2456_v24  ;;  %v9393_v61 = vld [vmem:[%s9827_s19 + $0x164] ss:$8 sps:$4 sm:$0xff]   ;;  %v9394_v19 = vld [vmem:[%s9827_s19 + $0x170] ss:$8 sps:$4 sm:$0xff]   ;;  %v9307_v21 = vld [vmem:[%s9817_s8 + $0xa0] ss:$8 sps:$4 sm:$0xff]  }
 0x2c7   : > { %2693 = vmatprep.mubr.bf16.mxu0 %v2457_v28  ;;  %v2393_v46 = vsel %vm2387_vm3, %v2391_v41, %v2392_v42  ;;  %3517 = vmatpush1.bf16.msra.mxu1 %v9382_v1  ;;  %v9399_v20 = vld [vmem:[%s9827_s19 + $0x184] ss:$8 sps:$4 sm:$0xff]   ;;  %v9312_v22 = vld [vmem:[%s9817_s8 + $0xb4] ss:$8 sps:$4 sm:$0xff]   ;;  %v9397_v23 = vld [vmem:[%s9827_s19 + $0x180] ss:$8 sps:$4 sm:$0xff]  }
 0x2c8   : > { %2694 = vmatmul.mubr.bf16.vlgmr.msra.gmra.mrb[16].mxu0 %v2454_v30  ;;  %3518 = vmatprep.subr.bf16.mxu1 %v9387_v2  ;;  %v9402_v24 = vld [vmem:[%s9827_s19 + $0x194] ss:$8 sps:$4 sm:$0xff]   ;;  %v9315_v28 = vld [vmem:[%s9817_s8 + $0xc4] ss:$8 sps:$4 sm:$0xff]   ;;  %v9337_v1 = vld [vmem:[%s9817_s8 + $0x240] ss:$8 sps:$4 sm:$0xff]  }
 0x2c9   : > { %2875 = vmatpush1.bf16.msra.mxu0 %v9277_v27  ;;  %v9310_v27 = vld [vmem:[%s9817_s8 + $0xb0] ss:$8 sps:$4 sm:$0xff]   ;;  %v9405_v30 = vld [vmem:[%s9827_s19 + $0x1a4] ss:$8 sps:$4 sm:$0xff]   ;;  %v9336_v57 = vld [vmem:[%s9817_s8 + $0x234] ss:$8 sps:$4 sm:$0xff]  }
 0x2ca   : > { %2876 = vmatprep.subr.bf16.mxu0 %v9282_v29  ;;  %v2442_v37 = vld [vmem:[#allocation2 + $0x50] sm:$0x7f]  ;;  %v9321_v34 = vld [vmem:[%s9817_s8 + $0xe4] ss:$8 sps:$4 sm:$0xff]  }
 0x2cb   : > { %v2443_v38 = vld [vmem:[#allocation2 + $0x58] sm:$0x7f]  ;;  %v2459_v39 = vrot.slane %v2442_v37, 7  ;;  %3519 = vmatpush1.bf16.msra.mxu1 %v9385_v6  ;;  %v2371_v37 = vld [vmem:[#allocation2 + $0x10] sm:$0xc0] }
 0x2cc   : > { %v2462_v40 = vrot.slane %v2443_v38, 7  ;;  %3520 = vmatprep.subr.bf16.mxu1 %v9390_v7  ;;  %v9400_v29 = vld [vmem:[%s9827_s19 + $0x190] ss:$8 sps:$4 sm:$0xff]   ;;  %v2373_v38 = vld [vmem:[#allocation2 + $0x20] sm:$0x3f]  ;;  %v2388_v42 = vrot.slane %v2371_v37, 6 }
 0x2cd   : > { %2877 = vmatpush1.bf16.msra.mxu0 %v9280_v56  ;;  %v2460_v45 = vsel %vm1110_vm2, %v2458_v60, %v2459_v39  ;;  %v9403_v56 = vld [vmem:[%s9827_s19 + $0x1a0] ss:$8 sps:$4 sm:$0xff]   ;;  %v9322_v60 = vld [vmem:[%s9817_s8 + $0xf0] ss:$8 sps:$4 sm:$0xff]   ;;  %v2376_v39 = vld [vmem:[#allocation2 + $0x48] sm:$0xc0] }
 0x2ce   : > { %v2463_v32 = vsel %vm1110_vm2, %v2461_v35, %v2462_v40  ;;  %2878 = vmatprep.subr.bf16.mxu0 %v9285_v36  ;;  %v9319_v35 = vld [vmem:[%s9817_s8 + $0xe0] ss:$8 sps:$4 sm:$0xff]   ;;  %v9324_v36 = vld [vmem:[%s9817_s8 + $0xf4] ss:$8 sps:$4 sm:$0xff]   ;;  %v9327_v41 = vld [vmem:[%s9817_s8 + $0x204] ss:$8 sps:$4 sm:$0xff]  }
 0x2cf   : > { %2703 = vmatprep.mubr.bf16.mxu0 %v2463_v32  ;;  %3521 = vmatpush1.bf16.msra.mxu1 %v9388_v63  ;;  %v2378_v40 = vld [vmem:[#allocation2 + $0x58] sm:$0x3f]  ;;  %v2397_v32 = vrot.slane %v2376_v39, 6  ;;  %v2377_v50 = vld [vmem:[#allocation2 + $0x50] sm:$0x3f] }
 0x2d0   : > { %2704 = vmatmul.mubr.bf16.gmra.mrb[20].mxu0 %v2460_v45  ;;  %3522 = vmatprep.subr.bf16.mxu1 %v9393_v61  ;;  %v9325_v45 = vld [vmem:[%s9817_s8 + $0x200] ss:$8 sps:$4 sm:$0xff]   ;;  %v9333_v52 = vld [vmem:[%s9817_s8 + $0x224] ss:$8 sps:$4 sm:$0xff]   ;;  %v9342_v2 = vld [vmem:[%s9817_s8 + $0x254] ss:$8 sps:$4 sm:$0xff]  }
 0x2d1   : > { %2879 = vmatpush1.bf16.msra.mxu0 %v9283_v43  ;;  %2906 = vmatprep.mubr.bf16.mxu0 %v2393_v46  ;;  %v2389_v43 = vrot.slane %v2373_v38, 6  ;;  %v9330_v46 = vld [vmem:[%s9817_s8 + $0x214] ss:$8 sps:$4 sm:$0xff]   ;;  %v9343_v6 = vld [vmem:[%s9817_s8 + $0x260] ss:$8 sps:$4 sm:$0xff]  }
 0x2d2   : > { %2880 = vmatprep.subr.bf16.mxu0 %v9288_v44  ;;  %v2398_v44 = vrot.slane %v2378_v40, 6  ;;  %v9346_v7 = vld [vmem:[%s9817_s8 + $0x270] ss:$8 sps:$4 sm:$0xff]   ;;  %v9354_v63 = vld [vmem:[%s9817_s8 + $0x294] ss:$8 sps:$4 sm:$0xff]  }
 0x2d3   : > { %3523 = vmatpush1.bf16.msra.mxu1 %v9391_v14  ;;  %v2390_v47 = vsel %vm2387_vm3, %v2388_v42, %v2389_v43  ;;  %v9352_v61 = vld [vmem:[%s9817_s8 + $0x290] ss:$8 sps:$4 sm:$0xff]   ;;  %v9360_v14 = vld [vmem:[%s9817_s8 + $0x2b4] ss:$8 sps:$4 sm:$0xff]  }
 0x2d4   : > { %3524 = vmatprep.subr.bf16.mxu1 %v9396_v13  ;;  %v2399_v48 = vsel %vm2387_vm3, %v2397_v32, %v2398_v44  ;;  %v9358_v13 = vld [vmem:[%s9817_s8 + $0x2b0] ss:$8 sps:$4 sm:$0xff]  }
 0x2d5   : > { %2881 = vmatpush1.bf16.msra.mxu0 %v9286_v49  ;;  %v2375_v49 = vld [vmem:[#allocation2 + $0x40] sm:$0xc0] }
 0x2d6   : > { %2882 = vmatprep.subr.bf16.mxu0 %v9291_v51  ;;  %v9328_v51 = vld [vmem:[%s9817_s8 + $0x210] ss:$8 sps:$4 sm:$0xff]   ;;  %v2394_v53 = vrot.slane %v2375_v49, 6 }
 0x2d7   : > { %3525 = vmatpush1.bf16.msra.mxu1 %v9394_v19  ;;  %v9366_v19 = vld [vmem:[%s9817_s8 + $0x2d4] ss:$8 sps:$4 sm:$0xff]  }
 0x2d8   : > { %3526 = vmatprep.subr.bf16.mxu1 %v9399_v20  ;;  %v9364_v20 = vld [vmem:[%s9817_s8 + $0x2d0] ss:$8 sps:$4 sm:$0xff]  }
 0x2d9   : > { %2883 = vmatpush1.bf16.msra.mxu0 %v9289_v54  ;;  %v2395_v54 = vrot.slane %v2377_v50, 6 }
 0x2da   : > { %2884 = vmatprep.subr.bf16.mxu0 %v9294_v55  ;;  %v9331_v55 = vld [vmem:[%s9817_s8 + $0x220] ss:$8 sps:$4 sm:$0xff]  }
 0x2db   : > { %3527 = vmatpush1.bf16.msra.mxu1 %v9397_v23  ;;  %v2396_v59 = vsel %vm2387_vm3, %v2394_v53, %v2395_v54  ;;  %v9372_v23 = vld [vmem:[%s9817_s8 + $0x2f4] ss:$8 sps:$4 sm:$0xff]  }
 0x2dc   : > { %3528 = vmatprep.subr.bf16.mxu1 %v9402_v24  ;;  %v9370_v24 = vld [vmem:[%s9817_s8 + $0x2f0] ss:$8 sps:$4 sm:$0xff]  }
 0x2dd   : > { %2885 = vmatpush1.bf16.msra.mxu0 %v9292_v62  ;;  %v9334_v62 = vld [vmem:[%s9817_s8 + $0x230] ss:$8 sps:$4 sm:$0xff]  }
 0x2de   : > { %2886 = vmatprep.subr.bf16.mxu0 %v9297_v0  ;;  %v9339_v0 = vld [vmem:[%s9817_s8 + $0x244] ss:$8 sps:$4 sm:$0xff]  }
 0x2df   : > { %3529 = vmatpush1.bf16.msra.mxu1 %v9400_v29  ;;  %v9411_v29 = vld [vmem:[%s9827_s19 + $0x1c4] ss:$8 sps:$4 sm:$0xff]  }
 0x2e0   : > { %3530 = vmatprep.subr.bf16.mxu1 %v9405_v30  ;;  %v9409_v30 = vld [vmem:[%s9827_s19 + $0x1c0] ss:$8 sps:$4 sm:$0xff]  }
 0x2e1   : > { %2887 = vmatpush1.bf16.msra.mxu0 %v9295_v4  ;;  %v9340_v4 = vld [vmem:[%s9817_s8 + $0x250] ss:$8 sps:$4 sm:$0xff]  }
 0x2e2   : > { %2888 = vmatprep.subr.bf16.mxu0 %v9300_v5  ;;  %v9345_v5 = vld [vmem:[%s9817_s8 + $0x264] ss:$8 sps:$4 sm:$0xff]  }
 0x2e3   : > { %3531 = vmatpush1.bf16.msra.mxu1 %v9403_v56  ;;  %v9418_v56 = vld [vmem:[%s9827_s19 + $0x1f0] ss:$8 sps:$4 sm:$0xff]  }
 0x2e5   : > { %2889 = vmatpush1.bf16.msra.mxu0 %v9298_v8  ;;  %v9351_v8 = vld [vmem:[%s9817_s8 + $0x284] ss:$8 sps:$4 sm:$0xff]  }
 0x2e6   : > { %2890 = vmatprep.subr.bf16.mxu0 %v9303_v31  ;;  %v9349_v31 = vld [vmem:[%s9817_s8 + $0x280] ss:$8 sps:$4 sm:$0xff]  }
 0x2e9   : > { %2891 = vmatpush1.bf16.msra.mxu0 %v9301_v9  ;;  %v9357_v9 = vld [vmem:[%s9817_s8 + $0x2a4] ss:$8 sps:$4 sm:$0xff]  }
 0x2ea   : > { %2892 = vmatprep.subr.bf16.mxu0 %v9306_v12  ;;  %v9355_v12 = vld [vmem:[%s9817_s8 + $0x2a0] ss:$8 sps:$4 sm:$0xff]  }
 0x2ed   : > { %2893 = vmatpush1.bf16.msra.mxu0 %v9304_v16  ;;  %v9363_v16 = vld [vmem:[%s9817_s8 + $0x2c4] ss:$8 sps:$4 sm:$0xff]  }
 0x2ee   : > { %2894 = vmatprep.subr.bf16.mxu0 %v9309_v17  ;;  %v9361_v17 = vld [vmem:[%s9817_s8 + $0x2c0] ss:$8 sps:$4 sm:$0xff]  }
 0x2f1   : > { %2895 = vmatpush1.bf16.msra.mxu0 %v9307_v21  ;;  %v9369_v21 = vld [vmem:[%s9817_s8 + $0x2e4] ss:$8 sps:$4 sm:$0xff]  }
 0x2f2   : > { %2896 = vmatprep.subr.bf16.mxu0 %v9312_v22  ;;  %v9367_v22 = vld [vmem:[%s9817_s8 + $0x2e0] ss:$8 sps:$4 sm:$0xff]  }
 0x2f5   : > { %2897 = vmatpush1.bf16.msra.mxu0 %v9310_v27  ;;  %v9408_v27 = vld [vmem:[%s9827_s19 + $0x1b4] ss:$8 sps:$4 sm:$0xff]  }
 0x2f6   : > { %2898 = vmatprep.subr.bf16.mxu0 %v9315_v28  ;;  %v9406_v28 = vld [vmem:[%s9827_s19 + $0x1b0] ss:$8 sps:$4 sm:$0xff]   ;;  %3532 = vmatprep.subr.bf16.mxu1 %v9408_v27 }
 0x2f7   : > { %3533 = vmatpush1.bf16.msra.mxu1 %v9406_v28 }
 0x2f8   : > { %3534 = vmatprep.subr.bf16.mxu1 %v9411_v29 }
 0x2f9   : > { %2899 = vmatpush1.bf16.msra.mxu0 %v9313_v25  ;;  %v9414_v25 = vld [vmem:[%s9827_s19 + $0x1d4] ss:$8 sps:$4 sm:$0xff]  }
 0x2fa   : > { %2900 = vmatprep.subr.bf16.mxu0 %v9318_v26  ;;  %v9412_v26 = vld [vmem:[%s9827_s19 + $0x1d0] ss:$8 sps:$4 sm:$0xff]  }
 0x2fb   : > { %3535 = vmatpush1.bf16.msra.mxu1 %v9409_v30 }
 0x2fc   : > { %3536 = vmatprep.subr.bf16.mxu1 %v9414_v25 }
 0x2fd   : > { %2901 = vmatpush1.bf16.msra.mxu0 %v9316_v33  ;;  %v9423_v33 = vld [vmem:[%s9827_s19 + $0x4] ss:$8 sps:$4 sm:$0xff]  }
 0x2fe   : > { %2902 = vmatprep.subr.bf16.mxu0 %v9321_v34  ;;  %v3185_v34 = vld [vmem:[%s9822_s14] sm:$0x3] }
 0x2ff   : > { %3537 = vmatpush1.bf16.msra.mxu1 %v9412_v26 }
 0x301   : > { %2903 = vmatpush1.bf16.msra.mxu0 %v9319_v35  ;;  %v3190_v35 = vrot.slane %v3185_v34, %v10037_v10 }
 0x302   : > { %2904 = vmatprep.subr.bf16.mxu0 %v9324_v36  ;;  %v3194_v36 = vrot.slane %v3185_v34, %v10039_v11  ;;  %v9519_v34 = vld [vmem:[%s9837_s30 + $0xc0] sm:$0xff]  }
 0x305   : > { %2905 = vmatpush1.bf16.msra.mxu0 %v9322_v60 }
 0x306   : > { %3124 = vmatprep.subr.bf16.mxu0 %v9327_v41 }
 0x308   : > { %2907 = vmatmul.mubr.bf16.vlgmr.msra.gmra.mrb[16].mxu0 %v2390_v47 }
 0x309   : > { %2916 = vmatprep.mubr.bf16.mxu0 %v2399_v48  ;;  %3125 = vmatpush1.bf16.msra.mxu0 %v9325_v45 }
 0x30a   : > { %3126 = vmatprep.subr.bf16.mxu0 %v9330_v46 }
 0x30d   : > { %3127 = vmatpush1.bf16.msra.mxu0 %v9328_v51 }
 0x30e   : > { %3128 = vmatprep.subr.bf16.mxu0 %v9333_v52 }
 0x310   : > { %2917 = vmatmul.mubr.bf16.gmra.mrb[20].mxu0 %v2396_v59 }
 0x311   : > { %3129 = vmatpush1.bf16.msra.mxu0 %v9331_v55  ;;  %3156 = vmatprep.mubr.bf16.mxu0 %v10200_v3  ;;  %v9348_v3 = vld [vmem:[%s9817_s8 + $0x274] ss:$8 sps:$4 sm:$0xff]  }
 0x312   : > { %3130 = vmatprep.subr.bf16.mxu0 %v9336_v57 }
 0x315   : > { %3131 = vmatpush1.bf16.msra.mxu0 %v9334_v62 }
 0x316   : > { %3132 = vmatprep.subr.bf16.mxu0 %v9339_v0  ;;  %v3286_v0 = vld [vmem:[#allocation3 + $0x18] sm:$0x80] }
 0x319   : > { %3133 = vmatpush1.bf16.msra.mxu0 %v9337_v1 }
 0x31a   : > { %3134 = vmatprep.subr.bf16.mxu0 %v9342_v2 }
 0x31d   : > { %3135 = vmatpush1.bf16.msra.mxu0 %v9340_v4  ;;  %v3285_v4 = vld [vmem:[#allocation3 + $0x10] sm:$0x80] }
 0x31e   : > { %3136 = vmatprep.subr.bf16.mxu0 %v9345_v5 }
 0x321   : > { %3137 = vmatpush1.bf16.msra.mxu0 %v9343_v6 }
 0x322   : > { %3138 = vmatprep.subr.bf16.mxu0 %v9348_v3  ;;  %v3304_v3 = vrot.slane %v3286_v0, 7  ;;  %v9465_v0 = vld [vmem:[%s9827_s19 + $0xe4] ss:$8 sps:$4 sm:$0xff]  }
 0x325   : > { %3139 = vmatpush1.bf16.msra.mxu0 %v9346_v7 }
 0x326   : > { %3140 = vmatprep.subr.bf16.mxu0 %v9351_v8 }
 0x329   : > { %3141 = vmatpush1.bf16.msra.mxu0 %v9349_v31  ;;  %v3301_v31 = vrot.slane %v3285_v4, 7  ;;  %v3221_v4 = vld [vmem:[#allocation3 + $0x10] sm:$0xc0] }
 0x32a   : > { %3142 = vmatprep.subr.bf16.mxu0 %v9354_v63 }
 0x32d   : > { %3143 = vmatpush1.bf16.msra.mxu0 %v9352_v61 }
 0x32e   : > { %3144 = vmatprep.subr.bf16.mxu0 %v9357_v9  ;;  %v9421_v9 = vld [vmem:[%s9827_s19] ss:$8 sps:$4 sm:$0xff]  }
 0x331   : > { %3145 = vmatpush1.bf16.msra.mxu0 %v9355_v12 }
 0x332   : > { %3146 = vmatprep.subr.bf16.mxu0 %v9360_v14  ;;  %v9426_v14 = vld [vmem:[%s9827_s19 + $0x14] ss:$8 sps:$4 sm:$0xff]  }
 0x335   : > { %3147 = vmatpush1.bf16.msra.mxu0 %v9358_v13 }
 0x336   : > { %3148 = vmatprep.subr.bf16.mxu0 %v9363_v16  ;;  %v3290_v16 = vld [vmem:[#allocation3 + $0x48] sm:$0x80] }
 0x339   : > { %3149 = vmatpush1.bf16.msra.mxu0 %v9361_v17  ;;  %v3289_v17 = vld [vmem:[#allocation3 + $0x40] sm:$0x80] }
 0x33a   : > { %3150 = vmatprep.subr.bf16.mxu0 %v9366_v19  ;;  %v9424_v19 = vld [vmem:[%s9827_s19 + $0x10] ss:$8 sps:$4 sm:$0xff]   ;;  %v3307_v28 = vrot.slane %v3289_v17, 7 }
 0x33d   : > { %3151 = vmatpush1.bf16.msra.mxu0 %v9364_v20  ;;  %v3222_v20 = vld [vmem:[#allocation3 + $0x18] sm:$0xc0] }
 0x33e   : > { %3152 = vmatprep.subr.bf16.mxu0 %v9369_v21  ;;  %v3240_v25 = vrot.slane %v3222_v20, 6  ;;  %v3225_v20 = vld [vmem:[#allocation3 + $0x40] sm:$0xc0] }
 0x341   : > { %3153 = vmatpush1.bf16.msra.mxu0 %v9367_v22  ;;  %v3310_v22 = vrot.slane %v3290_v16, 7  ;;  %v9474_v16 = vld [vmem:[%s9827_s19 + $0x214] ss:$8 sps:$4 sm:$0xff]  }
 0x342   : > { %3154 = vmatprep.subr.bf16.mxu0 %v9372_v23  ;;  %v9429_v23 = vld [vmem:[%s9827_s19 + $0x24] ss:$8 sps:$4 sm:$0xff]  }
 0x345   : > { %3155 = vmatpush1.bf16.msra.mxu0 %v9370_v24 }
 0x346   : > { %8303 = vmatprep.subr.bf16.mxu0 %v9519_v34  ;;  %v9490_v34 = vld [vmem:[%s9827_s19 + $0x270] ss:$8 sps:$4 sm:$0xff]  }
 0x348   : > { %3157 = vmatmul.mubr.bf16.vlgmr.msra.gmra.mrb[16].mxu0 %v10198_v58  ;;  %v9417_v58 = vld [vmem:[%s9827_s19 + $0x1e4] ss:$8 sps:$4 sm:$0xff]  }
 0x349   : > { %3166 = vmatprep.mubr.bf16.mxu0 %v10206_v15  ;;  %v9415_v15 = vld [vmem:[%s9827_s19 + $0x1e0] ss:$8 sps:$4 sm:$0xff]   ;;  %3538 = vmatprep.subr.bf16.mxu1 %v9417_v58 }
 0x34a   : > { %3539 = vmatpush1.bf16.msra.mxu1 %v9415_v15  ;;  %v9427_v58 = vld [vmem:[%s9827_s19 + $0x20] ss:$8 sps:$4 sm:$0xff]  }
 0x350   : > { %3167 = vmatmul.mubr.bf16.gmra.mrb[20].mxu0 %v10204_v18  ;;  %v9420_v18 = vld [vmem:[%s9827_s19 + $0x1f4] ss:$8 sps:$4 sm:$0xff]  }
 0x351   : > { %3540 = vmatprep.subr.bf16.mxu1 %v9420_v18  ;;  %v9432_v18 = vld [vmem:[%s9827_s19 + $0x34] ss:$8 sps:$4 sm:$0xff]  }
 0x352   : > { %3541 = vmatpush1.bf16.msra.mxu1 %v9418_v56 }
 0x353   : > { %3723 = vmatprep.subr.bf16.mxu1 %v9423_v33 }
 0x41b   : > { %v3158_v37 = vpop.f32.mrb[16].mxu0 }
 0x41c   : > { %v3197_v38 = vadd.f32 %v3190_v35, %v3158_v37  ;;  %v3160_v60 = vpop.f32.mrb[17].mxu0  ;;  %v9435_v37 = vld [vmem:[%s9827_s19 + $0x44] ss:$8 sps:$4 sm:$0xff]  }
 0x41d   : > { %v3198_v39 = vadd.f32 %v3194_v36, %v3160_v60  ;;  %v3162_v40 = vpop.f32.mrb[18].mxu0  ;;  %v9524_v60 = vld [vmem:[%s9837_s30 + $0x88] sm:$0xff]  }
 0x41e   : > { %v3199_v41 = vadd.f32 %v3190_v35, %v3162_v40  ;;  %v3164_v42 = vpop.f32.mrb[19].mxu0  ;;  %v3205_v32 = vmax.f32 %v3197_v38, 0.0  ;;  %v9523_v38 = vld [vmem:[%s9837_s30 + $0xc8] sm:$0xff]   ;;  %v9438_v40 = vld [vmem:[%s9827_s19 + $0x54] ss:$8 sps:$4 sm:$0xff]  }
 0x41f   : > { %v3200_v43 = vadd.f32 %v3194_v36, %v3164_v42  ;;  %v3206_v45 = vmax.f32 %v3198_v39, 0.0  ;;  %v9433_v39 = vld [vmem:[%s9827_s19 + $0x40] ss:$8 sps:$4 sm:$0xff]   ;;  %v9441_v42 = vld [vmem:[%s9827_s19 + $0x64] ss:$8 sps:$4 sm:$0xff]  }
 0x420   : > { %v3207_v44 = vmax.f32 %v3199_v41, 0.0  ;;  %v9436_v41 = vld [vmem:[%s9827_s19 + $0x50] ss:$8 sps:$4 sm:$0xff]  }
 0x421   : > { %v3208_v46 = vmax.f32 %v3200_v43, 0.0  ;;  %v9439_v43 = vld [vmem:[%s9827_s19 + $0x60] ss:$8 sps:$4 sm:$0xff]  }
 0x422   : > { %v10321_v47 = vpack.c.bf16 %v3207_v44, %v3205_v32  ;;  %v9444_v32 = vld [vmem:[%s9827_s19 + $0x74] ss:$8 sps:$4 sm:$0xff]   ;;  %v9442_v44 = vld [vmem:[%s9827_s19 + $0x70] ss:$8 sps:$4 sm:$0xff]  }
 0x423   : > { %v10323_v48 = vpack.c.bf16 %v3208_v46, %v3206_v45  ;;  %v3168_v49 = vpop.f32.mrb[20].mxu0  ;;  %v9447_v45 = vld [vmem:[%s9827_s19 + $0x84] ss:$8 sps:$4 sm:$0xff]   ;;  %v9445_v46 = vld [vmem:[%s9827_s19 + $0x80] ss:$8 sps:$4 sm:$0xff]  }
 0x424   : > { %3217 = vst [vmem:[#allocation3 + $0x20] sm:$0xff] %v10321_v47  ;;  %v3201_v50 = vadd.f32 %v3190_v35, %v3168_v49  ;;  %v3170_v51 = vpop.f32.mrb[21].mxu0  ;;  %v9450_v49 = vld [vmem:[%s9827_s19 + $0x94] ss:$8 sps:$4 sm:$0xff]  }
 0x425   : > { %3218 = vst [vmem:[#allocation3 + $0x28] sm:$0xff] %v10323_v48  ;;  %v3202_v52 = vadd.f32 %v3194_v36, %v3170_v51  ;;  %v3172_v53 = vpop.f32.mrb[22].mxu0  ;;  %v9453_v51 = vld [vmem:[%s9827_s19 + $0xa4] ss:$8 sps:$4 sm:$0xff]  }
 0x426   : > { %v3203_v54 = vadd.f32 %v3190_v35, %v3172_v53  ;;  %v3174_v55 = vpop.f32.mrb[23].mxu0  ;;  %v3209_v59 = vmax.f32 %v3201_v50, 0.0  ;;  %v9430_v35 = vld [vmem:[%s9827_s19 + $0x30] ss:$8 sps:$4 sm:$0xff]   ;;  %v9456_v53 = vld [vmem:[%s9827_s19 + $0xb4] ss:$8 sps:$4 sm:$0xff]  }
 0x427   : > { %v3204_v57 = vadd.f32 %v3194_v36, %v3174_v55  ;;  %v3210_v1 = vmax.f32 %v3202_v52, 0.0  ;;  %v9520_v36 = vld [vmem:[%s9837_s30 + $0x80] sm:$0xff]   ;;  %v9448_v50 = vld [vmem:[%s9827_s19 + $0x90] ss:$8 sps:$4 sm:$0xff]  }
 0x428   : > { %v3211_v62 = vmax.f32 %v3203_v54, 0.0  ;;  %8304 = vmatpush3.bf16.msra.mxu0 %v9520_v36  ;;  %v9451_v52 = vld [vmem:[%s9827_s19 + $0xa0] ss:$8 sps:$4 sm:$0xff]   ;;  %v9454_v54 = vld [vmem:[%s9827_s19 + $0xb0] ss:$8 sps:$4 sm:$0xff]  }
 0x429   : > { %v3212_v2 = vmax.f32 %v3204_v57, 0.0  ;;  %8305 = vmatprep.subr.bf16.mxu0 %v9523_v38  ;;  %v9459_v55 = vld [vmem:[%s9827_s19 + $0xc4] ss:$8 sps:$4 sm:$0xff]   ;;  %v9457_v57 = vld [vmem:[%s9827_s19 + $0xc0] ss:$8 sps:$4 sm:$0xff]  }
 0x42a   : > { %v10327_v5 = vpack.c.bf16 %v3211_v62, %v3209_v59  ;;  %v9462_v59 = vld [vmem:[%s9827_s19 + $0xd4] ss:$8 sps:$4 sm:$0xff]   ;;  %v9460_v62 = vld [vmem:[%s9827_s19 + $0xd0] ss:$8 sps:$4 sm:$0xff]   ;;  %v9493_v36 = vld [vmem:[%s9827_s19 + $0x280] ss:$8 sps:$4 sm:$0xff]  }
 0x42b   : > { %v10329_v6 = vpack.c.bf16 %v3212_v2, %v3210_v1  ;;  %v3287_v7 = vld [vmem:[#allocation3 + $0x20] sm:$0x7f]  ;;  %v9468_v2 = vld [vmem:[%s9827_s19 + $0xf4] ss:$8 sps:$4 sm:$0xff]   ;;  %v9496_v38 = vld [vmem:[%s9827_s19 + $0x290] ss:$8 sps:$4 sm:$0xff]  }
 0x42c   : > { %3219 = vst [vmem:[#allocation3 + $0x50] sm:$0xff] %v10327_v5  ;;  %v3288_v8 = vld [vmem:[#allocation3 + $0x28] sm:$0x7f]  ;;  %v3302_v63 = vrot.slane %v3287_v7, 7  ;;  %8306 = vmatpush3.bf16.msra.mxu0 %v9524_v60  ;;  %v9466_v7 = vld [vmem:[%s9827_s19 + $0xf0] ss:$8 sps:$4 sm:$0xff]  }
 0x42d   : > { %3220 = vst [vmem:[#allocation3 + $0x58] sm:$0xff] %v10329_v6  ;;  %v3305_v61 = vrot.slane %v3288_v8, 7  ;;  %v3224_v21 = vld [vmem:[#allocation3 + $0x28] sm:$0x3f]  ;;  %v3226_v8 = vld [vmem:[#allocation3 + $0x48] sm:$0xc0] }
 0x42e   : > { %v3303_v13 = vsel %vm1110_vm2, %v3301_v31, %v3302_v63  ;;  %v3241_v26 = vrot.slane %v3224_v21, 6  ;;  %v9463_v1 = vld [vmem:[%s9827_s19 + $0xe0] ss:$8 sps:$4 sm:$0xff]   ;;  %v9471_v63 = vld [vmem:[%s9827_s19 + $0x204] ss:$8 sps:$4 sm:$0xff]  }
 0x42f   : > { %v3306_v12 = vsel %vm1110_vm2, %v3304_v3, %v3305_v61  ;;  %v3223_v3 = vld [vmem:[#allocation3 + $0x20] sm:$0x3f]  ;;  %v3237_v61 = vrot.slane %v3221_v4, 6  ;;  %v9531_v4 = vld [vmem:[%s9837_s30 + $0xd8] sm:$0xff]  }
 0x430   : > { %3542 = vmatprep.mubr.bf16.mxu1 %v3306_v12  ;;  %v3242_v33 = vsel %vm2387_vm3, %v3240_v25, %v3241_v26  ;;  %v3246_v12 = vrot.slane %v3226_v8, 6  ;;  %v9478_v25 = vld [vmem:[%s9827_s19 + $0x230] ss:$8 sps:$4 sm:$0xff]   ;;  %v9483_v26 = vld [vmem:[%s9827_s19 + $0x244] ss:$8 sps:$4 sm:$0xff]  }
 0x431   : > { %3543 = vmatmul.mubr.bf16.vlgmr.msra.gmra.mrb[8].mxu1 %v3303_v13  ;;  %v9469_v13 = vld [vmem:[%s9827_s19 + $0x200] ss:$8 sps:$4 sm:$0xff]   ;;  %v9501_v60 = vld [vmem:[%s9827_s19 + $0x2a4] ss:$8 sps:$4 sm:$0xff]   ;;  %v9542_v8 = vld [vmem:[%s9857_s27 + $0x30] sm:$0xff]  }
 0x432   : > { %3724 = vmatpush1.bf16.msra.mxu1 %v9421_v9  ;;  %v3238_v9 = vrot.slane %v3223_v3, 6  ;;  %v9532_v3 = vld [vmem:[%s9837_s30 + $0x98] sm:$0xff]  }
 0x433   : > { %3725 = vmatprep.subr.bf16.mxu1 %v9426_v14  ;;  %v3291_v24 = vld [vmem:[#allocation3 + $0x50] sm:$0x7f] }
 0x434   : > { %v3292_v27 = vld [vmem:[#allocation3 + $0x58] sm:$0x7f]  ;;  %v3308_v29 = vrot.slane %v3291_v24, 7  ;;  %v3239_v17 = vsel %vm2387_vm3, %v3237_v61, %v3238_v9  ;;  %v3227_v21 = vld [vmem:[#allocation3 + $0x50] sm:$0x3f]  ;;  %v3243_v24 = vrot.slane %v3225_v20, 6 }
 0x435   : > { %v3311_v30 = vrot.slane %v3292_v27, 7  ;;  %v3228_v31 = vld [vmem:[#allocation3 + $0x58] sm:$0x3f]  ;;  %v3244_v27 = vrot.slane %v3227_v21, 6  ;;  %v9549_v20 = vld [vmem:[%s9837_s30 + $0x40] sm:$0xff]  }
 0x436   : > { %3726 = vmatpush1.bf16.msra.mxu1 %v9424_v19  ;;  %v3309_v56 = vsel %vm1110_vm2, %v3307_v28, %v3308_v29  ;;  %v3247_v14 = vrot.slane %v3228_v31, 6  ;;  %v9475_v28 = vld [vmem:[%s9827_s19 + $0x220] ss:$8 sps:$4 sm:$0xff]   ;;  %v9480_v29 = vld [vmem:[%s9827_s19 + $0x234] ss:$8 sps:$4 sm:$0xff]  }
 0x437   : > { %v3312_v15 = vsel %vm1110_vm2, %v3310_v22, %v3311_v30  ;;  %3727 = vmatprep.subr.bf16.mxu1 %v9429_v23  ;;  %v9472_v22 = vld [vmem:[%s9827_s19 + $0x210] ss:$8 sps:$4 sm:$0xff]   ;;  %v9477_v23 = vld [vmem:[%s9827_s19 + $0x224] ss:$8 sps:$4 sm:$0xff]   ;;  %v3245_v30 = vsel %vm2387_vm3, %v3243_v24, %v3244_v27  ;;  %v4034_v21 = vld [vmem:[%s9832_s24] sm:$0x3] }
 0x438   : > { %3552 = vmatprep.mubr.bf16.mxu1 %v3312_v15  ;;  %v3248_v19 = vsel %vm2387_vm3, %v3246_v12, %v3247_v14  ;;  %v9486_v15 = vld [vmem:[%s9827_s19 + $0x254] ss:$8 sps:$4 sm:$0xff]   ;;  %v9535_v31 = vld [vmem:[%s9837_s30 + $0xe0] sm:$0xff]   ;;  %v9539_v12 = vld [vmem:[%s9837_s30 + $0xe8] sm:$0xff]  }
 0x439   : > { %3553 = vmatmul.mubr.bf16.gmra.mrb[12].mxu1 %v3309_v56  ;;  %v9489_v56 = vld [vmem:[%s9827_s19 + $0x264] ss:$8 sps:$4 sm:$0xff]   ;;  %v9545_v61 = vld [vmem:[%s9857_s27 + $0x78] sm:$0xff]  }
 0x43a   : > { %3728 = vmatpush1.bf16.msra.mxu1 %v9427_v58  ;;  %3755 = vmatprep.mubr.bf16.mxu1 %v3242_v33  ;;  %v9481_v58 = vld [vmem:[%s9827_s19 + $0x240] ss:$8 sps:$4 sm:$0xff]   ;;  %v9546_v9 = vld [vmem:[%s9857_s27 + $0x38] sm:$0xff]  }
 0x43b   : > { %3729 = vmatprep.subr.bf16.mxu1 %v9432_v18  ;;  %v9484_v18 = vld [vmem:[%s9827_s19 + $0x250] ss:$8 sps:$4 sm:$0xff]   ;;  %v9487_v33 = vld [vmem:[%s9827_s19 + $0x260] ss:$8 sps:$4 sm:$0xff]  }
 0x43c   : > { %v9540_v14 = vld [vmem:[%s9837_s30 + $0xa8] sm:$0xff]   ;;  %v4062_v27 = vld [vmem:[#allocation2 + $0x20] sm:$0xff] }
 0x43e   : > { %3730 = vmatpush1.bf16.msra.mxu1 %v9430_v35  ;;  %v9495_v35 = vld [vmem:[%s9827_s19 + $0x284] ss:$8 sps:$4 sm:$0xff]  }
 0x43f   : > { %3731 = vmatprep.subr.bf16.mxu1 %v9435_v37  ;;  %v9498_v37 = vld [vmem:[%s9827_s19 + $0x294] ss:$8 sps:$4 sm:$0xff]  }
 0x442   : > { %3732 = vmatpush1.bf16.msra.mxu1 %v9433_v39  ;;  %v9499_v39 = vld [vmem:[%s9827_s19 + $0x2a0] ss:$8 sps:$4 sm:$0xff]  }
 0x443   : > { %3733 = vmatprep.subr.bf16.mxu1 %v9438_v40  ;;  %v9504_v40 = vld [vmem:[%s9827_s19 + $0x2b4] ss:$8 sps:$4 sm:$0xff]  }
 0x446   : > { %3734 = vmatpush1.bf16.msra.mxu1 %v9436_v41  ;;  %v9502_v41 = vld [vmem:[%s9827_s19 + $0x2b0] ss:$8 sps:$4 sm:$0xff]  }
 0x447   : > { %3735 = vmatprep.subr.bf16.mxu1 %v9441_v42  ;;  %v9507_v42 = vld [vmem:[%s9827_s19 + $0x2c4] ss:$8 sps:$4 sm:$0xff]  }
 0x44a   : > { %3736 = vmatpush1.bf16.msra.mxu1 %v9439_v43  ;;  %v9505_v43 = vld [vmem:[%s9827_s19 + $0x2c0] ss:$8 sps:$4 sm:$0xff]  }
 0x44b   : > { %3737 = vmatprep.subr.bf16.mxu1 %v9444_v32  ;;  %v9510_v32 = vld [vmem:[%s9827_s19 + $0x2d4] ss:$8 sps:$4 sm:$0xff]  }
 0x44e   : > { %3738 = vmatpush1.bf16.msra.mxu1 %v9442_v44  ;;  %v9508_v44 = vld [vmem:[%s9827_s19 + $0x2d0] ss:$8 sps:$4 sm:$0xff]  }
 0x44f   : > { %3739 = vmatprep.subr.bf16.mxu1 %v9447_v45  ;;  %v9513_v45 = vld [vmem:[%s9827_s19 + $0x2e4] ss:$8 sps:$4 sm:$0xff]  }
 0x452   : > { %3740 = vmatpush1.bf16.msra.mxu1 %v9445_v46  ;;  %v9511_v46 = vld [vmem:[%s9827_s19 + $0x2e0] ss:$8 sps:$4 sm:$0xff]  }
 0x453   : > { %3741 = vmatprep.subr.bf16.mxu1 %v9450_v49  ;;  %v9516_v49 = vld [vmem:[%s9827_s19 + $0x2f4] ss:$8 sps:$4 sm:$0xff]  }
 0x456   : > { %3742 = vmatpush1.bf16.msra.mxu1 %v9448_v50  ;;  %v9514_v50 = vld [vmem:[%s9827_s19 + $0x2f0] ss:$8 sps:$4 sm:$0xff]  }
 0x457   : > { %3743 = vmatprep.subr.bf16.mxu1 %v9453_v51  ;;  %v9517_v51 = vld [vmem:[%s9857_s27 + $0x40] sm:$0xff]  }
 0x45a   : > { %3744 = vmatpush1.bf16.msra.mxu1 %v9451_v52  ;;  %v9518_v52 = vld [vmem:[%s9857_s27] sm:$0xff]  }
 0x45b   : > { %3745 = vmatprep.subr.bf16.mxu1 %v9456_v53  ;;  %v9521_v53 = vld [vmem:[%s9857_s27 + $0x48] sm:$0xff]  }
 0x45e   : > { %3746 = vmatpush1.bf16.msra.mxu1 %v9454_v54  ;;  %v9522_v54 = vld [vmem:[%s9857_s27 + $0x8] sm:$0xff]  }
 0x45f   : > { %3747 = vmatprep.subr.bf16.mxu1 %v9459_v55  ;;  %v9525_v55 = vld [vmem:[%s9857_s27 + $0x50] sm:$0xff]  }
 0x462   : > { %3748 = vmatpush1.bf16.msra.mxu1 %v9457_v57  ;;  %v9526_v57 = vld [vmem:[%s9857_s27 + $0x10] sm:$0xff]  }
 0x463   : > { %3749 = vmatprep.subr.bf16.mxu1 %v9462_v59  ;;  %v9529_v59 = vld [vmem:[%s9857_s27 + $0x58] sm:$0xff]  }
 0x466   : > { %3750 = vmatpush1.bf16.msra.mxu1 %v9460_v62  ;;  %v9534_v62 = vld [vmem:[%s9857_s27 + $0x20] sm:$0xff]  }
 0x467   : > { %3751 = vmatprep.subr.bf16.mxu1 %v9465_v0  ;;  %v9527_v0 = vld [vmem:[%s9837_s30 + $0xd0] sm:$0xff]  }
 0x468   : > { %8307 = vmatprep.subr.bf16.mxu0 %v9527_v0 }
 0x46a   : > { %3752 = vmatpush1.bf16.msra.mxu1 %v9463_v1  ;;  %v9528_v1 = vld [vmem:[%s9837_s30 + $0x90] sm:$0xff]  }
 0x46b   : > { %3753 = vmatprep.subr.bf16.mxu1 %v9468_v2  ;;  %8308 = vmatpush3.bf16.msra.mxu0 %v9528_v1  ;;  %v9538_v2 = vld [vmem:[%s9857_s27 + $0x28] sm:$0xff]  }
 0x46c   : > { %8309 = vmatprep.subr.bf16.mxu0 %v9531_v4 }
 0x46e   : > { %3754 = vmatpush1.bf16.msra.mxu1 %v9466_v7  ;;  %v9541_v7 = vld [vmem:[%s9857_s27 + $0x70] sm:$0xff]  }
 0x46f   : > { %3973 = vmatprep.subr.bf16.mxu1 %v9471_v63  ;;  %8310 = vmatpush3.bf16.msra.mxu0 %v9532_v3  ;;  %v9536_v63 = vld [vmem:[%s9837_s30 + $0xa0] sm:$0xff]  }
 0x470   : > { %8311 = vmatprep.subr.bf16.mxu0 %v9535_v31 }
 0x471   : > { %3756 = vmatmul.mubr.bf16.vlgmr.msra.gmra.mrb[8].mxu1 %v3239_v17  ;;  %v9547_v17 = vld [vmem:[%s9837_s30 + $0xf8] sm:$0xff]  }
 0x472   : > { %3765 = vmatprep.mubr.bf16.mxu1 %v3248_v19  ;;  %3974 = vmatpush1.bf16.msra.mxu1 %v9469_v13  ;;  %v9543_v13 = vld [vmem:[%s9837_s30 + $0xf0] sm:$0xff]   ;;  %v9548_v19 = vld [vmem:[%s9837_s30 + $0xb8] sm:$0xff]  }
 0x473   : > { %3975 = vmatprep.subr.bf16.mxu1 %v9474_v16  ;;  %8312 = vmatpush3.bf16.msra.mxu0 %v9536_v63  ;;  %v9544_v16 = vld [vmem:[%s9837_s30 + $0xb0] sm:$0xff]  }
 0x474   : > { %8313 = vmatprep.subr.bf16.mxu0 %v9539_v12 }
 0x476   : > { %3976 = vmatpush1.bf16.msra.mxu1 %v9472_v22  ;;  %v4039_v22 = vrot.slane %v4034_v21, %v10037_v10 }
 0x477   : > { %3977 = vmatprep.subr.bf16.mxu1 %v9477_v23  ;;  %8314 = vmatpush3.bf16.msra.mxu0 %v9540_v14  ;;  %v4043_v23 = vrot.slane %v4034_v21, %v10039_v11  ;;  %v4163_v14 = vld [vmem:[#allocation2 + $0x10] sm:$0xc0] }
 0x478   : > { %8315 = vmatprep.subr.bf16.mxu0 %v9543_v13  ;;  %v4179_v21 = vrot.slane %v4163_v14, 6 }
 0x479   : > { %3766 = vmatmul.mubr.bf16.gmra.mrb[12].mxu1 %v3245_v30  ;;  %v4063_v30 = vld [vmem:[#allocation2 + $0x28] sm:$0xff] }
 0x47a   : > { %3978 = vmatpush1.bf16.msra.mxu1 %v9475_v28  ;;  %4005 = vmatprep.mubr.bf16.mxu1 %v10323_v48  ;;  %v9492_v48 = vld [vmem:[%s9827_s19 + $0x274] ss:$8 sps:$4 sm:$0xff]   ;;  %v4069_v11 = vunpack.c.h.bf16 %v4063_v30 }
 0x47b   : > { %3979 = vmatprep.subr.bf16.mxu1 %v9480_v29  ;;  %8316 = vmatpush3.bf16.msra.mxu0 %v9544_v16 }
 0x47c   : > { %8317 = vmatprep.subr.bf16.mxu0 %v9547_v17 }
 0x47e   : > { %3980 = vmatpush1.bf16.msra.mxu1 %v9478_v25 }
 0x47f   : > { %3981 = vmatprep.subr.bf16.mxu1 %v9483_v26  ;;  %8318 = vmatpush3.bf16.msra.mxu0 %v9548_v19 }
 0x480   : > { %8331 = vmatprep.subr.bf16.mxu0 %v9549_v20 }
 0x482   : > { %3982 = vmatpush1.bf16.msra.mxu1 %v9481_v58 }
 0x483   : > { %3983 = vmatprep.subr.bf16.mxu1 %v9486_v15  ;;  %v4066_v15 = vunpack.c.l.bf16 %v4062_v27 }
 0x486   : > { %3984 = vmatpush1.bf16.msra.mxu1 %v9484_v18 }
 0x487   : > { %3985 = vmatprep.subr.bf16.mxu1 %v9489_v56 }
 0x48a   : > { %3986 = vmatpush1.bf16.msra.mxu1 %v9487_v33 }
 0x48b   : > { %3987 = vmatprep.subr.bf16.mxu1 %v9492_v48  ;;  %v4067_v48 = vunpack.c.l.bf16 %v4063_v30  ;;  %v4168_v30 = vld [vmem:[#allocation2 + $0x48] sm:$0xc0] }
 0x48e   : > { %3988 = vmatpush1.bf16.msra.mxu1 %v9490_v34 }
 0x48f   : > { %3989 = vmatprep.subr.bf16.mxu1 %v9495_v35 }
 0x492   : > { %3990 = vmatpush1.bf16.msra.mxu1 %v9493_v36 }
 0x493   : > { %3991 = vmatprep.subr.bf16.mxu1 %v9498_v37  ;;  %v4068_v37 = vunpack.c.h.bf16 %v4062_v27 }
 0x496   : > { %3992 = vmatpush1.bf16.msra.mxu1 %v9496_v38 }
 0x497   : > { %3993 = vmatprep.subr.bf16.mxu1 %v9501_v60 }
 0x49a   : > { %3994 = vmatpush1.bf16.msra.mxu1 %v9499_v39 }
 0x49b   : > { %3995 = vmatprep.subr.bf16.mxu1 %v9504_v40 }
 0x49e   : > { %3996 = vmatpush1.bf16.msra.mxu1 %v9502_v41  ;;  %v4064_v41 = vld [vmem:[#allocation2 + $0x50] sm:$0xff] }
 0x49f   : > { %3997 = vmatprep.subr.bf16.mxu1 %v9507_v42 }
 0x4a2   : > { %3998 = vmatpush1.bf16.msra.mxu1 %v9505_v43 }
 0x4a3   : > { %3999 = vmatprep.subr.bf16.mxu1 %v9510_v32 }
 0x4a6   : > { %4000 = vmatpush1.bf16.msra.mxu1 %v9508_v44 }
 0x4a7   : > { %4001 = vmatprep.subr.bf16.mxu1 %v9513_v45  ;;  %v4065_v45 = vld [vmem:[#allocation2 + $0x58] sm:$0xff] }
 0x4a8   : > { %v4073_v3 = vunpack.c.h.bf16 %v4065_v45 }
 0x4aa   : > { %4002 = vmatpush1.bf16.msra.mxu1 %v9511_v46 }
 0x4ab   : > { %4003 = vmatprep.subr.bf16.mxu1 %v9516_v49 }
 0x4ae   : > { %4004 = vmatpush1.bf16.msra.mxu1 %v9514_v50 }
 0x4af   : > { %8417 = vmatprep.subr.bf16.mxu1 %v9517_v51 }
 0x4b1   : > { %4006 = vmatmul.mubr.bf16.vlgmr.msra.gmra.mrb[8].mxu1 %v10321_v47  ;;  %v9530_v47 = vld [vmem:[%s9857_s27 + $0x18] sm:$0xff]  }
 0x4b2   : > { %4015 = vmatprep.mubr.bf16.mxu1 %v10329_v6  ;;  %8418 = vmatpush3.bf16.msra.mxu1 %v9518_v52  ;;  %v9533_v6 = vld [vmem:[%s9857_s27 + $0x60] sm:$0xff]  }
 0x4b3   : > { %8419 = vmatprep.subr.bf16.mxu1 %v9521_v53 }
 0x4b6   : > { %8420 = vmatpush3.bf16.msra.mxu1 %v9522_v54  ;;  %v4070_v54 = vunpack.c.l.bf16 %v4064_v41 }
 0x4b7   : > { %8421 = vmatprep.subr.bf16.mxu1 %v9525_v55 }
 0x4b9   : > { %4016 = vmatmul.mubr.bf16.gmra.mrb[12].mxu1 %v10327_v5  ;;  %v9537_v5 = vld [vmem:[%s9857_s27 + $0x68] sm:$0xff]  }
 0x4ba   : > { %8422 = vmatpush3.bf16.msra.mxu1 %v9526_v57 }
 0x4bb   : > { %8423 = vmatprep.subr.bf16.mxu1 %v9529_v59 }
 0x4be   : > { %8424 = vmatpush3.bf16.msra.mxu1 %v9530_v47 }
 0x4bf   : > { %8425 = vmatprep.subr.bf16.mxu1 %v9533_v6  ;;  %v4071_v6 = vunpack.c.l.bf16 %v4065_v45  ;;  %v9561_v45 = vld [vmem:[%s9837_s30 + $0x70] sm:$0xff]  }
 0x4c2   : > { %8426 = vmatpush3.bf16.msra.mxu1 %v9534_v62 }
 0x4c3   : > { %8427 = vmatprep.subr.bf16.mxu1 %v9537_v5  ;;  %v4072_v5 = vunpack.c.h.bf16 %v4064_v41  ;;  %v9556_v41 = vld [vmem:[%s9837_s30 + $0x18] sm:$0xff]  }
 0x4c6   : > { %8428 = vmatpush3.bf16.msra.mxu1 %v9538_v2 }
 0x4c7   : > { %8429 = vmatprep.subr.bf16.mxu1 %v9541_v7 }
 0x4ca   : > { %8430 = vmatpush3.bf16.msra.mxu1 %v9542_v8 }
 0x4cb   : > { %8431 = vmatprep.subr.bf16.mxu1 %v9545_v61  ;;  %v4164_v61 = vld [vmem:[#allocation2 + $0x18] sm:$0xc0] }
 0x4cc   : > { %v4182_v17 = vrot.slane %v4164_v61, 6 }
 0x4ce   : > { %8432 = vmatpush3.bf16.msra.mxu1 %v9546_v9 }
 0x584   : > { %v4007_v24 = vpop.f32.mrb[8].mxu1 }
 0x585   : > { %v4046_v28 = vadd.f32 %v4039_v22, %v4007_v24  ;;  %v4009_v29 = vpop.f32.mrb[9].mxu1  ;;  %v9550_v24 = vld [vmem:[%s9837_s30] sm:$0xff]  }
 0x586   : > { %v4047_v25 = vadd.f32 %v4043_v23, %v4009_v29  ;;  %v4011_v26 = vpop.f32.mrb[10].mxu1 }
 0x587   : > { %v4054_v58 = vmax.f32 %v4046_v28, 0.0  ;;  %v4048_v18 = vadd.f32 %v4039_v22, %v4011_v26  ;;  %v4013_v56 = vpop.f32.mrb[11].mxu1  ;;  %v9551_v28 = vld [vmem:[%s9837_s30 + $0x48] sm:$0xff]  }
 0x588   : > { %v4055_v33 = vmax.f32 %v4047_v25, 0.0  ;;  %v4049_v34 = vadd.f32 %v4043_v23, %v4013_v56  ;;  %v4167_v25 = vld [vmem:[#allocation2 + $0x40] sm:$0xc0]  ;;  %v9552_v26 = vld [vmem:[%s9837_s30 + $0x8] sm:$0xff]   ;;  %v9553_v56 = vld [vmem:[%s9837_s30 + $0x50] sm:$0xff]  }
 0x589   : > { %v4074_v35 = vadd.f32 %v4066_v15, %v4054_v58  ;;  %v4056_v36 = vmax.f32 %v4048_v18, 0.0  ;;  %v4099_v58 = vld [vmem:[#allocation2 + $0x18] sm:$0xf0]  ;;  %v4188_v18 = vrot.slane %v4168_v30, 6  ;;  %v9583_v30 = vld [vmem:[%s9847_s12 + $0x50] sm:$0xff]  }
 0x58a   : > { %v4075_v10 = vadd.f32 %v4067_v48, %v4055_v33  ;;  %v4057_v38 = vmax.f32 %v4049_v34, 0.0  ;;  %v4185_v34 = vrot.slane %v4167_v25, 6  ;;  %v9584_v25 = vld [vmem:[%s9847_s12 + $0x58] sm:$0xff]  }
 0x58b   : > { %v4076_v60 = vadd.f32 %v4068_v37, %v4056_v36  ;;  %v4082_v42 = vmax.f32 %v4074_v35, 0.0  ;;  %v4118_v37 = vrot.slane %v4099_v58, 4  ;;  %v10512_v58 = vld [vmem:[%s9847_s12] sm:$0xff]  }
 0x58c   : > { %v4077_v39 = vadd.f32 %v4069_v11, %v4057_v38  ;;  %v4017_v40 = vpop.f32.mrb[12].mxu1  ;;  %v4083_v46 = vmax.f32 %v4075_v10, 0.0  ;;  %v9554_v38 = vld [vmem:[%s9837_s30 + $0x10] sm:$0xff]  }
 0x58d   : > { %v4084_v43 = vmax.f32 %v4076_v60, 0.0  ;;  %v4050_v32 = vadd.f32 %v4039_v22, %v4017_v40  ;;  %v4019_v44 = vpop.f32.mrb[13].mxu1  ;;  %v9555_v60 = vld [vmem:[%s9837_s30 + $0x58] sm:$0xff]  }
 0x58e   : > { %v4085_v49 = vmax.f32 %v4077_v39, 0.0  ;;  %v4051_v50 = vadd.f32 %v4043_v23, %v4019_v44  ;;  %v4021_v51 = vpop.f32.mrb[14].mxu1  ;;  %v9560_v44 = vld [vmem:[%s9837_s30 + $0x28] sm:$0xff]  }
 0x58f   : > { %v10444_v52 = vpack.c.bf16 %v4084_v43, %v4082_v42  ;;  %v4058_v53 = vmax.f32 %v4050_v32, 0.0  ;;  %v4052_v55 = vadd.f32 %v4039_v22, %v4021_v51  ;;  %v4023_v57 = vpop.f32.mrb[15].mxu1  ;;  %v9557_v42 = vld [vmem:[%s9837_s30 + $0x60] sm:$0xff]   ;;  %v9559_v32 = vld [vmem:[%s9837_s30 + $0x68] sm:$0xff]  }
 0x590   : > { %v10446_v59 = vpack.c.bf16 %v4085_v49, %v4083_v46  ;;  %v4059_v47 = vmax.f32 %v4051_v50, 0.0  ;;  %v4053_v62 = vadd.f32 %v4043_v23, %v4023_v57  ;;  %v9558_v43 = vld [vmem:[%s9837_s30 + $0x20] sm:$0xff]   ;;  %v9562_v46 = vld [vmem:[%s9837_s30 + $0x30] sm:$0xff]   ;;  %v9563_v49 = vld [vmem:[%s9837_s30 + $0x78] sm:$0xff]  }
 0x591   : > { %4094 = vst [vmem:[#allocation2 + $0x20] sm:$0xff] %v10444_v52  ;;  %v4078_v0 = vadd.f32 %v4070_v54, %v4058_v53  ;;  %v4060_v1 = vmax.f32 %v4052_v55, 0.0  ;;  %v4098_v50 = vld [vmem:[#allocation2 + $0x10] sm:$0xf0]  ;;  %v9564_v53 = vld [vmem:[%s9837_s30 + $0x38] sm:$0xff]   ;;  %v9565_v57 = vld [vmem:[%s9837_s30 + $0x140] sm:$0xff]  }
 0x592   : > { %4095 = vst [vmem:[#allocation2 + $0x28] sm:$0xff] %v10446_v59  ;;  %v4079_v2 = vadd.f32 %v4071_v6, %v4059_v47  ;;  %v4061_v4 = vmax.f32 %v4053_v62, 0.0  ;;  %5288 = vmatprep.mubr.bf16.mxu1 %v10446_v59  ;;  %v4103_v54 = vld [vmem:[#allocation2 + $0x48] sm:$0xf0]  ;;  %v4115_v47 = vrot.slane %v4098_v50, 4 }
 0x593   : > { %v4080_v7 = vadd.f32 %v4072_v5, %v4060_v1  ;;  %5289 = vmatmul.mubr.bf16.vlgmr.msra.gmra.mrb[16].mxu1 %v10444_v52  ;;  %v4086_v31 = vmax.f32 %v4078_v0, 0.0  ;;  %v4124_v62 = vrot.slane %v4103_v54, 4  ;;  %v9566_v1 = vld [vmem:[%s9837_s30 + $0x100] sm:$0xff]   ;;  %v9567_v5 = vld [vmem:[%s9837_s30 + $0x148] sm:$0xff]  }
 0x594   : > { %v4081_v8 = vadd.f32 %v4073_v3, %v4061_v4  ;;  %v4087_v9 = vmax.f32 %v4079_v2, 0.0  ;;  %v4102_v3 = vld [vmem:[#allocation2 + $0x40] sm:$0xf0] }
 0x595   : > { %v4088_v63 = vmax.f32 %v4080_v7, 0.0  ;;  %v9605_v54 = vld [vmem:[%s10759_s23 + $0x40] sm:$0xff]  }
 0x596   : > { %v4089_v12 = vmax.f32 %v4081_v8, 0.0  ;;  %v9568_v8 = vld [vmem:[%s9837_s30 + $0x108] sm:$0xff]   ;;  %8645 = vmatprep.subr.bf16.mxu1 %v9605_v54 }
 0x597   : > { %v10452_v13 = vpack.c.bf16 %v4088_v63, %v4086_v31  ;;  %v9569_v31 = vld [vmem:[%s9837_s30 + $0x150] sm:$0xff]   ;;  %v4121_v63 = vrot.slane %v4102_v3, 4  ;;  %8646 = vmatpush3.bf16.msra.mxu1 %v9605_v54 }
 0x598   : > { %v10454_v16 = vpack.c.bf16 %v4089_v12, %v4087_v9  ;;  %v4165_v19 = vld [vmem:[#allocation2 + $0x20] sm:$0x3f]  ;;  %v9570_v9 = vld [vmem:[%s9837_s30 + $0x110] sm:$0xff]   ;;  %v9571_v12 = vld [vmem:[%s9837_s30 + $0x158] sm:$0xff]  }
 0x599   : > { %4096 = vst [vmem:[#allocation2 + $0x50] sm:$0xff] %v10452_v13  ;;  %v4166_v20 = vld [vmem:[#allocation2 + $0x28] sm:$0x3f]  ;;  %v4180_v22 = vrot.slane %v4165_v19, 6  ;;  %v4100_v51 = vld [vmem:[#allocation2 + $0x20] sm:$0xf] }
 0x59a   : > { %4097 = vst [vmem:[#allocation2 + $0x58] sm:$0xff] %v10454_v16  ;;  %v4183_v23 = vrot.slane %v4166_v20, 6  ;;  %5296 = vmatprep.mubr.bf16.mxu1 %v10454_v16  ;;  %v4101_v15 = vld [vmem:[#allocation2 + $0x28] sm:$0xf]  ;;  %v4116_v6 = vrot.slane %v4100_v51, 4  ;;  %v9573_v19 = vld [vmem:[%s9837_s30 + $0x160] sm:$0xff]  }
 0x59b   : > { %5297 = vmatmul.mubr.bf16.gmra.mrb[20].mxu1 %v10452_v13  ;;  %v4181_v29 = vsel %vm2387_vm3, %v4179_v21, %v4180_v22  ;;  %v4119_v10 = vrot.slane %v4101_v15, 4  ;;  %v9574_v20 = vld [vmem:[%s9837_s30 + $0x120] sm:$0xff]   ;;  %v9575_v21 = vld [vmem:[%s9837_s30 + $0x168] sm:$0xff]   ;;  %v9591_v54 = vld [vmem:[%s9847_s12 + $0x10] sm:$0xff]  }
 0x59c   : > { %v4184_v27 = vsel %vm2387_vm3, %v4182_v17, %v4183_v23  ;;  %v4117_v2 = vsel %vm4114_vm4, %v4115_v47, %v4116_v6  ;;  %v9572_v17 = vld [vmem:[%s9837_s30 + $0x118] sm:$0xff]   ;;  %v9576_v22 = vld [vmem:[%s9837_s30 + $0x128] sm:$0xff]   ;;  %v9577_v23 = vld [vmem:[%s9837_s30 + $0x170] sm:$0xff]  }
 0x59d   : > { %4356 = vmatprep.mubr.bf16.mxu0 %v4184_v27  ;;  %v4120_v40 = vsel %vm4114_vm4, %v4118_v37, %v4119_v10  ;;  %v9579_v27 = vld [vmem:[%s9837_s30 + $0x178] sm:$0xff]  }
 0x59e   : > { %4357 = vmatmul.mubr.bf16.vlgmr.msra.gmra.mrb[24].mxu0 %v4181_v29  ;;  %v9582_v29 = vld [vmem:[%s9847_s12 + $0x48] sm:$0xff]  }
 0x59f   : > { %8332 = vmatpush3.bf16.msra.mxu0 %v9550_v24  ;;  %v9578_v24 = vld [vmem:[%s9837_s30 + $0x130] sm:$0xff]  }
 0x5a0   : > { %8333 = vmatprep.subr.bf16.mxu0 %v9551_v28  ;;  %v4169_v33 = vld [vmem:[#allocation2 + $0x50] sm:$0x3f]  ;;  %v9581_v28 = vld [vmem:[%s9847_s12 + $0x40] sm:$0xff]  }
 0x5a1   : > { %v4170_v48 = vld [vmem:[#allocation2 + $0x58] sm:$0x3f]  ;;  %v4186_v35 = vrot.slane %v4169_v33, 6  ;;  %v4104_v7 = vld [vmem:[#allocation2 + $0x50] sm:$0xf] }
 0x5a2   : > { %v4189_v36 = vrot.slane %v4170_v48, 6  ;;  %v4105_v55 = vld [vmem:[#allocation2 + $0x58] sm:$0xf]  ;;  %v4122_v61 = vrot.slane %v4104_v7, 4 }
 0x5a3   : > { %8334 = vmatpush3.bf16.msra.mxu0 %v9552_v26  ;;  %v4187_v39 = vsel %vm2387_vm3, %v4185_v34, %v4186_v35  ;;  %v4125_v0 = vrot.slane %v4105_v55, 4  ;;  %v9588_v26 = vld [vmem:[%s9847_s12 + $0x78] sm:$0xff]   ;;  %v9606_v55 = vld [vmem:[%s10759_s23 + $0x48] sm:$0xff]  }
 0x5a4   : > { %v4190_v11 = vsel %vm2387_vm3, %v4188_v18, %v4189_v36  ;;  %8335 = vmatprep.subr.bf16.mxu0 %v9553_v56  ;;  %v4123_v14 = vsel %vm4114_vm4, %v4121_v63, %v4122_v61  ;;  %8647 = vmatprep.subr.bf16.mxu1 %v9606_v55 }
 0x5a5   : > { %4364 = vmatprep.mubr.bf16.mxu0 %v4190_v11  ;;  %v4126_v4 = vsel %vm4114_vm4, %v4124_v62, %v4125_v0  ;;  %8648 = vmatpush3.bf16.msra.mxu1 %v9606_v55  ;;  %v9592_v55 = vld [vmem:[%s9847_s12 + $0x18] sm:$0xff]  }
 0x5a6   : > { %4365 = vmatmul.mubr.bf16.gmra.mrb[28].mxu0 %v4187_v39 }
 0x5a7   : > { %8336 = vmatpush3.bf16.msra.mxu0 %v9554_v38  ;;  %4501 = vmatprep.mubr.bf16.mxu0 %v4120_v40 }
 0x5a8   : > { %8337 = vmatprep.subr.bf16.mxu0 %v9555_v60 }
 0x5ab   : > { %8338 = vmatpush3.bf16.msra.mxu0 %v9556_v41 }
 0x5ac   : > { %8339 = vmatprep.subr.bf16.mxu0 %v9557_v42 }
 0x5af   : > { %8340 = vmatpush3.bf16.msra.mxu0 %v9558_v43 }
 0x5b0   : > { %8341 = vmatprep.subr.bf16.mxu0 %v9559_v32 }
 0x5b3   : > { %8342 = vmatpush3.bf16.msra.mxu0 %v9560_v44 }
 0x5b4   : > { %8343 = vmatprep.subr.bf16.mxu0 %v9561_v45 }
 0x5b7   : > { %8344 = vmatpush3.bf16.msra.mxu0 %v9562_v46 }
 0x5b8   : > { %8345 = vmatprep.subr.bf16.mxu0 %v9563_v49 }
 0x5bb   : > { %8346 = vmatpush3.bf16.msra.mxu0 %v9564_v53 }
 0x5bc   : > { %8359 = vmatprep.subr.bf16.mxu0 %v9565_v57 }
 0x5be   : > { %4502 = vmatmul.mubr.bf16.vlgmr.msra.gmra.mrb[32].mxu0 %v4117_v2 }
 0x5bf   : > { %4509 = vmatprep.mubr.bf16.mxu0 %v4126_v4  ;;  %8360 = vmatpush3.bf16.msra.mxu0 %v9566_v1 }
 0x5c0   : > { %8361 = vmatprep.subr.bf16.mxu0 %v9567_v5 }
 0x5c3   : > { %8362 = vmatpush3.bf16.msra.mxu0 %v9568_v8 }
 0x5c4   : > { %8363 = vmatprep.subr.bf16.mxu0 %v9569_v31 }
 0x5c6   : > { %4510 = vmatmul.mubr.bf16.gmra.mrb[36].mxu0 %v4123_v14 }
 0x5c7   : > { %8364 = vmatpush3.bf16.msra.mxu0 %v9570_v9  ;;  %4683 = vmatprep.mubr.bf16.mxu0 %v10446_v59  ;;  %v9580_v59 = vld [vmem:[%s9837_s30 + $0x138] sm:$0xff]  }
 0x5c8   : > { %8365 = vmatprep.subr.bf16.mxu0 %v9571_v12 }
 0x5cb   : > { %8366 = vmatpush3.bf16.msra.mxu0 %v9572_v17  ;;  %v7985_v17 = vld [vmem:[%s10760_s26] ss:$0 sm:$0xff]  ;;  %s10770_s26 = sld [smem:[#allocation18_spill]] }
 0x5cc   : > { %8367 = vmatprep.subr.bf16.mxu0 %v9573_v19 }
 0x5cf   : > { %8368 = vmatpush3.bf16.msra.mxu0 %v9574_v20 }
 0x5d0   : > { %8369 = vmatprep.subr.bf16.mxu0 %v9575_v21 }
 0x5d3   : > { %8370 = vmatpush3.bf16.msra.mxu0 %v9576_v22 }
 0x5d4   : > { %8371 = vmatprep.subr.bf16.mxu0 %v9577_v23 }
 0x5d7   : > { %8372 = vmatpush3.bf16.msra.mxu0 %v9578_v24 }
 0x5d8   : > { %8373 = vmatprep.subr.bf16.mxu0 %v9579_v27 }
 0x5db   : > { %8374 = vmatpush3.bf16.msra.mxu0 %v9580_v59 }
 0x5dc   : > { %8585 = vmatprep.subr.bf16.mxu0 %v9581_v28 }
 0x5de   : > { %4684 = vmatmul.mubr.bf16.vlgmr.msra.gmra.mrb[40].mxu0 %v10444_v52  ;;  %v9585_v52 = vld [vmem:[%s9847_s12 + $0x60] sm:$0xff]  }
 0x5df   : > { %4691 = vmatprep.mubr.bf16.mxu0 %v10454_v16  ;;  %8586 = vmatpush3.bf16.msra.mxu0 %v9581_v28  ;;  %v9587_v16 = vld [vmem:[%s9847_s12 + $0x70] sm:$0xff]  }
 0x5e0   : > { %8587 = vmatprep.subr.bf16.mxu0 %v9582_v29 }
 0x5e3   : > { %8588 = vmatpush3.bf16.msra.mxu0 %v9582_v29 }
 0x5e4   : > { %8589 = vmatprep.subr.bf16.mxu0 %v9583_v30 }
 0x5e6   : > { %4692 = vmatmul.mubr.bf16.gmra.mrb[44].mxu0 %v10452_v13  ;;  %v9586_v13 = vld [vmem:[%s9847_s12 + $0x68] sm:$0xff]  }
 0x5e7   : > { %8590 = vmatpush3.bf16.msra.mxu0 %v9583_v30 }
 0x5e8   : > { %8591 = vmatprep.subr.bf16.mxu0 %v9584_v25 }
 0x5eb   : > { %8592 = vmatpush3.bf16.msra.mxu0 %v9584_v25 }
 0x5ec   : > { %8593 = vmatprep.subr.bf16.mxu0 %v9585_v52 }
 0x5ef   : > { %8594 = vmatpush3.bf16.msra.mxu0 %v9585_v52 }
 0x5f0   : > { %8595 = vmatprep.subr.bf16.mxu0 %v9586_v13 }
 0x5f3   : > { %8596 = vmatpush3.bf16.msra.mxu0 %v9586_v13 }
 0x5f4   : > { %8597 = vmatprep.subr.bf16.mxu0 %v9587_v16 }
 0x5f7   : > { %8598 = vmatpush3.bf16.msra.mxu0 %v9587_v16 }
 0x5f8   : > { %8599 = vmatprep.subr.bf16.mxu0 %v9588_v26 }
 0x5fb   : > { %8600 = vmatpush3.bf16.msra.mxu0 %v9588_v26 }
 0x5fc   : > { %8605 = vmatprep.subr.bf16.mxu0 %v10512_v58 }
 0x666   : > { %v8433_v15 = vpop.f32.mrb[16].mxu1 }
 0x667   : > { %v8434_v18 = vpop.f32.mrb[17].mxu1 }
 0x668   : > { %v10515_v56 = vadd.f32 %v8434_v18, %v8433_v15  ;;  %v8436_v33 = vpop.f32.mrb[18].mxu1 }
 0x669   : > { %v8437_v48 = vpop.f32.mrb[19].mxu1 }
 0x66a   : > { %v10517_v34 = vadd.f32 %v8437_v48, %v8436_v33  ;;  %v4755_v48 = vld [vmem:[#allocation3 + $0x10] sm:$0xc0] }
 0x66e   : > { %v8439_v35 = vpop.f32.mrb[20].mxu1 }
 0x66f   : > { %v8440_v36 = vpop.f32.mrb[21].mxu1 }
 0x670   : > { %v10519_v37 = vadd.f32 %v8440_v36, %v8439_v35  ;;  %v8442_v10 = vpop.f32.mrb[22].mxu1 }
 0x671   : > { %v8319_v38 = vpop.f32.mrb[24].mxu0  ;;  %v8443_v11 = vpop.f32.mrb[23].mxu1 }
 0x672   : > { %v8320_v60 = vpop.f32.mrb[25].mxu0  ;;  %v10521_v39 = vadd.f32 %v8443_v11, %v8442_v10 }
 0x673   : > { %v8321_v40 = vadd.f32 %v8320_v60, %v8319_v38  ;;  %v8322_v41 = vpop.f32.mrb[26].mxu0  ;;  %v4763_v38 = vrot.slane %v4755_v48, 6 }
 0x674   : > { %v8323_v42 = vpop.f32.mrb[27].mxu0 }
 0x675   : > { %v8324_v43 = vadd.f32 %v8323_v42, %v8322_v41  ;;  %v4757_v41 = vld [vmem:[#allocation3 + $0x40] sm:$0xc0]  ;;  %v4723_v42 = vld [vmem:[#allocation3 + $0x10] sm:$0xf0] }
 0x679   : > { %v8325_v32 = vpop.f32.mrb[28].mxu0 }
 0x67a   : > { %v8326_v44 = vpop.f32.mrb[29].mxu0 }
 0x67b   : > { %v8327_v45 = vadd.f32 %v8326_v44, %v8325_v32  ;;  %v8328_v46 = vpop.f32.mrb[30].mxu0  ;;  %v4766_v32 = vrot.slane %v4757_v41, 6 }
 0x67c   : > { %v8329_v49 = vpop.f32.mrb[31].mxu0 }
 0x67d   : > { %v8330_v50 = vadd.f32 %v8329_v49, %v8328_v46 }
 0x691   : > { %v8347_v51 = vpop.f32.mrb[32].mxu0 }
 0x692   : > { %v8348_v53 = vpop.f32.mrb[33].mxu0 }
 0x693   : > { %v8349_v57 = vadd.f32 %v8348_v53, %v8347_v51  ;;  %v8350_v47 = vpop.f32.mrb[34].mxu0 }
 0x694   : > { %v8351_v6 = vpop.f32.mrb[35].mxu0 }
 0x695   : > { %v4504_v62 = vadd.f32 %v8349_v57, %v8321_v40  ;;  %v8352_v0 = vadd.f32 %v8351_v6, %v8350_v47  ;;  %v9593_v57 = vld [vmem:[%s9847_s12 + $0x20] sm:$0xff]   ;;  %v9594_v47 = vld [vmem:[%s9847_s12 + $0x28] sm:$0xff]   ;;  %v9595_v6 = vld [vmem:[%s9847_s12 + $0x30] sm:$0xff]  }
 0x697   : > { %v4507_v1 = vadd.f32 %v8352_v0, %v8324_v43 }
 0x699   : > { %v8353_v5 = vpop.f32.mrb[36].mxu0 }
 0x69a   : > { %v8354_v2 = vpop.f32.mrb[37].mxu0 }
 0x69b   : > { %v8355_v4 = vadd.f32 %v8354_v2, %v8353_v5  ;;  %v8356_v3 = vpop.f32.mrb[38].mxu0 }
 0x69c   : > { %v8357_v7 = vpop.f32.mrb[39].mxu0 }
 0x69d   : > { %v4512_v8 = vadd.f32 %v8355_v4, %v8327_v45  ;;  %v8358_v31 = vadd.f32 %v8357_v7, %v8356_v3  ;;  %v4731_v45 = vrot.slane %v4723_v42, 4  ;;  %v9598_v4 = vld [vmem:[%s9847_s12 + $0x88] sm:$0xff]   ;;  %v9599_v7 = vld [vmem:[%s9847_s12 + $0x90] sm:$0xff]  }
 0x69f   : > { %v4515_v63 = vadd.f32 %v8358_v31, %v8330_v50  ;;  %v9590_v50 = vld [vmem:[%s9847_s12 + $0x8] sm:$0xff]   ;;  %v9601_v31 = vld [vmem:[%s9847_s12 + $0xa0] sm:$0xff]  }
 0x6b1   : > { %v8375_v61 = vpop.f32.mrb[40].mxu0 }
 0x6b2   : > { %v8376_v9 = vpop.f32.mrb[41].mxu0 }
 0x6b3   : > { %v8377_v12 = vadd.f32 %v8376_v9, %v8375_v61  ;;  %v8378_v14 = vpop.f32.mrb[42].mxu0  ;;  %v9603_v61 = vld [vmem:[%s9847_s12 + $0xb0] sm:$0xff]   ;;  %v9604_v9 = vld [vmem:[%s9847_s12 + $0xb8] sm:$0xff]  }
 0x6b4   : > { %v8379_v19 = vpop.f32.mrb[43].mxu0 }
 0x6b5   : > { %v4700_v20 = vadd.f32 %v8377_v12, %v4504_v62  ;;  %v8380_v21 = vadd.f32 %v8379_v19, %v8378_v14  ;;  %v4725_v62 = vld [vmem:[#allocation3 + $0x40] sm:$0xf0]  ;;  %v9607_v12 = vld [vmem:[%s10759_s23 + $0x50] sm:$0xff]   ;;  %v9608_v14 = vld [vmem:[%s10759_s23 + $0x58] sm:$0xff]  }
 0x6b6   : > { %v4734_v5 = vrot.slane %v4725_v62, 4  ;;  %8649 = vmatprep.subr.bf16.mxu1 %v9607_v12  ;;  %v9610_v19 = vld [vmem:[%s10759_s23 + $0x68] sm:$0xff]   ;;  %v9616_v62 = vld [vmem:[%s10759_s23 + $0x18] sm:$0xff]  }
 0x6b7   : > { %v4711_v22 = vadd.f32 %v7985_v17, %v4700_v20  ;;  %v4701_v23 = vadd.f32 %v8380_v21, %v4507_v1  ;;  %v9597_v1 = vld [vmem:[%s9847_s12 + $0x80] sm:$0xff]   ;;  %8650 = vmatpush3.bf16.msra.mxu1 %v9607_v12  ;;  %v9611_v20 = vld [vmem:[%s10759_s23 + $0x70] sm:$0xff]   ;;  %v9612_v21 = vld [vmem:[%s10759_s23 + $0x78] sm:$0xff]  }
 0x6b8   : > { %8651 = vmatprep.subr.bf16.mxu1 %v9608_v14  ;;  %v9632_v12 = vld [vmem:[%s10761_s28 + $0x58] sm:$0xff]  }
 0x6b9   : > { %v4712_v24 = vadd.f32 %v7985_v17, %v4701_v23  ;;  %v8381_v27 = vpop.f32.mrb[44].mxu0  ;;  %v4715_v28 = vmax.f32 %v4711_v22, 0.0  ;;  %v9613_v22 = vld [vmem:[%s10759_s23] sm:$0xff]  }
 0x6ba   : > { %v8382_v59 = vpop.f32.mrb[45].mxu0  ;;  %v9629_v23 = vld [vmem:[%s10761_s28 + $0x40] sm:$0xff]  }
 0x6bb   : > { %v4716_v29 = vmax.f32 %v4712_v24, 0.0  ;;  %v8383_v30 = vadd.f32 %v8382_v59, %v8381_v27  ;;  %v8384_v25 = vpop.f32.mrb[46].mxu0  ;;  %8652 = vmatpush3.bf16.msra.mxu1 %v9608_v14  ;;  %v9630_v24 = vld [vmem:[%s10761_s28 + $0x48] sm:$0xff]   ;;  %v9631_v27 = vld [vmem:[%s10761_s28 + $0x50] sm:$0xff]   ;;  %v8042_v59 = vld [vmem:[%s10762_s1] ss:$0 sm:$0xff] }
 0x6bc   : > { %v8385_v52 = vpop.f32.mrb[47].mxu0  ;;  %v9633_v14 = vld [vmem:[%s10761_s28 + $0x60] sm:$0xff]   ;;  %s10771_s1 = sld [smem:[#allocation20_spill]] }
 0x6bd   : > { %v4719_v13 = vpack.c.bf16 %v4716_v29, %v4715_v28  ;;  %v4702_v16 = vadd.f32 %v8383_v30, %v4512_v8  ;;  %v8386_v26 = vadd.f32 %v8385_v52, %v8384_v25  ;;  %v9600_v8 = vld [vmem:[%s9847_s12 + $0x98] sm:$0xff]   ;;  %v8043_v29 = vld [vmem:[%s10763_s2] ss:$0 sm:$0xff]  ;;  %s10772_s2 = sld [smem:[#allocation15_spill]] }
 0x6bf   : > { %4721 = vst [vmem:[#allocation3 + $0x20] sm:$0xff] %v4719_v13  ;;  %v4713_v15 = vadd.f32 %v7985_v17, %v4702_v16  ;;  %v4703_v18 = vadd.f32 %v8386_v26, %v4515_v63  ;;  %v9602_v63 = vld [vmem:[%s9847_s12 + $0xa8] sm:$0xff]   ;;  %v5299_v16 = vadd.f32 %v10519_v37, %v8043_v29 }
 0x6c1   : > { %v4714_v33 = vadd.f32 %v7985_v17, %v4703_v18  ;;  %v4717_v35 = vmax.f32 %v4713_v15, 0.0  ;;  %v9609_v17 = vld [vmem:[%s10759_s23 + $0x60] sm:$0xff]  }
 0x6c2   : > { %8653 = vmatprep.subr.bf16.mxu1 %v9609_v17 }
 0x6c3   : > { %v4718_v36 = vmax.f32 %v4714_v33, 0.0  ;;  %8654 = vmatpush3.bf16.msra.mxu1 %v9609_v17  ;;  %v5291_v33 = vadd.f32 %v10515_v56, %v8043_v29  ;;  %v9634_v17 = vld [vmem:[%s10761_s28 + $0x68] sm:$0xff]  }
 0x6c4   : > { %8655 = vmatprep.subr.bf16.mxu1 %v9610_v19 }
 0x6c5   : > { %v10526_v10 = vpack.c.bf16 %v4718_v36, %v4717_v35  ;;  %v5302_v36 = vadd.f32 %v10521_v39, %v8043_v29  ;;  %v5335_v39 = vld [vmem:[#allocation2 + $0x10] sm:$0xf0] }
 0x6c6   : > { %v4756_v11 = vld [vmem:[#allocation3 + $0x20] sm:$0x3f] }
 0x6c7   : > { %4722 = vst [vmem:[#allocation3 + $0x50] sm:$0xff] %v10526_v10  ;;  %v4764_v60 = vrot.slane %v4756_v11, 6  ;;  %v4724_v43 = vld [vmem:[#allocation3 + $0x20] sm:$0xf]  ;;  %8656 = vmatpush3.bf16.msra.mxu1 %v9610_v19  ;;  %v5294_v11 = vadd.f32 %v10517_v34, %v8043_v29  ;;  %v5343_v34 = vrot.slane %v5335_v39, 4  ;;  %v9635_v19 = vld [vmem:[%s10761_s28 + $0x70] sm:$0xff]  }
 0x6c8   : > { %v4732_v46 = vrot.slane %v4724_v43, 4  ;;  %8657 = vmatprep.subr.bf16.mxu1 %v9611_v20  ;;  %v9659_v29 = vld [vmem:[%s10764_s7 + $0x70] sm:$0xff]  }
 0x6c9   : > { %v4765_v40 = vsel %vm2387_vm3, %v4763_v38, %v4764_v60  ;;  %v5719_v39 = vld [vmem:[#allocation3 + $0x10] sm:$0xf0] }
 0x6ca   : > { %8601 = vmatprep.mubr.bf16.mxu0 %v4765_v40  ;;  %v4733_v53 = vsel %vm4114_vm4, %v4731_v45, %v4732_v46  ;;  %v5337_v46 = vld [vmem:[#allocation2 + $0x40] sm:$0xf0] }
 0x6cb   : > { %8658 = vmatpush3.bf16.msra.mxu1 %v9611_v20  ;;  %v9636_v20 = vld [vmem:[%s10761_s28 + $0x78] sm:$0xff]  }
 0x6cc   : > { %8659 = vmatprep.subr.bf16.mxu1 %v9612_v21 }
 0x6ce   : > { %v4758_v44 = vld [vmem:[#allocation3 + $0x50] sm:$0x3f] }
 0x6cf   : > { %v4767_v49 = vrot.slane %v4758_v44, 6  ;;  %v4726_v0 = vld [vmem:[#allocation3 + $0x50] sm:$0xf]  ;;  %8660 = vmatpush3.bf16.msra.mxu1 %v9612_v21  ;;  %v10602_v21 = vld [vmem:[%s10761_s28] sm:$0xff]  }
 0x6d0   : > { %v4735_v2 = vrot.slane %v4726_v0, 4  ;;  %8665 = vmatprep.subr.bf16.mxu1 %v9613_v22  ;;  %v9617_v0 = vld [vmem:[%s10759_s23 + $0x20] sm:$0xff]  }
 0x6d1   : > { %v4768_v51 = vsel %vm2387_vm3, %v4766_v32, %v4767_v49 }
 0x6d2   : > { %8602 = vmatmul.mubr.bf16.vlgmr.msra.gmra.mrb[48].mxu0 %v4768_v51  ;;  %v4736_v3 = vsel %vm4114_vm4, %v4734_v5, %v4735_v2  ;;  %v5346_v51 = vrot.slane %v5337_v46, 4  ;;  %v9619_v5 = vld [vmem:[%s10759_s23 + $0x30] sm:$0xff]   ;;  %v9620_v2 = vld [vmem:[%s10759_s23 + $0x38] sm:$0xff]   ;;  %v5721_v46 = vld [vmem:[#allocation3 + $0x40] sm:$0xf0] }
 0x6d3   : > { %8606 = vmatpush3.bf16.msra.mxu0 %v10512_v58  ;;  %8621 = vmatprep.mubr.bf16.mxu0 %v4733_v53  ;;  %v9596_v58 = vld [vmem:[%s9847_s12 + $0x38] sm:$0xff]  }
 0x6d4   : > { %8607 = vmatprep.subr.bf16.mxu0 %v9590_v50 }
 0x6d7   : > { %8608 = vmatpush3.bf16.msra.mxu0 %v9590_v50 }
 0x6d8   : > { %8609 = vmatprep.subr.bf16.mxu0 %v9591_v54 }
 0x6db   : > { %8610 = vmatpush3.bf16.msra.mxu0 %v9591_v54 }
 0x6dc   : > { %8611 = vmatprep.subr.bf16.mxu0 %v9592_v55 }
 0x6df   : > { %8612 = vmatpush3.bf16.msra.mxu0 %v9592_v55 }
 0x6e0   : > { %8613 = vmatprep.subr.bf16.mxu0 %v9593_v57 }
 0x6e3   : > { %8614 = vmatpush3.bf16.msra.mxu0 %v9593_v57  ;;  %v9614_v57 = vld [vmem:[%s10759_s23 + $0x8] sm:$0xff]  }
 0x6e4   : > { %8615 = vmatprep.subr.bf16.mxu0 %v9594_v47 }
 0x6e7   : > { %8616 = vmatpush3.bf16.msra.mxu0 %v9594_v47 }
 0x6e8   : > { %8617 = vmatprep.subr.bf16.mxu0 %v9595_v6 }
 0x6eb   : > { %8618 = vmatpush3.bf16.msra.mxu0 %v9595_v6  ;;  %v10575_v6 = vld [vmem:[#allocation2 + $0x8] sm:$0xff] }
 0x6ec   : > { %8619 = vmatprep.subr.bf16.mxu0 %v9596_v58 }
 0x6ef   : > { %8620 = vmatpush3.bf16.msra.mxu0 %v9596_v58  ;;  %v9615_v58 = vld [vmem:[%s10759_s23 + $0x10] sm:$0xff]  }
 0x6f0   : > { %8625 = vmatprep.subr.bf16.mxu0 %v9597_v1 }
 0x6f2   : > { %8622 = vmatmul.mubr.bf16.vlgmr.msra.gmra.mrb[48].mxu0 %v4736_v3  ;;  %v9622_v3 = vld [vmem:[%s10759_s23 + $0x88] sm:$0xff]  }
 0x6f3   : > { %8626 = vmatpush3.bf16.msra.mxu0 %v9597_v1  ;;  %8641 = vmatprep.mubr.bf16.mxu0 %v4719_v13  ;;  %v9618_v1 = vld [vmem:[%s10759_s23 + $0x28] sm:$0xff]  }
 0x6f4   : > { %8627 = vmatprep.subr.bf16.mxu0 %v9598_v4 }
 0x6f7   : > { %8628 = vmatpush3.bf16.msra.mxu0 %v9598_v4  ;;  %v9621_v4 = vld [vmem:[%s10759_s23 + $0x80] sm:$0xff]  }
 0x6f8   : > { %8629 = vmatprep.subr.bf16.mxu0 %v9599_v7 }
 0x6fb   : > { %8630 = vmatpush3.bf16.msra.mxu0 %v9599_v7  ;;  %v9623_v7 = vld [vmem:[%s10759_s23 + $0x90] sm:$0xff]  }
 0x6fc   : > { %8631 = vmatprep.subr.bf16.mxu0 %v9600_v8 }
 0x6ff   : > { %8632 = vmatpush3.bf16.msra.mxu0 %v9600_v8  ;;  %v9624_v8 = vld [vmem:[%s10759_s23 + $0x98] sm:$0xff]  }
 0x700   : > { %8633 = vmatprep.subr.bf16.mxu0 %v9601_v31 }
 0x703   : > { %8634 = vmatpush3.bf16.msra.mxu0 %v9601_v31  ;;  %v9625_v31 = vld [vmem:[%s10759_s23 + $0xa0] sm:$0xff]  }
 0x704   : > { %8635 = vmatprep.subr.bf16.mxu0 %v9602_v63 }
 0x707   : > { %8636 = vmatpush3.bf16.msra.mxu0 %v9602_v63  ;;  %v9626_v63 = vld [vmem:[%s10759_s23 + $0xa8] sm:$0xff]  }
 0x708   : > { %8637 = vmatprep.subr.bf16.mxu0 %v9603_v61 }
 0x70b   : > { %8638 = vmatpush3.bf16.msra.mxu0 %v9603_v61  ;;  %v9627_v61 = vld [vmem:[%s10759_s23 + $0xb0] sm:$0xff]  }
 0x70c   : > { %8639 = vmatprep.subr.bf16.mxu0 %v9604_v9 }
 0x70f   : > { %8640 = vmatpush3.bf16.msra.mxu0 %v9604_v9  ;;  %v9628_v9 = vld [vmem:[%s10759_s23 + $0xb8] sm:$0xff]  }
 0x710   : > { %8705 = vmatprep.subr.bf16.mxu0 %v9629_v23 }
 0x712   : > { %8642 = vmatmul.mubr.bf16.vlgmr.msra.gmra.mrb[48].mxu0 %v10526_v10 }
 0x713   : > { %8706 = vmatpush3.bf16.msra.mxu0 %v9629_v23  ;;  %v9654_v23 = vld [vmem:[%s10764_s7 + $0x48] sm:$0xff]  }
 0x714   : > { %8707 = vmatprep.subr.bf16.mxu0 %v9630_v24 }
 0x717   : > { %8708 = vmatpush3.bf16.msra.mxu0 %v9630_v24  ;;  %v9655_v24 = vld [vmem:[%s10764_s7 + $0x50] sm:$0xff]  }
 0x718   : > { %8709 = vmatprep.subr.bf16.mxu0 %v9631_v27 }
 0x71b   : > { %8710 = vmatpush3.bf16.msra.mxu0 %v9631_v27  ;;  %v9656_v27 = vld [vmem:[%s10764_s7 + $0x58] sm:$0xff]  }
 0x71c   : > { %8711 = vmatprep.subr.bf16.mxu0 %v9632_v12 }
 0x71f   : > { %8712 = vmatpush3.bf16.msra.mxu0 %v9632_v12  ;;  %v9649_v12 = vld [vmem:[%s10761_s28 + $0xa0] sm:$0xff]  }
 0x720   : > { %8713 = vmatprep.subr.bf16.mxu0 %v9633_v14 }
 0x723   : > { %8714 = vmatpush3.bf16.msra.mxu0 %v9633_v14  ;;  %v9650_v14 = vld [vmem:[%s10761_s28 + $0xa8] sm:$0xff]  }
 0x724   : > { %8715 = vmatprep.subr.bf16.mxu0 %v9634_v17 }
 0x727   : > { %8716 = vmatpush3.bf16.msra.mxu0 %v9634_v17  ;;  %v9651_v17 = vld [vmem:[%s10761_s28 + $0xb0] sm:$0xff]  }
 0x728   : > { %8717 = vmatprep.subr.bf16.mxu0 %v9635_v19 }
 0x72b   : > { %8718 = vmatpush3.bf16.msra.mxu0 %v9635_v19  ;;  %v9652_v19 = vld [vmem:[%s10761_s28 + $0xb8] sm:$0xff]  }
 0x72c   : > { %8719 = vmatprep.subr.bf16.mxu0 %v9636_v20 }
 0x72f   : > { %8720 = vmatpush3.bf16.msra.mxu0 %v9636_v20  ;;  %v9672_v20 = vld [vmem:[%s10764_s7 + $0x98] sm:$0xff]  }
 0x730   : > { %8725 = vmatprep.subr.bf16.mxu0 %v10602_v21 }
 0x7e5   : > { %v8643_v28 = vpop.f32.mrb[48].mxu0 }
 0x7e6   : > { %v5111_v30 = vadd.f32 %v8643_v28, %v8042_v59  ;;  %v5083_v25 = vpop.f32.mrb[49].mxu0  ;;  %v9658_v28 = vld [vmem:[%s10764_s7 + $0x68] sm:$0xff]  }
 0x7e7   : > { %v5109_v52 = vadd.f32 %v8042_v59, %v5083_v25  ;;  %v8644_v13 = vpop.f32.mrb[50].mxu0  ;;  %v9661_v25 = vld [vmem:[%s10764_s7] sm:$0xff]  }
 0x7e8   : > { %v5115_v26 = vmax.f32 %v5111_v30, 0.0  ;;  %v5112_v15 = vadd.f32 %v8644_v13, %v8042_v59  ;;  %v5086_v18 = vpop.f32.mrb[51].mxu0  ;;  %v9660_v30 = vld [vmem:[%s10764_s7 + $0x78] sm:$0xff]   ;;  %v9663_v13 = vld [vmem:[%s10764_s7 + $0x10] sm:$0xff]  }
 0x7e9   : > { %v5113_v48 = vmax.f32 %v5109_v52, 0.0  ;;  %v5110_v35 = vadd.f32 %v8042_v59, %v5086_v18  ;;  %v9657_v59 = vld [vmem:[%s10764_s7 + $0x60] sm:$0xff]   ;;  %v9662_v52 = vld [vmem:[%s10764_s7 + $0x8] sm:$0xff]  }
 0x7ea   : > { %v5307_v10 = vadd.f32 %v5299_v16, %v5115_v26  ;;  %v5116_v38 = vmax.f32 %v5112_v15, 0.0  ;;  %v8116_v16 = vld [vmem:[%s10765_s10] ss:$0 sm:$0xff]  ;;  %v9664_v26 = vld [vmem:[%s10764_s7 + $0x18] sm:$0xff]   ;;  %s10773_s10 = sld [smem:[#allocation17_spill]] }
 0x7eb   : > { %v5305_v60 = vadd.f32 %v5291_v33, %v5113_v48  ;;  %v5114_v40 = vmax.f32 %v5110_v35, 0.0 }
 0x7ec   : > { %v5308_v41 = vadd.f32 %v5302_v36, %v5116_v38  ;;  %v5311_v43 = vmax.f32 %v5307_v10, 0.0  ;;  %v9665_v36 = vld [vmem:[%s10764_s7 + $0x20] sm:$0xff]  }
 0x7ed   : > { %v5306_v42 = vadd.f32 %v5294_v11, %v5114_v40  ;;  %v5309_v37 = vmax.f32 %v5305_v60, 0.0 }
 0x7ee   : > { %v5312_v32 = vmax.f32 %v5308_v41, 0.0 }
 0x7ef   : > { %v5310_v44 = vmax.f32 %v5306_v42, 0.0 }
 0x7f0   : > { %v10566_v45 = vpack.c.bf16 %v5312_v32, %v5311_v43  ;;  %v9666_v43 = vld [vmem:[%s10764_s7 + $0x28] sm:$0xff]  }
 0x7f1   : > { %v10568_v56 = vpack.c.bf16 %v5310_v44, %v5309_v37  ;;  %v9667_v44 = vld [vmem:[%s10764_s7 + $0x30] sm:$0xff]  }
 0x7f2   : > { %5316 = vst [vmem:[#allocation2 + $0x50] sm:$0xff] %v10566_v45 }
 0x7f3   : > { %5315 = vst [vmem:[#allocation2 + $0x20] sm:$0xff] %v10568_v56 }
 0x7f9   : > { %v5338_v49 = vld [vmem:[#allocation2 + $0x50] sm:$0xf] }
 0x7fa   : > { %v5336_v50 = vld [vmem:[#allocation2 + $0x20] sm:$0xf]  ;;  %v5347_v53 = vrot.slane %v5338_v49, 4  ;;  %v5727_v49 = vrot.slane %v5719_v39, 4 }
 0x7fb   : > { %v5344_v54 = vrot.slane %v5336_v50, 4 }
 0x7fc   : > { %v5348_v47 = vsel %vm4114_vm4, %v5346_v51, %v5347_v53  ;;  %v5730_v53 = vrot.slane %v5721_v46, 4 }
 0x7fd   : > { %v5345_v55 = vsel %vm4114_vm4, %v5343_v34, %v5344_v54  ;;  %v9668_v34 = vld [vmem:[%s10764_s7 + $0x38] sm:$0xff]  }
 0x7fe   : > { %8661 = vmatprep.mubr.bf16.mxu1 %v5345_v55 }
 0x7ff   : > { %8662 = vmatmul.mubr.bf16.vlgmr.msra.gmra.mrb[24].mxu1 %v5348_v47 }
 0x800   : > { %8666 = vmatpush3.bf16.msra.mxu1 %v9613_v22  ;;  %8681 = vmatprep.mubr.bf16.mxu1 %v10575_v6  ;;  %v9653_v22 = vld [vmem:[%s10764_s7 + $0x40] sm:$0xff]  }
 0x801   : > { %8667 = vmatprep.subr.bf16.mxu1 %v9614_v57 }
 0x804   : > { %8668 = vmatpush3.bf16.msra.mxu1 %v9614_v57  ;;  %v9669_v57 = vld [vmem:[%s10764_s7 + $0x80] sm:$0xff]  }
 0x805   : > { %8669 = vmatprep.subr.bf16.mxu1 %v9615_v58 }
 0x808   : > { %8670 = vmatpush3.bf16.msra.mxu1 %v9615_v58  ;;  %v9638_v58 = vld [vmem:[%s10761_s28 + $0x8] sm:$0xff]  }
 0x809   : > { %8671 = vmatprep.subr.bf16.mxu1 %v9616_v62 }
 0x80c   : > { %8672 = vmatpush3.bf16.msra.mxu1 %v9616_v62 }
 0x80d   : > { %8673 = vmatprep.subr.bf16.mxu1 %v9617_v0 }
 0x810   : > { %8674 = vmatpush3.bf16.msra.mxu1 %v9617_v0  ;;  %v9670_v0 = vld [vmem:[%s10764_s7 + $0x88] sm:$0xff]  }
 0x811   : > { %8675 = vmatprep.subr.bf16.mxu1 %v9618_v1 }
 0x814   : > { %8676 = vmatpush3.bf16.msra.mxu1 %v9618_v1  ;;  %v9639_v1 = vld [vmem:[%s10761_s28 + $0x10] sm:$0xff]  }
 0x815   : > { %8677 = vmatprep.subr.bf16.mxu1 %v9619_v5 }
 0x818   : > { %8678 = vmatpush3.bf16.msra.mxu1 %v9619_v5  ;;  %v9671_v5 = vld [vmem:[%s10764_s7 + $0x90] sm:$0xff]  }
 0x819   : > { %8679 = vmatprep.subr.bf16.mxu1 %v9620_v2 }
 0x81c   : > { %8680 = vmatpush3.bf16.msra.mxu1 %v9620_v2  ;;  %v9640_v2 = vld [vmem:[%s10761_s28 + $0x18] sm:$0xff]  }
 0x81d   : > { %8685 = vmatprep.subr.bf16.mxu1 %v9621_v4 }
 0x81f   : > { %8682 = vmatmul.mubr.bf16.vlgmr.msra.gmra.mrb[24].mxu1 %v10575_v6 }
 0x820   : > { %8686 = vmatpush3.bf16.msra.mxu1 %v9621_v4  ;;  %8701 = vmatprep.mubr.bf16.mxu1 %v10568_v56  ;;  %v9641_v4 = vld [vmem:[%s10761_s28 + $0x20] sm:$0xff]  }
 0x821   : > { %8687 = vmatprep.subr.bf16.mxu1 %v9622_v3 }
 0x824   : > { %8688 = vmatpush3.bf16.msra.mxu1 %v9622_v3  ;;  %v9642_v3 = vld [vmem:[%s10761_s28 + $0x28] sm:$0xff]  }
 0x825   : > { %8689 = vmatprep.subr.bf16.mxu1 %v9623_v7 }
 0x828   : > { %8690 = vmatpush3.bf16.msra.mxu1 %v9623_v7  ;;  %v9643_v7 = vld [vmem:[%s10761_s28 + $0x30] sm:$0xff]  }
 0x829   : > { %8691 = vmatprep.subr.bf16.mxu1 %v9624_v8 }
 0x82c   : > { %8692 = vmatpush3.bf16.msra.mxu1 %v9624_v8  ;;  %v9644_v8 = vld [vmem:[%s10761_s28 + $0x38] sm:$0xff]  }
 0x82d   : > { %8693 = vmatprep.subr.bf16.mxu1 %v9625_v31 }
 0x830   : > { %8694 = vmatpush3.bf16.msra.mxu1 %v9625_v31  ;;  %v9645_v31 = vld [vmem:[%s10761_s28 + $0x80] sm:$0xff]  }
 0x831   : > { %8695 = vmatprep.subr.bf16.mxu1 %v9626_v63 }
 0x834   : > { %8696 = vmatpush3.bf16.msra.mxu1 %v9626_v63  ;;  %v9646_v63 = vld [vmem:[%s10761_s28 + $0x88] sm:$0xff]  }
 0x835   : > { %8697 = vmatprep.subr.bf16.mxu1 %v9627_v61 }
 0x838   : > { %8698 = vmatpush3.bf16.msra.mxu1 %v9627_v61  ;;  %v9647_v61 = vld [vmem:[%s10761_s28 + $0x90] sm:$0xff]  }
 0x839   : > { %8699 = vmatprep.subr.bf16.mxu1 %v9628_v9 }
 0x83c   : > { %8700 = vmatpush3.bf16.msra.mxu1 %v9628_v9  ;;  %v9648_v9 = vld [vmem:[%s10761_s28 + $0x98] sm:$0xff]  }
 0x83d   : > { %8765 = vmatprep.subr.bf16.mxu1 %v9653_v22 }
 0x83f   : > { %8702 = vmatmul.mubr.bf16.vlgmr.msra.gmra.mrb[24].mxu1 %v10566_v45 }
 0x840   : > { %8781 = vmatprep.mubr.bf16.mxu1 %v10575_v6  ;;  %8766 = vmatpush3.bf16.msra.mxu1 %v9653_v22  ;;  %v9674_v22 = vld [vmem:[%s10764_s7 + $0xa8] sm:$0xff]  }
 0x841   : > { %8767 = vmatprep.subr.bf16.mxu1 %v9654_v23 }
 0x844   : > { %8768 = vmatpush3.bf16.msra.mxu1 %v9654_v23  ;;  %v9675_v23 = vld [vmem:[%s10764_s7 + $0xb0] sm:$0xff]  }
 0x845   : > { %8769 = vmatprep.subr.bf16.mxu1 %v9655_v24 }
 0x848   : > { %8770 = vmatpush3.bf16.msra.mxu1 %v9655_v24  ;;  %v9676_v24 = vld [vmem:[%s10764_s7 + $0xb8] sm:$0xff]  }
 0x849   : > { %8771 = vmatprep.subr.bf16.mxu1 %v9656_v27 }
 0x84c   : > { %8772 = vmatpush3.bf16.msra.mxu1 %v9656_v27  ;;  %v9677_v27 = vld [vmem:[%s10766_s11 + $0x20] sm:$0xff]  }
 0x84d   : > { %8773 = vmatprep.subr.bf16.mxu1 %v9657_v59 }
 0x850   : > { %8774 = vmatpush3.bf16.msra.mxu1 %v9657_v59  ;;  %v9678_v59 = vld [vmem:[%s10766_s11 + $0x28] sm:$0xff]  }
 0x851   : > { %8775 = vmatprep.subr.bf16.mxu1 %v9658_v28 }
 0x854   : > { %8776 = vmatpush3.bf16.msra.mxu1 %v9658_v28  ;;  %v9679_v28 = vld [vmem:[%s10766_s11 + $0x30] sm:$0xff]  }
 0x855   : > { %8777 = vmatprep.subr.bf16.mxu1 %v9659_v29 }
 0x858   : > { %8778 = vmatpush3.bf16.msra.mxu1 %v9659_v29  ;;  %v9680_v29 = vld [vmem:[%s10766_s11 + $0x38] sm:$0xff]  }
 0x859   : > { %8779 = vmatprep.subr.bf16.mxu1 %v9660_v30 }
 0x85c   : > { %8780 = vmatpush3.bf16.msra.mxu1 %v9660_v30  ;;  %v9681_v30 = vld [vmem:[%s10766_s11] sm:$0xff]  }
 0x85d   : > { %8785 = vmatprep.subr.bf16.mxu1 %v9661_v25 }
 0x85f   : > { %8782 = vmatmul.mubr.bf16.vlgmr.msra.gmra.mrb[28].mxu1 %v10575_v6 }
 0x860   : > { %8786 = vmatpush3.bf16.msra.mxu1 %v9661_v25  ;;  %8801 = vmatprep.mubr.bf16.mxu1 %v10575_v6  ;;  %v9682_v25 = vld [vmem:[%s10766_s11 + $0x8] sm:$0xff]  }
 0x861   : > { %8787 = vmatprep.subr.bf16.mxu1 %v9662_v52 }
 0x864   : > { %8788 = vmatpush3.bf16.msra.mxu1 %v9662_v52  ;;  %v9683_v52 = vld [vmem:[%s10766_s11 + $0x10] sm:$0xff]  }
 0x865   : > { %8789 = vmatprep.subr.bf16.mxu1 %v9663_v13 }
 0x868   : > { %8790 = vmatpush3.bf16.msra.mxu1 %v9663_v13  ;;  %v9684_v13 = vld [vmem:[%s10766_s11 + $0x18] sm:$0xff]  }
 0x869   : > { %8791 = vmatprep.subr.bf16.mxu1 %v9664_v26 }
 0x86c   : > { %8792 = vmatpush3.bf16.msra.mxu1 %v9664_v26 }
 0x86d   : > { %8793 = vmatprep.subr.bf16.mxu1 %v9665_v36 }
 0x870   : > { %8794 = vmatpush3.bf16.msra.mxu1 %v9665_v36  ;;  %v6085_v36 = vunpack.c.l.bf16 %v10566_v45 }
 0x871   : > { %8795 = vmatprep.subr.bf16.mxu1 %v9666_v43 }
 0x874   : > { %8796 = vmatpush3.bf16.msra.mxu1 %v9666_v43  ;;  %v6086_v43 = vunpack.c.h.bf16 %v10566_v45  ;;  %v9685_v45 = vld [vmem:[%s10766_s11 + $0x40] sm:$0xff]  }
 0x875   : > { %8797 = vmatprep.subr.bf16.mxu1 %v9667_v44 }
 0x878   : > { %8798 = vmatpush3.bf16.msra.mxu1 %v9667_v44 }
 0x879   : > { %8799 = vmatprep.subr.bf16.mxu1 %v9668_v34 }
 0x87c   : > { %8800 = vmatpush3.bf16.msra.mxu1 %v9668_v34 }
 0x87d   : > { %8805 = vmatprep.subr.bf16.mxu1 %v9669_v57 }
 0x87f   : > { %8802 = vmatmul.mubr.bf16.vlgmr.msra.gmra.mrb[28].mxu1 %v10575_v6 }
 0x880   : > { %8806 = vmatpush3.bf16.msra.mxu1 %v9669_v57  ;;  %v9689_v57 = vld [vmem:[%s10768_s0] sm:$0xff]  }
 0x881   : > { %8807 = vmatprep.subr.bf16.mxu1 %v9670_v0 }
 0x884   : > { %8808 = vmatpush3.bf16.msra.mxu1 %v9670_v0 }
 0x885   : > { %8809 = vmatprep.subr.bf16.mxu1 %v9671_v5 }
 0x888   : > { %8810 = vmatpush3.bf16.msra.mxu1 %v9671_v5 }
 0x889   : > { %8811 = vmatprep.subr.bf16.mxu1 %v9672_v20 }
 0x88c   : > { %8812 = vmatpush3.bf16.msra.mxu1 %v9672_v20  ;;  %v9692_v20 = vld [vmem:[%s10768_s0 + $0x18] sm:$0xff]  }
 0x912   : > { %v8703_v15 = vpop.f32.mrb[24].mxu1 }
 0x913   : > { %v5691_v18 = vadd.f32 %v8703_v15, %v8116_v16  ;;  %v5663_v33 = vpop.f32.mrb[25].mxu1 }
 0x914   : > { %v5689_v48 = vadd.f32 %v8116_v16, %v5663_v33  ;;  %v8704_v35 = vpop.f32.mrb[26].mxu1 }
 0x915   : > { %v5692_v10 = vadd.f32 %v8704_v35, %v8116_v16  ;;  %v5666_v38 = vpop.f32.mrb[27].mxu1  ;;  %v5695_v60 = vmax.f32 %v5691_v18, 0.0 }
 0x916   : > { %v5690_v11 = vadd.f32 %v8116_v16, %v5666_v38  ;;  %v5693_v41 = vmax.f32 %v5689_v48, 0.0  ;;  %v8173_v16 = vld [vmem:[%s10767_s16] ss:$0 sm:$0xff]  ;;  %s10774_s16 = sld [smem:[#allocation19_spill]] }
 0x917   : > { %v5696_v40 = vmax.f32 %v5692_v10, 0.0 }
 0x918   : > { %v5694_v42 = vmax.f32 %v5690_v11, 0.0 }
 0x919   : > { %v10622_v32 = vpack.c.bf16 %v5696_v40, %v5695_v60  ;;  %v6083_v60 = vunpack.c.l.bf16 %v10568_v56 }
 0x91a   : > { %v5697_v37 = vpack.c.bf16 %v5694_v42, %v5693_v41 }
 0x91b   : > { %5700 = vst [vmem:[#allocation3 + $0x50] sm:$0xff] %v10622_v32 }
 0x91c   : > { %5699 = vst [vmem:[#allocation3 + $0x20] sm:$0xff] %v5697_v37 }
 0x922   : > { %v5722_v50 = vld [vmem:[#allocation3 + $0x50] sm:$0xf] }
 0x923   : > { %v5720_v51 = vld [vmem:[#allocation3 + $0x20] sm:$0xf]  ;;  %v5731_v54 = vrot.slane %v5722_v50, 4 }
 0x924   : > { %v5728_v55 = vrot.slane %v5720_v51, 4 }
 0x925   : > { %v5732_v62 = vsel %vm4114_vm4, %v5730_v53, %v5731_v54  ;;  %v9687_v54 = vld [vmem:[%s10766_s11 + $0x50] sm:$0xff]  }
 0x926   : > { %v5729_v47 = vsel %vm4114_vm4, %v5727_v49, %v5728_v55  ;;  %v9688_v55 = vld [vmem:[%s10766_s11 + $0x58] sm:$0xff]  }
 0x927   : > { %8721 = vmatprep.mubr.bf16.mxu0 %v5729_v47  ;;  %v8230_v47 = vld [vmem:[%s10769_s22] ss:$0 sm:$0xff]  ;;  %s10775_s22 = sld [smem:[#allocation4_spill]] }
 0x928   : > { %8722 = vmatmul.mubr.bf16.vlgmr.msra.gmra.mrb[52].mxu0 %v5732_v62 }
 0x929   : > { %8726 = vmatpush3.bf16.msra.mxu0 %v10602_v21  ;;  %8741 = vmatprep.mubr.bf16.mxu0 %v10575_v6  ;;  %v9673_v21 = vld [vmem:[%s10764_s7 + $0xa0] sm:$0xff]  }
 0x92a   : > { %8727 = vmatprep.subr.bf16.mxu0 %v9638_v58  ;;  %8813 = vmatprep.subr.bf16.mxu1 %v9673_v21 }
 0x92b   : > { %8814 = vmatpush3.bf16.msra.mxu1 %v9673_v21  ;;  %v9693_v21 = vld [vmem:[%s10768_s0 + $0x20] sm:$0xff]  }
 0x92c   : > { %8815 = vmatprep.subr.bf16.mxu1 %v9674_v22 }
 0x92d   : > { %8728 = vmatpush3.bf16.msra.mxu0 %v9638_v58 }
 0x92e   : > { %8729 = vmatprep.subr.bf16.mxu0 %v9639_v1 }
 0x92f   : > { %8816 = vmatpush3.bf16.msra.mxu1 %v9674_v22  ;;  %v9694_v22 = vld [vmem:[%s10768_s0 + $0x28] sm:$0xff]  }
 0x930   : > { %8817 = vmatprep.subr.bf16.mxu1 %v9675_v23 }
 0x931   : > { %8730 = vmatpush3.bf16.msra.mxu0 %v9639_v1 }
 0x932   : > { %8731 = vmatprep.subr.bf16.mxu0 %v9640_v2 }
 0x933   : > { %8818 = vmatpush3.bf16.msra.mxu1 %v9675_v23  ;;  %v9695_v23 = vld [vmem:[%s10768_s0 + $0x30] sm:$0xff]  }
 0x934   : > { %8819 = vmatprep.subr.bf16.mxu1 %v9676_v24 }
 0x935   : > { %8732 = vmatpush3.bf16.msra.mxu0 %v9640_v2 }
 0x936   : > { %8733 = vmatprep.subr.bf16.mxu0 %v9641_v4 }
 0x937   : > { %8820 = vmatpush3.bf16.msra.mxu1 %v9676_v24  ;;  %v9696_v24 = vld [vmem:[%s10768_s0 + $0x38] sm:$0xff]  }
 0x939   : > { %8734 = vmatpush3.bf16.msra.mxu0 %v9641_v4 }
 0x93a   : > { %8735 = vmatprep.subr.bf16.mxu0 %v9642_v3 }
 0x93d   : > { %8736 = vmatpush3.bf16.msra.mxu0 %v9642_v3 }
 0x93e   : > { %8737 = vmatprep.subr.bf16.mxu0 %v9643_v7 }
 0x941   : > { %8738 = vmatpush3.bf16.msra.mxu0 %v9643_v7 }
 0x942   : > { %8739 = vmatprep.subr.bf16.mxu0 %v9644_v8 }
 0x945   : > { %8740 = vmatpush3.bf16.msra.mxu0 %v9644_v8 }
 0x946   : > { %8745 = vmatprep.subr.bf16.mxu0 %v9645_v31 }
 0x948   : > { %8742 = vmatmul.mubr.bf16.vlgmr.msra.gmra.mrb[52].mxu0 %v10575_v6 }
 0x949   : > { %8746 = vmatpush3.bf16.msra.mxu0 %v9645_v31  ;;  %8761 = vmatprep.mubr.bf16.mxu0 %v5697_v37  ;;  %v6084_v37 = vunpack.c.h.bf16 %v10568_v56  ;;  %v9686_v56 = vld [vmem:[%s10766_s11 + $0x48] sm:$0xff]  }
 0x94a   : > { %8747 = vmatprep.subr.bf16.mxu0 %v9646_v63 }
 0x94d   : > { %8748 = vmatpush3.bf16.msra.mxu0 %v9646_v63 }
 0x94e   : > { %8749 = vmatprep.subr.bf16.mxu0 %v9647_v61 }
 0x951   : > { %8750 = vmatpush3.bf16.msra.mxu0 %v9647_v61 }
 0x952   : > { %8751 = vmatprep.subr.bf16.mxu0 %v9648_v9 }
 0x955   : > { %8752 = vmatpush3.bf16.msra.mxu0 %v9648_v9 }
 0x956   : > { %8753 = vmatprep.subr.bf16.mxu0 %v9649_v12 }
 0x959   : > { %8754 = vmatpush3.bf16.msra.mxu0 %v9649_v12 }
 0x95a   : > { %8755 = vmatprep.subr.bf16.mxu0 %v9650_v14 }
 0x95d   : > { %8756 = vmatpush3.bf16.msra.mxu0 %v9650_v14  ;;  %v9690_v14 = vld [vmem:[%s10768_s0 + $0x8] sm:$0xff]  }
 0x95e   : > { %8757 = vmatprep.subr.bf16.mxu0 %v9651_v17 }
 0x961   : > { %8758 = vmatpush3.bf16.msra.mxu0 %v9651_v17 }
 0x962   : > { %8759 = vmatprep.subr.bf16.mxu0 %v9652_v19 }
 0x965   : > { %8760 = vmatpush3.bf16.msra.mxu0 %v9652_v19  ;;  %v9691_v19 = vld [vmem:[%s10768_s0 + $0x10] sm:$0xff]  }
 0x966   : > { %8825 = vmatprep.subr.bf16.mxu0 %v9677_v27 }
 0x968   : > { %8762 = vmatmul.mubr.bf16.vlgmr.msra.gmra.mrb[52].mxu0 %v10622_v32 }
 0x969   : > { %8833 = vmatprep.mubr.msk.bf16.mxu0 %vm6467_vm5, %v10575_v6  ;;  %8826 = vmatpush3.bf16.msra.mxu0 %v9677_v27  ;;  %v9697_v27 = vld [vmem:[%s10770_s26] sm:$0xff]  }
 0x96a   : > { %8827 = vmatprep.subr.bf16.mxu0 %v9678_v59 }
 0x96d   : > { %8828 = vmatpush3.bf16.msra.mxu0 %v9678_v59  ;;  %v9698_v59 = vld [vmem:[%s10770_s26 + $0x8] sm:$0xff]  }
 0x96e   : > { %8829 = vmatprep.subr.bf16.mxu0 %v9679_v28 }
 0x971   : > { %8830 = vmatpush3.bf16.msra.mxu0 %v9679_v28  ;;  %v9699_v28 = vld [vmem:[%s10770_s26 + $0x10] sm:$0xff]  }
 0x972   : > { %8831 = vmatprep.subr.bf16.mxu0 %v9680_v29 }
 0x975   : > { %8832 = vmatpush3.bf16.msra.mxu0 %v9680_v29  ;;  %v9700_v29 = vld [vmem:[%s10770_s26 + $0x18] sm:$0xff]  }
 0x976   : > { %8837 = vmatprep.subr.bf16.mxu0 %v9681_v30 }
 0x978   : > { %8834 = vmatmul.mubr.msk.bf16.vlgmr.msra.gmra.mrb[56].mxu0 %vm6467_vm5, %v10575_v6 }
 0x979   : > { %8838 = vmatpush3.bf16.msra.mxu0 %v9681_v30  ;;  %8845 = vmatprep.mubr.msk.bf16.mxu0 %vm6467_vm5, %v10575_v6  ;;  %v9701_v30 = vld [vmem:[%s10771_s1] sm:$0xff]  }
 0x97a   : > { %8839 = vmatprep.subr.bf16.mxu0 %v9682_v25 }
 0x97d   : > { %8840 = vmatpush3.bf16.msra.mxu0 %v9682_v25 }
 0x97e   : > { %8841 = vmatprep.subr.bf16.mxu0 %v9683_v52 }
 0x981   : > { %8842 = vmatpush3.bf16.msra.mxu0 %v9683_v52 }
 0x982   : > { %8843 = vmatprep.subr.bf16.mxu0 %v9684_v13 }
 0x985   : > { %8844 = vmatpush3.bf16.msra.mxu0 %v9684_v13 }
 0x986   : > { %8849 = vmatprep.subr.bf16.mxu0 %v9685_v45 }
 0x988   : > { %8846 = vmatmul.mubr.msk.bf16.vlgmr.msra.gmra.mrb[56].mxu0 %vm6467_vm5, %v10575_v6 }
 0x989   : > { %8850 = vmatpush3.bf16.msra.mxu0 %v9685_v45 }
 0x98a   : > { %8851 = vmatprep.subr.bf16.mxu0 %v9686_v56 }
 0x98d   : > { %8852 = vmatpush3.bf16.msra.mxu0 %v9686_v56 }
 0x98e   : > { %8853 = vmatprep.subr.bf16.mxu0 %v9687_v54 }
 0x991   : > { %8854 = vmatpush3.bf16.msra.mxu0 %v9687_v54 }
 0x992   : > { %8855 = vmatprep.subr.bf16.mxu0 %v9688_v55 }
 0x995   : > { %8856 = vmatpush3.bf16.msra.mxu0 %v9688_v55  ;;  %v9702_v55 = vld [vmem:[%s10771_s1 + $0x8] sm:$0xff]  }
 0x996   : > { %8861 = vmatprep.subr.bf16.mxu0 %v9689_v57 }
 0xa3b   : > { %v8763_v26 = vpop.f32.mrb[52].mxu0 }
 0xa3c   : > { %v6075_v15 = vadd.f32 %v8763_v26, %v8173_v16  ;;  %v6047_v18 = vpop.f32.mrb[53].mxu0  ;;  %v8265_v26 = vld [vmem:[%s10772_s2] ss:$0 sm:$0xff]  ;;  %s9768_s2 = smov 96  }
 0xa3d   : > { %v6073_v33 = vadd.f32 %v8173_v16, %v6047_v18  ;;  %v8764_v48 = vpop.f32.mrb[54].mxu0 }
 0xa3e   : > { %v6079_v35 = vmax.f32 %v6075_v15, 0.0  ;;  %v6076_v10 = vadd.f32 %v8764_v48, %v8173_v16  ;;  %v6050_v38 = vpop.f32.mrb[55].mxu0 }
 0xa3f   : > { %v6077_v11 = vmax.f32 %v6073_v33, 0.0  ;;  %v6074_v40 = vadd.f32 %v8173_v16, %v6050_v38  ;;  %v8266_v33 = vld [vmem:[%s10773_s10] ss:$0 sm:$0xff]  ;;  %s1067_s10 = scalar_lea.vmem %s10775_s22, %s9970_s18 }
 0xa40   : > { %v6089_v41 = vadd.f32 %v6085_v36, %v6079_v35  ;;  %v6080_v42 = vmax.f32 %v6076_v10, 0.0 }
 0xa41   : > { %v6087_v6 = vadd.f32 %v6083_v60, %v6077_v11  ;;  %v6078_v32 = vmax.f32 %v6074_v40, 0.0 }
 0xa42   : > { %v6090_v44 = vadd.f32 %v6086_v43, %v6080_v42  ;;  %v6093_v46 = vmax.f32 %v6089_v41, 0.0 }
 0xa43   : > { %v6088_v39 = vadd.f32 %v6084_v37, %v6078_v32  ;;  %v6091_v49 = vmax.f32 %v6087_v6, 0.0 }
 0xa44   : > { %v6094_v34 = vmax.f32 %v6090_v44, 0.0 }
 0xa45   : > { %v6092_v50 = vmax.f32 %v6088_v39, 0.0 }
 0xa46   : > { %v10678_v51 = vpack.c.bf16 %v6094_v34, %v6093_v46 }
 0xa47   : > { %v6095_v53 = vpack.c.bf16 %v6092_v50, %v6091_v49 }
 0xa48   : > { %6098 = vst [vmem:[#allocation2 + $0x50] sm:$0xff] %v10678_v51 }
 0xa49   : > { %6097 = vst [vmem:[#allocation2 + $0x20] sm:$0xff] %v6095_v53  ;;  %8821 = vmatprep.mubr.bf16.mxu1 %v6095_v53 }
 0xa4a   : > { %8822 = vmatmul.mubr.bf16.vlgmr.msra.gmra.mrb[28].mxu1 %v10678_v51 }
 0xb1d   : > { %v8823_v58 = vpop.f32.mrb[28].mxu1 }
 0xb1e   : > { %v6459_v62 = vadd.f32 %v8823_v58, %v8230_v47  ;;  %v6431_v0 = vpop.f32.mrb[29].mxu1  ;;  %v9704_v58 = vld [vmem:[%s10771_s1 + $0x18] sm:$0xff]  }
 0xb1f   : > { %v6457_v1 = vadd.f32 %v8230_v47, %v6431_v0  ;;  %v8824_v5 = vpop.f32.mrb[30].mxu1  ;;  %v9706_v0 = vld [vmem:[%s9937_s6 + $0x8] sm:$0xff]  }
 0xb20   : > { %v6460_v2 = vadd.f32 %v8824_v5, %v8230_v47  ;;  %v6434_v4 = vpop.f32.mrb[31].mxu1  ;;  %v6463_v7 = vmax.f32 %v6459_v62, 0.0  ;;  %v9705_v62 = vld [vmem:[%s9937_s6] sm:$0xff]   ;;  %v9708_v5 = vld [vmem:[%s9937_s6 + $0x18] sm:$0xff]  }
 0xb21   : > { %v6458_v3 = vadd.f32 %v8230_v47, %v6434_v4  ;;  %v6461_v31 = vmax.f32 %v6457_v1, 0.0  ;;  %v9703_v47 = vld [vmem:[%s10771_s1 + $0x10] sm:$0xff]   ;;  %8905 = vmatprep.subr.bf16.mxu1 %v9705_v62  ;;  %v9710_v4 = vld [vmem:[%s9937_s6 + $0x28] sm:$0xff]  }
 0xb22   : > { %v6464_v8 = vmax.f32 %v6460_v2, 0.0  ;;  %8906 = vmatpush3.bf16.msra.mxu1 %v9705_v62  ;;  %v9707_v1 = vld [vmem:[%s9937_s6 + $0x10] sm:$0xff]   ;;  %v9709_v2 = vld [vmem:[%s9937_s6 + $0x20] sm:$0xff]  }
 0xb23   : > { %v6462_v63 = vmax.f32 %v6458_v3, 0.0  ;;  %8907 = vmatprep.subr.bf16.mxu1 %v9706_v0 }
 0xb24   : > { %v6466_v61 = vpack.c.bf16 %v6464_v8, %v6463_v7  ;;  %v8275_v7 = vld [vmem:[%s10774_s16] ss:$0 sm:$0xff]  ;;  %s1074_s16 = scalar_lea.vmem %s9947_s9, %s9970_s18 }
 0xb25   : > { %v6465_v9 = vpack.c.bf16 %v6462_v63, %v6461_v31 }
 0xb26   : > { %6469 = vst.msk [vmem:[#allocation3 + $0x50] sm:$0xff] %vm6467_vm5, %v6466_v61  ;;  %8908 = vmatpush3.bf16.msra.mxu1 %v9706_v0 }
 0xb27   : > { %6468 = vst.msk [vmem:[#allocation3 + $0x20] sm:$0xff] %vm6467_vm5, %v6465_v9  ;;  %8909 = vmatprep.subr.bf16.mxu1 %v9707_v1 }
 0xb2a   : > { %8910 = vmatpush3.bf16.msra.mxu1 %v9707_v1 }
 0xb2b   : > { %8911 = vmatprep.subr.bf16.mxu1 %v9708_v5 }
 0xb2d   : > { %v6650_v17 = vld [vmem:[#allocation3 + $0x50] sm:$0xff] }
 0xb2e   : > { %v6649_v12 = vld [vmem:[#allocation3 + $0x20] sm:$0xff]  ;;  %8912 = vmatpush3.bf16.msra.mxu1 %v9708_v5 }
 0xb2f   : > { %8857 = vmatprep.mubr.msk.bf16.mxu0 %vm6467_vm5, %v6649_v12  ;;  %8913 = vmatprep.subr.bf16.mxu1 %v9709_v2 }
 0xb30   : > { %8858 = vmatmul.mubr.msk.bf16.vlgmr.msra.gmra.mrb[56].mxu0 %vm6467_vm5, %v6650_v17 }
 0xb31   : > { %8862 = vmatpush3.bf16.msra.mxu0 %v9689_v57  ;;  %8877 = vmatprep.mubr.bf16.mxu0 %v6095_v53 }
 0xb32   : > { %8863 = vmatprep.subr.bf16.mxu0 %v9690_v14  ;;  %8914 = vmatpush3.bf16.msra.mxu1 %v9709_v2 }
 0xb33   : > { %8915 = vmatprep.subr.bf16.mxu1 %v9710_v4 }
 0xb35   : > { %8864 = vmatpush3.bf16.msra.mxu0 %v9690_v14 }
 0xb36   : > { %8865 = vmatprep.subr.bf16.mxu0 %v9691_v19  ;;  %8916 = vmatpush3.bf16.msra.mxu1 %v9710_v4 }
 0xb39   : > { %8866 = vmatpush3.bf16.msra.mxu0 %v9691_v19 }
 0xb3a   : > { %8867 = vmatprep.subr.bf16.mxu0 %v9692_v20 }
 0xb3d   : > { %8868 = vmatpush3.bf16.msra.mxu0 %v9692_v20  ;;  %v9711_v20 = vld [vmem:[%s9937_s6 + $0x30] sm:$0xff]  }
 0xb3e   : > { %8869 = vmatprep.subr.bf16.mxu0 %v9693_v21  ;;  %8917 = vmatprep.subr.bf16.mxu1 %v9711_v20 }
 0xb3f   : > { %8918 = vmatpush3.bf16.msra.mxu1 %v9711_v20 }
 0xb41   : > { %8870 = vmatpush3.bf16.msra.mxu0 %v9693_v21  ;;  %v9712_v21 = vld [vmem:[%s9937_s6 + $0x38] sm:$0xff]  }
 0xb42   : > { %8871 = vmatprep.subr.bf16.mxu0 %v9694_v22  ;;  %8919 = vmatprep.subr.bf16.mxu1 %v9712_v21 }
 0xb43   : > { %8920 = vmatpush3.bf16.msra.mxu1 %v9712_v21 }
 0xb45   : > { %8872 = vmatpush3.bf16.msra.mxu0 %v9694_v22  ;;  %v8282_v22 = vld [vmem:[%s9932_s20] ss:$0 sm:$0xff] }
 0xb46   : > { %8873 = vmatprep.subr.bf16.mxu0 %v9695_v23 }
 0xb49   : > { %8874 = vmatpush3.bf16.msra.mxu0 %v9695_v23 }
 0xb4a   : > { %8875 = vmatprep.subr.bf16.mxu0 %v9696_v24 }
 0xb4d   : > { %8876 = vmatpush3.bf16.msra.mxu0 %v9696_v24 }
 0xb4e   : > { %8881 = vmatprep.subr.bf16.mxu0 %v9697_v27 }
 0xb50   : > { %8878 = vmatmul.mubr.bf16.vlgmr.msra.gmra.mrb[60].mxu0 %v10678_v51 }
 0xb51   : > { %8882 = vmatpush3.bf16.msra.mxu0 %v9697_v27 }
 0xb52   : > { %8883 = vmatprep.subr.bf16.mxu0 %v9698_v59 }
 0xb55   : > { %8884 = vmatpush3.bf16.msra.mxu0 %v9698_v59 }
 0xb56   : > { %8885 = vmatprep.subr.bf16.mxu0 %v9699_v28 }
 0xb59   : > { %8886 = vmatpush3.bf16.msra.mxu0 %v9699_v28 }
 0xb5a   : > { %8887 = vmatprep.subr.bf16.mxu0 %v9700_v29 }
 0xb5d   : > { %8888 = vmatpush3.bf16.msra.mxu0 %v9700_v29 }
 0xb5e   : > { %8893 = vmatprep.subr.bf16.mxu0 %v9701_v30 }
 0xc03   : > { %v8859_v25 = vpop.f32.mrb[56].mxu0 }
 0xc04   : > { %v6724_v52 = vpop.f32.mrb[57].mxu0  ;;  %v6752_v15 = vadd.f32 %v8859_v25, %v8265_v26 }
 0xc05   : > { %v8860_v13 = vpop.f32.mrb[58].mxu0  ;;  %v6750_v18 = vadd.f32 %v8265_v26, %v6724_v52 }
 0xc06   : > { %v6727_v16 = vpop.f32.mrb[59].mxu0  ;;  %v6753_v48 = vadd.f32 %v8860_v13, %v8265_v26  ;;  %v6756_v10 = vmax.f32 %v6752_v15, 0.0 }
 0xc07   : > { %v6751_v35 = vadd.f32 %v8265_v26, %v6727_v16  ;;  %v6754_v60 = vmax.f32 %v6750_v18, 0.0 }
 0xc08   : > { %v6757_v42 = vmax.f32 %v6753_v48, 0.0 }
 0xc09   : > { %v6755_v37 = vmax.f32 %v6751_v35, 0.0 }
 0xc23   : > { %v8879_v36 = vpop.f32.mrb[60].mxu0 }
 0xc24   : > { %v6874_v38 = vadd.f32 %v8879_v36, %v8266_v33  ;;  %v6865_v11 = vpop.f32.mrb[61].mxu0 }
 0xc25   : > { %v6866_v40 = vadd.f32 %v8266_v33, %v6865_v11  ;;  %v8880_v41 = vpop.f32.mrb[62].mxu0 }
 0xc26   : > { %v6882_v43 = vadd.f32 %v6874_v38, %v6756_v10  ;;  %v6877_v6 = vadd.f32 %v8880_v41, %v8266_v33  ;;  %v6868_v32 = vpop.f32.mrb[63].mxu0 }
 0xc27   : > { %v6880_v44 = vadd.f32 %v6866_v40, %v6754_v60  ;;  %v6869_v39 = vadd.f32 %v8266_v33, %v6868_v32  ;;  %v8289_v33 = vld [vmem:[%s9942_s4] ss:$0 sm:$0xff] }
 0xc28   : > { %v6883_v46 = vadd.f32 %v6877_v6, %v6757_v42  ;;  %v6886_v49 = vmax.f32 %v6882_v43, 0.0 }
 0xc29   : > { %v6881_v34 = vadd.f32 %v6869_v39, %v6755_v37  ;;  %v6884_v51 = vmax.f32 %v6880_v44, 0.0 }
 0xc2a   : > { %v6887_v50 = vmax.f32 %v6883_v46, 0.0 }
 0xc2b   : > { %v6885_v53 = vmax.f32 %v6881_v34, 0.0 }
 0xc2c   : > { %v6889_v45 = vpack.c.bf16 %v6887_v50, %v6886_v49 }
 0xc2d   : > { %v6888_v56 = vpack.c.bf16 %v6885_v53, %v6884_v51  ;;  %v7212_v51 = vld [vmem:[%s1067_s10 + $0x10] sm:$0xff]  ;;  %v7210_v53 = vld [vmem:[%s1067_s10] sm:$0xff] }
 0xc2e   : > { %6891 = vst.msk [vmem:[#allocation2 + $0x50] sm:$0xff] %vm6467_vm5, %v6889_v45 }
 0xc2f   : > { %6890 = vst.msk [vmem:[#allocation2 + $0x20] sm:$0xff] %vm6467_vm5, %v6888_v56 }
 0xc35   : > { %v6893_v57 = vld [vmem:[#allocation2 + $0x50] sm:$0xff] }
 0xc36   : > { %v6892_v54 = vld [vmem:[#allocation2 + $0x20] sm:$0xff] }
 0xc37   : > { %8889 = vmatprep.mubr.msk.bf16.mxu0 %vm6467_vm5, %v6892_v54 }
 0xc38   : > { %8890 = vmatmul.mubr.msk.bf16.vlgmr.msra.gmra.mrb[64].mxu0 %vm6467_vm5, %v6893_v57  ;;  %v7213_v57 = vld [vmem:[%s1067_s10 + $0x18] sm:$0xff] }
 0xc39   : > { %8894 = vmatpush3.bf16.msra.mxu0 %v9701_v30 }
 0xc3a   : > { %8895 = vmatprep.subr.bf16.mxu0 %v9702_v55 }
 0xc3d   : > { %8896 = vmatpush3.bf16.msra.mxu0 %v9702_v55 }
 0xc3e   : > { %8897 = vmatprep.subr.bf16.mxu0 %v9703_v47 }
 0xc41   : > { %8898 = vmatpush3.bf16.msra.mxu0 %v9703_v47 }
 0xc42   : > { %8899 = vmatprep.subr.bf16.mxu0 %v9704_v58 }
 0xc45   : > { %8900 = vmatpush3.bf16.msra.mxu0 %v9704_v58  ;;  %v7211_v58 = vld [vmem:[%s1067_s10 + $0x8] sm:$0xff] }
 0xd0b   : > { %v8891_v3 = vpop.f32.mrb[64].mxu0 }
 0xd0c   : > { %v6973_v8 = vpop.f32.mrb[65].mxu0  ;;  %v6982_v63 = vadd.f32 %v8891_v3, %v8275_v7 }
 0xd0d   : > { %v8892_v31 = vpop.f32.mrb[66].mxu0  ;;  %v6974_v12 = vadd.f32 %v8275_v7, %v6973_v8 }
 0xd0e   : > { %v6985_v61 = vadd.f32 %v8892_v31, %v8275_v7  ;;  %v6976_v9 = vpop.f32.mrb[67].mxu0 }
 0xd0f   : > { %v6977_v14 = vadd.f32 %v8275_v7, %v6976_v9 }
 0xd10   : > { %v6989_v17 = vpack.c.bf16 %v6985_v61, %v6982_v63 }
 0xd11   : > { %v6988_v19 = vpack.c.bf16 %v6977_v14, %v6974_v12 }
 0xd13   : > { %8901 = vmatprep.mubr.msk.bf16.mxu0 %vm6467_vm5, %v6988_v19 }
 0xd14   : > { %8902 = vmatmul.mubr.msk.bf16.vlgmr.msra.gmra.mrb[68].mxu0 %vm6467_vm5, %v6989_v17 }
 0xde7   : > { %v8903_v23 = vpop.f32.mrb[68].mxu0 }
 0xde8   : > { %v7078_v24 = vadd.f32 %v8903_v23, %v8282_v22  ;;  %v7069_v27 = vpop.f32.mrb[69].mxu0 }
 0xde9   : > { %v7070_v59 = vadd.f32 %v8282_v22, %v7069_v27  ;;  %v8904_v28 = vpop.f32.mrb[70].mxu0 }
 0xdea   : > { %v7081_v29 = vadd.f32 %v8904_v28, %v8282_v22  ;;  %v7072_v30 = vpop.f32.mrb[71].mxu0  ;;  %v7086_v52 = vmax.f32 %v7078_v24, 0.0 }
 0xdeb   : > { %v7073_v25 = vadd.f32 %v8282_v22, %v7072_v30  ;;  %v7084_v16 = vmax.f32 %v7070_v59, 0.0 }
 0xdec   : > { %v7087_v13 = vmax.f32 %v7081_v29, 0.0 }
 0xded   : > { %v7085_v26 = vmax.f32 %v7073_v25, 0.0 }
 0xdee   : > { %v7089_v15 = vpack.c.bf16 %v7087_v13, %v7086_v52 }
 0xdef   : > { %v7088_v18 = vpack.c.bf16 %v7085_v26, %v7084_v16 }
 0xdf1   : > { %8921 = vmatprep.mubr.bf16.mxu1 %v7088_v18 }
 0xdf2   : > { %8922 = vmatmul.mubr.bf16.vlgmr.msra.gmra.mrb[32].mxu1 %v7089_v15 }
 0xec5   : > { %v8923_v48 = vpop.f32.mrb[32].mxu1 }
 0xec6   : > { %v7204_v35 = vadd.f32 %v8923_v48, %v8289_v33  ;;  %v7195_v36 = vpop.f32.mrb[33].mxu1 }
 0xec7   : > { %v7196_v10 = vadd.f32 %v8289_v33, %v7195_v36  ;;  %v8924_v38 = vpop.f32.mrb[34].mxu1 }
 0xec8   : > { %v7216_v11 = vmul.f32 0.5, %v7204_v35  ;;  %v7207_v60 = vadd.f32 %v8924_v38, %v8289_v33  ;;  %v7198_v40 = vpop.f32.mrb[35].mxu1 }
 0xec9   : > { %v7214_v41 = vmul.f32 0.5, %v7196_v10  ;;  %v7199_v42 = vadd.f32 %v8289_v33, %v7198_v40 }
 0xeca   : > { %v7222_v43 = vmul.f32 1.442695, %v7216_v11  ;;  %v7217_v6 = vmul.f32 0.5, %v7207_v60 }
 0xecb   : > { %v7218_v32 = vmul.f32 1.442695, %v7214_v41  ;;  %v7215_v37 = vmul.f32 0.5, %v7199_v42 }
 0xecc   : > { %9713 = vpow2.f32 %v7222_v43  ;;  %v7224_v44 = vmul.f32 1.442695, %v7217_v6 }
 0xecd   : > { %9715 = vpow2.f32 %v7218_v32  ;;  %v7220_v39 = vmul.f32 1.442695, %v7215_v37 }
 0xece   : > { %9717 = vpow2.f32 %v7224_v44 }
 0xecf   : > { %9719 = vpow2.f32 %v7220_v39 }
 0xed6   : > { %v9714_v46 = vpop.eup %9713 }
 0xed7   : > { %v9716_v34 = vpop.eup %9715  ;;  %7234 = vrot.lane.b32.xlu1 %v9714_v46, %s9768_s2 }
 0xed8   : > { %7230 = vrot.lane.b32.xlu0 %v9716_v34, %s9768_s2  ;;  %v9718_v49 = vpop.eup %9717 }
 0xed9   : > { %v9720_v50 = vpop.eup %9719 }
 0xedb   : > { %7236 = vrot.lane.b32.xlu1 %v9718_v49, %s9768_s2 }
 0xedc   : > { %7232 = vrot.lane.b32.xlu0 %v9720_v50, %s9768_s2 }
 0xf49   : > { %v7235_v45 = vpop.permute.xlu1 %7234 }
 0xf4a   : > { %v7244_v56 = vmul.f32 %v7235_v45, %v7212_v51  ;;  %v7231_v54 = vpop.permute.xlu0 %7230 }
 0xf4b   : > { %v7242_v55 = vmul.f32 %v7231_v54, %v7210_v53 }
 0xf4c   : > { %v7248_v47 = vadd.f32 %v7244_v56, %v7204_v35 }
 0xf4d   : > { %v7246_v62 = vadd.f32 %v7242_v55, %v7196_v10  ;;  %v7237_v0 = vpop.permute.xlu1 %7236 }
 0xf4e   : > { %7253 = vst.msk [vmem:[%s1074_s16 + $0x10] sm:$0xff] %vm7250_vm6, %v7248_v47  ;;  %v7245_v1 = vmul.f32 %v7237_v0, %v7213_v57  ;;  %v7233_v5 = vpop.permute.xlu0 %7232 }
 0xf4f   : > { %7251 = vst.msk [vmem:[%s1074_s16] sm:$0xff] %vm7250_vm6, %v7246_v62  ;;  %v7243_v2 = vmul.f32 %v7233_v5, %v7211_v58 }
 0xf50   : > { %v7249_v4 = vadd.f32 %v7245_v1, %v7207_v60 }
 0xf51   : > { %v7247_v3 = vadd.f32 %v7243_v2, %v7199_v42 }
 0xf52   : > { %7254 = vst.msk [vmem:[%s1074_s16 + $0x18] sm:$0xff] %vm7250_vm6, %v7249_v4 }
 0xf53   : > { %7252 = vst.msk [vmem:[%s1074_s16 + $0x8] sm:$0xff] %vm7250_vm6, %v7247_v3 }
 0xf54 PF: > { %s79_s15 = sadd.s32 1, %s9731_s15  }
 0xf55   : > { %p76_p4 = scmp.ge.s32.totalorder %s79_s15, 4  }
 0xf57   :  { %78 = sbr.rel (!%p76_p4) target bundleno = 53 (0x35), region = 243 }

</bundles_post_ra>
